<compile_context>
chip_gen: v6e
topology: v6e:2x2x1
jax: 0.10.0
libtpu: 0.0.40
codegen_flags: <defaults>
</compile_context>

<pallas_src>
import jax
import jax.numpy as jnp
import numpy as np
from jax.experimental import pallas as pl
from jax.experimental.pallas import tpu as pltpu

N_EMBD = 384
N_HEAD = 6
HEAD_SIZE = N_EMBD // N_HEAD
FF_HIDDEN = 4 * N_EMBD
LN_EPS = 1e-5          # PyTorch nn.LayerNorm default
MASK_NEG = -1e30       # finite "minus infinity" for causal masking


def _layernorm(x, gamma, beta):
    """LayerNorm over the last axis in f32; gamma/beta are (1, C)."""
    mu = jnp.mean(x, axis=-1, keepdims=True)
    var = jnp.mean((x - mu) * (x - mu), axis=-1, keepdims=True)
    return (x - mu) * jax.lax.rsqrt(var + LN_EPS) * gamma + beta


def block_kernel(x_ref, g1_ref, b1_ref, wq_ref, wk_ref, wv_ref,
                 wp_ref, bp_ref, g2_ref, b2_ref,
                 w1_ref, bb1_ref, w2_ref, bb2_ref, o_ref):
    bt, T, C = x_ref.shape
    R = bt * T

    # Flatten the batch tile: every big matmul below gets M = bt*T rows.
    x = x_ref[...].astype(jnp.float32).reshape(R, C)

    # ---- LayerNorm 1 (f32) ----
    h = _layernorm(x, g1_ref[...], b1_ref[...])
    hb = h.astype(jnp.bfloat16)

    # ---- QKV projections: (R, C) x (C, C), bf16 in, f32 accumulate ----
    q = jnp.dot(hb, wq_ref[...], preferred_element_type=jnp.float32)
    k = jnp.dot(hb, wk_ref[...], preferred_element_type=jnp.float32)
    v = jnp.dot(hb, wv_ref[...], preferred_element_type=jnp.float32)

    # ---- Causal additive mask, built once and hoisted out of the head loop ----
    row = jax.lax.broadcasted_iota(jnp.int32, (T, T), 0)
    col = jax.lax.broadcasted_iota(jnp.int32, (T, T), 1)
    neg = jnp.where(row >= col, 0.0, MASK_NEG).astype(jnp.float32)   # (T, T)
    neg3 = jnp.broadcast_to(neg, (bt, T, T))                         # hoisted

    # ---- Multi-head causal self-attention (NO 1/sqrt(hs) scaling, as in the
    #      reference Head).  Each head: einsums batched over the bt sequences,
    #      contraction on the last dims (no explicit transpose). ----
    head_outs = []
    for hd in range(N_HEAD):
        lo = hd * HEAD_SIZE
        qs = q[:, lo:lo + HEAD_SIZE].reshape(bt, T, HEAD_SIZE).astype(jnp.bfloat16)
        ks = k[:, lo:lo + HEAD_SIZE].reshape(bt, T, HEAD_SIZE).astype(jnp.bfloat16)
        vs = v[:, lo:lo + HEAD_SIZE].reshape(bt, T, HEAD_SIZE).astype(jnp.bfloat16)
        wei = jnp.einsum('bqd,bkd->bqk', qs, ks,
                         preferred_element_type=jnp.float32)          # (bt, T, T)
        wei = wei + neg3
        wei = wei - jnp.max(wei, axis=-1, keepdims=True)
        e = jnp.exp(wei)
        p = e * pl.reciprocal(jnp.sum(e, axis=-1, keepdims=True), approx=True)
        ho = jnp.einsum('bqk,bkd->bqd', p.astype(jnp.bfloat16), vs,
                        preferred_element_type=jnp.float32)           # (bt, T, hs)
        head_outs.append(ho.reshape(R, HEAD_SIZE))
    att = jnp.concatenate(head_outs, axis=-1)                         # (R, C)

    # ---- Output projection (attention / proj dropout: identity in eval) ----
    sa = jnp.dot(att.astype(jnp.bfloat16), wp_ref[...],
                 preferred_element_type=jnp.float32) + bp_ref[...]

    # ---- LayerNorm 2 (f32) ----
    h2 = _layernorm(sa, g2_ref[...], b2_ref[...])

    # ---- FeedForward: Linear -> ReLU -> Linear (-> Dropout identity) ----
    ff = jnp.dot(h2.astype(jnp.bfloat16), w1_ref[...],
                 preferred_element_type=jnp.float32) + bb1_ref[...]
    ff = jnp.maximum(ff, 0.0)
    out = jnp.dot(ff.astype(jnp.bfloat16), w2_ref[...],
                  preferred_element_type=jnp.float32) + bb2_ref[...]

    o_ref[...] = out.reshape(bt, T, C).astype(o_ref.dtype)


def _pick_batch_tile(B, T, target_rows=256):
    """Largest divisor of B whose tile holds at most ~target_rows rows."""
    bt = 1
    for d in range(1, B + 1):
        if B % d == 0 and d * T <= max(target_rows, T):
            bt = d
    return bt


def block_forward(x, params):
    B, T, C = x.shape
    assert C == N_EMBD
    bt = _pick_batch_tile(B, T)
    grid = (B // bt,)

    def const2d(shape):
        # Whole-array weight/bias block; block index never changes across the
        # grid, so the pipeline keeps it VMEM-resident (no re-DMA per step).
        return pl.BlockSpec(shape, lambda b: (0, 0))

    in_specs = [
        pl.BlockSpec((bt, T, C), lambda b: (b, 0, 0)),   # x   (batch tile)
        const2d((1, C)),                                  # ln1 gamma (f32)
        const2d((1, C)),                                  # ln1 beta  (f32)
        const2d((C, C)),                                  # Wq (bf16, all heads)
        const2d((C, C)),                                  # Wk (bf16)
        const2d((C, C)),                                  # Wv (bf16)
        const2d((C, C)),                                  # Wproj (bf16)
        const2d((1, C)),                                  # bproj (f32)
        const2d((1, C)),                                  # ln2 gamma
        const2d((1, C)),                                  # ln2 beta
        const2d((C, FF_HIDDEN)),                          # W1 (bf16)
        const2d((1, FF_HIDDEN)),                          # b1 (f32)
        const2d((FF_HIDDEN, C)),                          # W2 (bf16)
        const2d((1, C)),                                  # b2 (f32)
    ]

    return pl.pallas_call(
        block_kernel,
        out_shape=jax.ShapeDtypeStruct((B, T, C), x.dtype),
        grid=grid,
        in_specs=in_specs,
        out_specs=pl.BlockSpec((bt, T, C), lambda b: (b, 0, 0)),
        compiler_params=pltpu.CompilerParams(
            # Batch-tile axis is embarrassingly parallel (v7x 2-TC / megacore).
            dimension_semantics=("parallel",),
            # bf16 weights (~3.5 MiB) x 2 buffers + activation tiles; 40 MiB
            # leaves headroom and fits v7x's 64 MiB VMEM.
            vmem_limit_bytes=40 * 1024 * 1024,
        ),
    )(x, *params)


def init_params(key):
    ks = jax.random.split(key, 6)
    scale = 0.02
    C, H = N_EMBD, FF_HIDDEN
    f32, bf16 = jnp.float32, jnp.bfloat16
    return (
        jnp.ones((1, C), f32),                                          # ln1 gamma
        jnp.zeros((1, C), f32),                                         # ln1 beta
        (scale * jax.random.normal(ks[0], (C, C), f32)).astype(bf16),   # Wq
        (scale * jax.random.normal(ks[1], (C, C), f32)).astype(bf16),   # Wk
        (scale * jax.random.normal(ks[2], (C, C), f32)).astype(bf16),   # Wv
        (scale * jax.random.normal(ks[3], (C, C), f32)).astype(bf16),   # Wproj
        jnp.zeros((1, C), f32),                                         # bproj
        jnp.ones((1, C), f32),                                          # ln2 gamma
        jnp.zeros((1, C), f32),                                         # ln2 beta
        (scale * jax.random.normal(ks[4], (C, H), f32)).astype(bf16),   # W1
        jnp.zeros((1, H), f32),                                         # b1
        (scale * jax.random.normal(ks[5], (H, C), f32)).astype(bf16),   # W2
        jnp.zeros((1, C), f32),                                         # b2
    )


def block_reference(x, params):
    """Pure-JAX reference with the same mixed-precision math (exact softmax)."""
    (g1, b1, wq, wk, wv, wp, bp, g2, b2, w1, bb1, w2, bb2) = params
    B, T, C = x.shape
    h = _layernorm(x.astype(jnp.float32).reshape(B * T, C), g1, b1)
    hb = h.astype(jnp.bfloat16)
    q = jnp.dot(hb, wq, preferred_element_type=jnp.float32).reshape(B, T, C)
    k = jnp.dot(hb, wk, preferred_element_type=jnp.float32).reshape(B, T, C)
    v = jnp.dot(hb, wv, preferred_element_type=jnp.float32).reshape(B, T, C)
    causal = jnp.tril(jnp.ones((T, T), dtype=bool))
    outs = []
    for hd in range(N_HEAD):
        lo = hd * HEAD_SIZE
        qs = q[:, :, lo:lo + HEAD_SIZE].astype(jnp.bfloat16)
        ks = k[:, :, lo:lo + HEAD_SIZE].astype(jnp.bfloat16)
        vs = v[:, :, lo:lo + HEAD_SIZE].astype(jnp.bfloat16)
        wei = jnp.einsum('bqd,bkd->bqk', qs, ks, preferred_element_type=jnp.float32)
        wei = jnp.where(causal[None], wei, MASK_NEG)
        p = jax.nn.softmax(wei, axis=-1)
        outs.append(jnp.einsum('bqk,bkd->bqd', p.astype(jnp.bfloat16), vs,
                               preferred_element_type=jnp.float32))
    att = jnp.concatenate(outs, axis=-1).reshape(B * T, C)
    sa = jnp.dot(att.astype(jnp.bfloat16), wp, preferred_element_type=jnp.float32) + bp
    h2 = _layernorm(sa, g2, b2)
    ff = jnp.maximum(jnp.dot(h2.astype(jnp.bfloat16), w1,
                             preferred_element_type=jnp.float32) + bb1, 0.0)
    out = jnp.dot(ff.astype(jnp.bfloat16), w2,
                  preferred_element_type=jnp.float32) + bb2
    return out.reshape(B, T, C).astype(x.dtype)


if __name__ == "__main__":
    key = jax.random.PRNGKey(0)
    kx, kp = jax.random.split(key)

    B, T = 2, 8          # small seq (T <= block_size=256), full n_embd=384
    x = jax.random.normal(kx, (B, T, N_EMBD), jnp.float32)
    params = init_params(kp)

    out = jax.block_until_ready(block_forward(x, params))
    ref = jax.block_until_ready(block_reference(x, params))

    assert out.shape == (B, T, N_EMBD), out.shape
    assert bool(jnp.all(jnp.isfinite(out)))
    np.testing.assert_allclose(np.asarray(out), np.asarray(ref),
                               rtol=5e-2, atol=5e-3)
    print("KERNEL_OK")
</pallas_src>

<mosaic_0001>
module attributes {stable_mosaic.version = 11 : i64} {
  func.func @block_kernel(%arg0: i32, %arg1: memref<2x8x384xf32, #tpu.memory_space<vmem>>, %arg2: memref<1x384xf32, #tpu.memory_space<vmem>>, %arg3: memref<1x384xf32, #tpu.memory_space<vmem>>, %arg4: memref<384x384xbf16, #tpu.memory_space<vmem>>, %arg5: memref<384x384xbf16, #tpu.memory_space<vmem>>, %arg6: memref<384x384xbf16, #tpu.memory_space<vmem>>, %arg7: memref<384x384xbf16, #tpu.memory_space<vmem>>, %arg8: memref<1x384xf32, #tpu.memory_space<vmem>>, %arg9: memref<1x384xf32, #tpu.memory_space<vmem>>, %arg10: memref<1x384xf32, #tpu.memory_space<vmem>>, %arg11: memref<384x1536xbf16, #tpu.memory_space<vmem>>, %arg12: memref<1x1536xf32, #tpu.memory_space<vmem>>, %arg13: memref<1536x384xbf16, #tpu.memory_space<vmem>>, %arg14: memref<1x384xf32, #tpu.memory_space<vmem>>, %arg15: memref<2x8x384xf32, #tpu.memory_space<vmem>>) attributes {dimension_semantics = [#tpu.dimension_semantics<parallel>], iteration_bounds = array<i64: 1>, scalar_prefetch = 0 : i64, scratch_operands = 0 : i64, tpu.core_type = #tpu.core_type<tc>, window_params = [{transform_indices = @transform_0, window_bounds = array<i64: 2, 8, 384>}, {pipeline_mode = #tpu.pipeline_mode<synchronous>, transform_indices = @transform_1, window_bounds = array<i64: 1, 384>}, {pipeline_mode = #tpu.pipeline_mode<synchronous>, transform_indices = @transform_2, window_bounds = array<i64: 1, 384>}, {pipeline_mode = #tpu.pipeline_mode<synchronous>, transform_indices = @transform_3, window_bounds = array<i64: 384, 384>}, {pipeline_mode = #tpu.pipeline_mode<synchronous>, transform_indices = @transform_4, window_bounds = array<i64: 384, 384>}, {pipeline_mode = #tpu.pipeline_mode<synchronous>, transform_indices = @transform_5, window_bounds = array<i64: 384, 384>}, {pipeline_mode = #tpu.pipeline_mode<synchronous>, transform_indices = @transform_6, window_bounds = array<i64: 384, 384>}, {pipeline_mode = #tpu.pipeline_mode<synchronous>, transform_indices = @transform_7, window_bounds = array<i64: 1, 384>}, {pipeline_mode = #tpu.pipeline_mode<synchronous>, transform_indices = @transform_8, window_bounds = array<i64: 1, 384>}, {pipeline_mode = #tpu.pipeline_mode<synchronous>, transform_indices = @transform_9, window_bounds = array<i64: 1, 384>}, {pipeline_mode = #tpu.pipeline_mode<synchronous>, transform_indices = @transform_10, window_bounds = array<i64: 384, 1536>}, {pipeline_mode = #tpu.pipeline_mode<synchronous>, transform_indices = @transform_11, window_bounds = array<i64: 1, 1536>}, {pipeline_mode = #tpu.pipeline_mode<synchronous>, transform_indices = @transform_12, window_bounds = array<i64: 1536, 384>}, {pipeline_mode = #tpu.pipeline_mode<synchronous>, transform_indices = @transform_13, window_bounds = array<i64: 1, 384>}, {transform_indices = @transform_14, window_bounds = array<i64: 2, 8, 384>}]} {
    %c0 = arith.constant 0 : index
    %c0_0 = arith.constant 0 : index
    %c0_1 = arith.constant 0 : index
    %0 = vector.load %arg1[%c0, %c0_0, %c0_1] : memref<2x8x384xf32, #tpu.memory_space<vmem>>, vector<2x8x384xf32>
    %1 = vector.shape_cast %0 : vector<2x8x384xf32> to vector<16x384xf32>
    %c0_2 = arith.constant 0 : index
    %c0_3 = arith.constant 0 : index
    %2 = vector.load %arg2[%c0_2, %c0_3] : memref<1x384xf32, #tpu.memory_space<vmem>>, vector<1x384xf32>
    %c0_4 = arith.constant 0 : index
    %c0_5 = arith.constant 0 : index
    %3 = vector.load %arg3[%c0_4, %c0_5] : memref<1x384xf32, #tpu.memory_space<vmem>>, vector<1x384xf32>
    %cst = arith.constant dense<0.000000e+00> : vector<16xf32>
    %4 = vector.multi_reduction <add>, %1, %cst [1] : vector<16x384xf32> to vector<16xf32>
    %5 = vector.shape_cast %4 : vector<16xf32> to vector<16x1xf32>
    %cst_6 = arith.constant 3.840000e+02 : f32
    %6 = vector.broadcast %cst_6 : f32 to vector<16x1xf32>
    %7 = arith.divf %5, %6 : vector<16x1xf32>
    %8 = vector.broadcast %7 : vector<16x1xf32> to vector<16x384xf32>
    %9 = arith.subf %1, %8 : vector<16x384xf32>
    %10 = vector.broadcast %7 : vector<16x1xf32> to vector<16x384xf32>
    %11 = arith.subf %1, %10 : vector<16x384xf32>
    %12 = arith.mulf %9, %11 : vector<16x384xf32>
    %cst_7 = arith.constant dense<0.000000e+00> : vector<16xf32>
    %13 = vector.multi_reduction <add>, %12, %cst_7 [1] : vector<16x384xf32> to vector<16xf32>
    %14 = vector.shape_cast %13 : vector<16xf32> to vector<16x1xf32>
    %cst_8 = arith.constant 3.840000e+02 : f32
    %15 = vector.broadcast %cst_8 : f32 to vector<16x1xf32>
    %16 = arith.divf %14, %15 : vector<16x1xf32>
    %17 = vector.broadcast %7 : vector<16x1xf32> to vector<16x384xf32>
    %18 = arith.subf %1, %17 : vector<16x384xf32>
    %cst_9 = arith.constant 9.99999974E-6 : f32
    %19 = vector.broadcast %cst_9 : f32 to vector<16x1xf32>
    %20 = arith.addf %16, %19 : vector<16x1xf32>
    %21 = math.rsqrt %20 : vector<16x1xf32>
    %22 = vector.broadcast %21 : vector<16x1xf32> to vector<16x384xf32>
    %23 = arith.mulf %18, %22 : vector<16x384xf32>
    %24 = vector.broadcast %2 : vector<1x384xf32> to vector<16x384xf32>
    %25 = arith.mulf %23, %24 : vector<16x384xf32>
    %26 = vector.broadcast %3 : vector<1x384xf32> to vector<16x384xf32>
    %27 = arith.addf %25, %26 : vector<16x384xf32>
    %28 = arith.truncf %27 : vector<16x384xf32> to vector<16x384xbf16>
    %c0_10 = arith.constant 0 : index
    %c0_11 = arith.constant 0 : index
    %29 = vector.load %arg4[%c0_10, %c0_11] : memref<384x384xbf16, #tpu.memory_space<vmem>>, vector<384x384xbf16>
    %cst_12 = arith.constant dense<0.000000e+00> : vector<16x384xf32>
    %30 = tpu.matmul %28, %29, %cst_12 {dimension_numbers = #tpu.dot_dimension_numbers<[1], [0], [0], [1], [0, 0, 1, 1], [], []>} : vector<16x384xbf16>, vector<384x384xbf16>, vector<16x384xf32> -> vector<16x384xf32>
    %c0_13 = arith.constant 0 : index
    %c0_14 = arith.constant 0 : index
    %31 = vector.load %arg5[%c0_13, %c0_14] : memref<384x384xbf16, #tpu.memory_space<vmem>>, vector<384x384xbf16>
    %cst_15 = arith.constant dense<0.000000e+00> : vector<16x384xf32>
    %32 = tpu.matmul %28, %31, %cst_15 {dimension_numbers = #tpu.dot_dimension_numbers<[1], [0], [0], [1], [0, 0, 1, 1], [], []>} : vector<16x384xbf16>, vector<384x384xbf16>, vector<16x384xf32> -> vector<16x384xf32>
    %c0_16 = arith.constant 0 : index
    %c0_17 = arith.constant 0 : index
    %33 = vector.load %arg6[%c0_16, %c0_17] : memref<384x384xbf16, #tpu.memory_space<vmem>>, vector<384x384xbf16>
    %cst_18 = arith.constant dense<0.000000e+00> : vector<16x384xf32>
    %34 = tpu.matmul %28, %33, %cst_18 {dimension_numbers = #tpu.dot_dimension_numbers<[1], [0], [0], [1], [0, 0, 1, 1], [], []>} : vector<16x384xbf16>, vector<384x384xbf16>, vector<16x384xf32> -> vector<16x384xf32>
    %35 = tpu.iota {dimensions = array<i32: 0>} : vector<8x8xi32>
    %36 = tpu.iota {dimensions = array<i32: 1>} : vector<8x8xi32>
    %37 = arith.cmpi sge, %35, %36 : vector<8x8xi32>
    %cst_19 = arith.constant 0.000000e+00 : f32
    %cst_20 = arith.constant -1.000000e+30 : f32
    %38 = vector.broadcast %cst_19 : f32 to vector<8x8xf32>
    %39 = vector.broadcast %cst_20 : f32 to vector<8x8xf32>
    %40 = arith.select %37, %38, %39 : vector<8x8xi1>, vector<8x8xf32>
    %41 = vector.shape_cast %40 : vector<8x8xf32> to vector<1x8x8xf32>
    %42 = vector.broadcast %41 : vector<1x8x8xf32> to vector<2x8x8xf32>
    %43 = vector.extract_strided_slice %30 {offsets = [0, 0], sizes = [16, 64], strides = [1, 1]} : vector<16x384xf32> to vector<16x64xf32>
    %44 = vector.shape_cast %43 : vector<16x64xf32> to vector<2x8x64xf32>
    %45 = arith.truncf %44 : vector<2x8x64xf32> to vector<2x8x64xbf16>
    %46 = vector.extract_strided_slice %32 {offsets = [0, 0], sizes = [16, 64], strides = [1, 1]} : vector<16x384xf32> to vector<16x64xf32>
    %47 = vector.shape_cast %46 : vector<16x64xf32> to vector<2x8x64xf32>
    %48 = arith.truncf %47 : vector<2x8x64xf32> to vector<2x8x64xbf16>
    %49 = vector.extract_strided_slice %34 {offsets = [0, 0], sizes = [16, 64], strides = [1, 1]} : vector<16x384xf32> to vector<16x64xf32>
    %50 = vector.shape_cast %49 : vector<16x64xf32> to vector<2x8x64xf32>
    %51 = arith.truncf %50 : vector<2x8x64xf32> to vector<2x8x64xbf16>
    "tpu.trace_start"() <{level = 10 : i32, message = "bqd,bkd->bqk"}> : () -> ()
    %cst_21 = arith.constant dense<0.000000e+00> : vector<2x8x8xf32>
    %52 = tpu.matmul %45, %48, %cst_21 {dimension_numbers = #tpu.dot_dimension_numbers<[2], [2], [1], [1], [0, 0, 0, 1, 1, 1], [0], [0]>} : vector<2x8x64xbf16>, vector<2x8x64xbf16>, vector<2x8x8xf32> -> vector<2x8x8xf32>
    "tpu.trace_stop"() : () -> ()
    %53 = arith.addf %52, %42 : vector<2x8x8xf32>
    %cst_22 = arith.constant dense<0xFF800000> : vector<2x8xf32>
    %54 = vector.multi_reduction <maximumf>, %53, %cst_22 [2] : vector<2x8x8xf32> to vector<2x8xf32>
    %55 = vector.shape_cast %54 : vector<2x8xf32> to vector<2x8x1xf32>
    %56 = vector.broadcast %55 : vector<2x8x1xf32> to vector<2x8x8xf32>
    %57 = arith.subf %53, %56 : vector<2x8x8xf32>
    %58 = math.exp %57 : vector<2x8x8xf32>
    %cst_23 = arith.constant dense<0.000000e+00> : vector<2x8xf32>
    %59 = vector.multi_reduction <add>, %58, %cst_23 [2] : vector<2x8x8xf32> to vector<2x8xf32>
    %60 = vector.shape_cast %59 : vector<2x8xf32> to vector<2x8x1xf32>
    %61 = tpu.reciprocal %60 {approx = true} : vector<2x8x1xf32> -> vector<2x8x1xf32>
    %62 = vector.broadcast %61 : vector<2x8x1xf32> to vector<2x8x8xf32>
    %63 = arith.mulf %58, %62 : vector<2x8x8xf32>
    %64 = arith.truncf %63 : vector<2x8x8xf32> to vector<2x8x8xbf16>
    "tpu.trace_start"() <{level = 10 : i32, message = "bqk,bkd->bqd"}> : () -> ()
    %cst_24 = arith.constant dense<0.000000e+00> : vector<2x8x64xf32>
    %65 = tpu.matmul %64, %51, %cst_24 {dimension_numbers = #tpu.dot_dimension_numbers<[2], [1], [1], [2], [0, 0, 0, 1, 1, 2], [0], [0]>} : vector<2x8x8xbf16>, vector<2x8x64xbf16>, vector<2x8x64xf32> -> vector<2x8x64xf32>
    "tpu.trace_stop"() : () -> ()
    %66 = vector.shape_cast %65 : vector<2x8x64xf32> to vector<16x64xf32>
    %67 = vector.extract_strided_slice %30 {offsets = [0, 64], sizes = [16, 64], strides = [1, 1]} : vector<16x384xf32> to vector<16x64xf32>
    %68 = vector.shape_cast %67 : vector<16x64xf32> to vector<2x8x64xf32>
    %69 = arith.truncf %68 : vector<2x8x64xf32> to vector<2x8x64xbf16>
    %70 = vector.extract_strided_slice %32 {offsets = [0, 64], sizes = [16, 64], strides = [1, 1]} : vector<16x384xf32> to vector<16x64xf32>
    %71 = vector.shape_cast %70 : vector<16x64xf32> to vector<2x8x64xf32>
    %72 = arith.truncf %71 : vector<2x8x64xf32> to vector<2x8x64xbf16>
    %73 = vector.extract_strided_slice %34 {offsets = [0, 64], sizes = [16, 64], strides = [1, 1]} : vector<16x384xf32> to vector<16x64xf32>
    %74 = vector.shape_cast %73 : vector<16x64xf32> to vector<2x8x64xf32>
    %75 = arith.truncf %74 : vector<2x8x64xf32> to vector<2x8x64xbf16>
    "tpu.trace_start"() <{level = 10 : i32, message = "bqd,bkd->bqk"}> : () -> ()
    %cst_25 = arith.constant dense<0.000000e+00> : vector<2x8x8xf32>
    %76 = tpu.matmul %69, %72, %cst_25 {dimension_numbers = #tpu.dot_dimension_numbers<[2], [2], [1], [1], [0, 0, 0, 1, 1, 1], [0], [0]>} : vector<2x8x64xbf16>, vector<2x8x64xbf16>, vector<2x8x8xf32> -> vector<2x8x8xf32>
    "tpu.trace_stop"() : () -> ()
    %77 = arith.addf %76, %42 : vector<2x8x8xf32>
    %cst_26 = arith.constant dense<0xFF800000> : vector<2x8xf32>
    %78 = vector.multi_reduction <maximumf>, %77, %cst_26 [2] : vector<2x8x8xf32> to vector<2x8xf32>
    %79 = vector.shape_cast %78 : vector<2x8xf32> to vector<2x8x1xf32>
    %80 = vector.broadcast %79 : vector<2x8x1xf32> to vector<2x8x8xf32>
    %81 = arith.subf %77, %80 : vector<2x8x8xf32>
    %82 = math.exp %81 : vector<2x8x8xf32>
    %cst_27 = arith.constant dense<0.000000e+00> : vector<2x8xf32>
    %83 = vector.multi_reduction <add>, %82, %cst_27 [2] : vector<2x8x8xf32> to vector<2x8xf32>
    %84 = vector.shape_cast %83 : vector<2x8xf32> to vector<2x8x1xf32>
    %85 = tpu.reciprocal %84 {approx = true} : vector<2x8x1xf32> -> vector<2x8x1xf32>
    %86 = vector.broadcast %85 : vector<2x8x1xf32> to vector<2x8x8xf32>
    %87 = arith.mulf %82, %86 : vector<2x8x8xf32>
    %88 = arith.truncf %87 : vector<2x8x8xf32> to vector<2x8x8xbf16>
    "tpu.trace_start"() <{level = 10 : i32, message = "bqk,bkd->bqd"}> : () -> ()
    %cst_28 = arith.constant dense<0.000000e+00> : vector<2x8x64xf32>
    %89 = tpu.matmul %88, %75, %cst_28 {dimension_numbers = #tpu.dot_dimension_numbers<[2], [1], [1], [2], [0, 0, 0, 1, 1, 2], [0], [0]>} : vector<2x8x8xbf16>, vector<2x8x64xbf16>, vector<2x8x64xf32> -> vector<2x8x64xf32>
    "tpu.trace_stop"() : () -> ()
    %90 = vector.shape_cast %89 : vector<2x8x64xf32> to vector<16x64xf32>
    %91 = vector.extract_strided_slice %30 {offsets = [0, 128], sizes = [16, 64], strides = [1, 1]} : vector<16x384xf32> to vector<16x64xf32>
    %92 = vector.shape_cast %91 : vector<16x64xf32> to vector<2x8x64xf32>
    %93 = arith.truncf %92 : vector<2x8x64xf32> to vector<2x8x64xbf16>
    %94 = vector.extract_strided_slice %32 {offsets = [0, 128], sizes = [16, 64], strides = [1, 1]} : vector<16x384xf32> to vector<16x64xf32>
    %95 = vector.shape_cast %94 : vector<16x64xf32> to vector<2x8x64xf32>
    %96 = arith.truncf %95 : vector<2x8x64xf32> to vector<2x8x64xbf16>
    %97 = vector.extract_strided_slice %34 {offsets = [0, 128], sizes = [16, 64], strides = [1, 1]} : vector<16x384xf32> to vector<16x64xf32>
    %98 = vector.shape_cast %97 : vector<16x64xf32> to vector<2x8x64xf32>
    %99 = arith.truncf %98 : vector<2x8x64xf32> to vector<2x8x64xbf16>
    "tpu.trace_start"() <{level = 10 : i32, message = "bqd,bkd->bqk"}> : () -> ()
    %cst_29 = arith.constant dense<0.000000e+00> : vector<2x8x8xf32>
    %100 = tpu.matmul %93, %96, %cst_29 {dimension_numbers = #tpu.dot_dimension_numbers<[2], [2], [1], [1], [0, 0, 0, 1, 1, 1], [0], [0]>} : vector<2x8x64xbf16>, vector<2x8x64xbf16>, vector<2x8x8xf32> -> vector<2x8x8xf32>
    "tpu.trace_stop"() : () -> ()
    %101 = arith.addf %100, %42 : vector<2x8x8xf32>
    %cst_30 = arith.constant dense<0xFF800000> : vector<2x8xf32>
    %102 = vector.multi_reduction <maximumf>, %101, %cst_30 [2] : vector<2x8x8xf32> to vector<2x8xf32>
    %103 = vector.shape_cast %102 : vector<2x8xf32> to vector<2x8x1xf32>
    %104 = vector.broadcast %103 : vector<2x8x1xf32> to vector<2x8x8xf32>
    %105 = arith.subf %101, %104 : vector<2x8x8xf32>
    %106 = math.exp %105 : vector<2x8x8xf32>
    %cst_31 = arith.constant dense<0.000000e+00> : vector<2x8xf32>
    %107 = vector.multi_reduction <add>, %106, %cst_31 [2] : vector<2x8x8xf32> to vector<2x8xf32>
    %108 = vector.shape_cast %107 : vector<2x8xf32> to vector<2x8x1xf32>
    %109 = tpu.reciprocal %108 {approx = true} : vector<2x8x1xf32> -> vector<2x8x1xf32>
    %110 = vector.broadcast %109 : vector<2x8x1xf32> to vector<2x8x8xf32>
    %111 = arith.mulf %106, %110 : vector<2x8x8xf32>
    %112 = arith.truncf %111 : vector<2x8x8xf32> to vector<2x8x8xbf16>
    "tpu.trace_start"() <{level = 10 : i32, message = "bqk,bkd->bqd"}> : () -> ()
    %cst_32 = arith.constant dense<0.000000e+00> : vector<2x8x64xf32>
    %113 = tpu.matmul %112, %99, %cst_32 {dimension_numbers = #tpu.dot_dimension_numbers<[2], [1], [1], [2], [0, 0, 0, 1, 1, 2], [0], [0]>} : vector<2x8x8xbf16>, vector<2x8x64xbf16>, vector<2x8x64xf32> -> vector<2x8x64xf32>
    "tpu.trace_stop"() : () -> ()
    %114 = vector.shape_cast %113 : vector<2x8x64xf32> to vector<16x64xf32>
    %115 = vector.extract_strided_slice %30 {offsets = [0, 192], sizes = [16, 64], strides = [1, 1]} : vector<16x384xf32> to vector<16x64xf32>
    %116 = vector.shape_cast %115 : vector<16x64xf32> to vector<2x8x64xf32>
    %117 = arith.truncf %116 : vector<2x8x64xf32> to vector<2x8x64xbf16>
    %118 = vector.extract_strided_slice %32 {offsets = [0, 192], sizes = [16, 64], strides = [1, 1]} : vector<16x384xf32> to vector<16x64xf32>
    %119 = vector.shape_cast %118 : vector<16x64xf32> to vector<2x8x64xf32>
    %120 = arith.truncf %119 : vector<2x8x64xf32> to vector<2x8x64xbf16>
    %121 = vector.extract_strided_slice %34 {offsets = [0, 192], sizes = [16, 64], strides = [1, 1]} : vector<16x384xf32> to vector<16x64xf32>
    %122 = vector.shape_cast %121 : vector<16x64xf32> to vector<2x8x64xf32>
    %123 = arith.truncf %122 : vector<2x8x64xf32> to vector<2x8x64xbf16>
    "tpu.trace_start"() <{level = 10 : i32, message = "bqd,bkd->bqk"}> : () -> ()
    %cst_33 = arith.constant dense<0.000000e+00> : vector<2x8x8xf32>
    %124 = tpu.matmul %117, %120, %cst_33 {dimension_numbers = #tpu.dot_dimension_numbers<[2], [2], [1], [1], [0, 0, 0, 1, 1, 1], [0], [0]>} : vector<2x8x64xbf16>, vector<2x8x64xbf16>, vector<2x8x8xf32> -> vector<2x8x8xf32>
    "tpu.trace_stop"() : () -> ()
    %125 = arith.addf %124, %42 : vector<2x8x8xf32>
    %cst_34 = arith.constant dense<0xFF800000> : vector<2x8xf32>
    %126 = vector.multi_reduction <maximumf>, %125, %cst_34 [2] : vector<2x8x8xf32> to vector<2x8xf32>
    %127 = vector.shape_cast %126 : vector<2x8xf32> to vector<2x8x1xf32>
    %128 = vector.broadcast %127 : vector<2x8x1xf32> to vector<2x8x8xf32>
    %129 = arith.subf %125, %128 : vector<2x8x8xf32>
    %130 = math.exp %129 : vector<2x8x8xf32>
    %cst_35 = arith.constant dense<0.000000e+00> : vector<2x8xf32>
    %131 = vector.multi_reduction <add>, %130, %cst_35 [2] : vector<2x8x8xf32> to vector<2x8xf32>
    %132 = vector.shape_cast %131 : vector<2x8xf32> to vector<2x8x1xf32>
    %133 = tpu.reciprocal %132 {approx = true} : vector<2x8x1xf32> -> vector<2x8x1xf32>
    %134 = vector.broadcast %133 : vector<2x8x1xf32> to vector<2x8x8xf32>
    %135 = arith.mulf %130, %134 : vector<2x8x8xf32>
    %136 = arith.truncf %135 : vector<2x8x8xf32> to vector<2x8x8xbf16>
    "tpu.trace_start"() <{level = 10 : i32, message = "bqk,bkd->bqd"}> : () -> ()
    %cst_36 = arith.constant dense<0.000000e+00> : vector<2x8x64xf32>
    %137 = tpu.matmul %136, %123, %cst_36 {dimension_numbers = #tpu.dot_dimension_numbers<[2], [1], [1], [2], [0, 0, 0, 1, 1, 2], [0], [0]>} : vector<2x8x8xbf16>, vector<2x8x64xbf16>, vector<2x8x64xf32> -> vector<2x8x64xf32>
    "tpu.trace_stop"() : () -> ()
    %138 = vector.shape_cast %137 : vector<2x8x64xf32> to vector<16x64xf32>
    %139 = vector.extract_strided_slice %30 {offsets = [0, 256], sizes = [16, 64], strides = [1, 1]} : vector<16x384xf32> to vector<16x64xf32>
    %140 = vector.shape_cast %139 : vector<16x64xf32> to vector<2x8x64xf32>
    %141 = arith.truncf %140 : vector<2x8x64xf32> to vector<2x8x64xbf16>
    %142 = vector.extract_strided_slice %32 {offsets = [0, 256], sizes = [16, 64], strides = [1, 1]} : vector<16x384xf32> to vector<16x64xf32>
    %143 = vector.shape_cast %142 : vector<16x64xf32> to vector<2x8x64xf32>
    %144 = arith.truncf %143 : vector<2x8x64xf32> to vector<2x8x64xbf16>
    %145 = vector.extract_strided_slice %34 {offsets = [0, 256], sizes = [16, 64], strides = [1, 1]} : vector<16x384xf32> to vector<16x64xf32>
    %146 = vector.shape_cast %145 : vector<16x64xf32> to vector<2x8x64xf32>
    %147 = arith.truncf %146 : vector<2x8x64xf32> to vector<2x8x64xbf16>
    "tpu.trace_start"() <{level = 10 : i32, message = "bqd,bkd->bqk"}> : () -> ()
    %cst_37 = arith.constant dense<0.000000e+00> : vector<2x8x8xf32>
    %148 = tpu.matmul %141, %144, %cst_37 {dimension_numbers = #tpu.dot_dimension_numbers<[2], [2], [1], [1], [0, 0, 0, 1, 1, 1], [0], [0]>} : vector<2x8x64xbf16>, vector<2x8x64xbf16>, vector<2x8x8xf32> -> vector<2x8x8xf32>
    "tpu.trace_stop"() : () -> ()
    %149 = arith.addf %148, %42 : vector<2x8x8xf32>
    %cst_38 = arith.constant dense<0xFF800000> : vector<2x8xf32>
    %150 = vector.multi_reduction <maximumf>, %149, %cst_38 [2] : vector<2x8x8xf32> to vector<2x8xf32>
    %151 = vector.shape_cast %150 : vector<2x8xf32> to vector<2x8x1xf32>
    %152 = vector.broadcast %151 : vector<2x8x1xf32> to vector<2x8x8xf32>
    %153 = arith.subf %149, %152 : vector<2x8x8xf32>
    %154 = math.exp %153 : vector<2x8x8xf32>
    %cst_39 = arith.constant dense<0.000000e+00> : vector<2x8xf32>
    %155 = vector.multi_reduction <add>, %154, %cst_39 [2] : vector<2x8x8xf32> to vector<2x8xf32>
    %156 = vector.shape_cast %155 : vector<2x8xf32> to vector<2x8x1xf32>
    %157 = tpu.reciprocal %156 {approx = true} : vector<2x8x1xf32> -> vector<2x8x1xf32>
    %158 = vector.broadcast %157 : vector<2x8x1xf32> to vector<2x8x8xf32>
    %159 = arith.mulf %154, %158 : vector<2x8x8xf32>
    %160 = arith.truncf %159 : vector<2x8x8xf32> to vector<2x8x8xbf16>
    "tpu.trace_start"() <{level = 10 : i32, message = "bqk,bkd->bqd"}> : () -> ()
    %cst_40 = arith.constant dense<0.000000e+00> : vector<2x8x64xf32>
    %161 = tpu.matmul %160, %147, %cst_40 {dimension_numbers = #tpu.dot_dimension_numbers<[2], [1], [1], [2], [0, 0, 0, 1, 1, 2], [0], [0]>} : vector<2x8x8xbf16>, vector<2x8x64xbf16>, vector<2x8x64xf32> -> vector<2x8x64xf32>
    "tpu.trace_stop"() : () -> ()
    %162 = vector.shape_cast %161 : vector<2x8x64xf32> to vector<16x64xf32>
    %163 = vector.extract_strided_slice %30 {offsets = [0, 320], sizes = [16, 64], strides = [1, 1]} : vector<16x384xf32> to vector<16x64xf32>
    %164 = vector.shape_cast %163 : vector<16x64xf32> to vector<2x8x64xf32>
    %165 = arith.truncf %164 : vector<2x8x64xf32> to vector<2x8x64xbf16>
    %166 = vector.extract_strided_slice %32 {offsets = [0, 320], sizes = [16, 64], strides = [1, 1]} : vector<16x384xf32> to vector<16x64xf32>
    %167 = vector.shape_cast %166 : vector<16x64xf32> to vector<2x8x64xf32>
    %168 = arith.truncf %167 : vector<2x8x64xf32> to vector<2x8x64xbf16>
    %169 = vector.extract_strided_slice %34 {offsets = [0, 320], sizes = [16, 64], strides = [1, 1]} : vector<16x384xf32> to vector<16x64xf32>
    %170 = vector.shape_cast %169 : vector<16x64xf32> to vector<2x8x64xf32>
    %171 = arith.truncf %170 : vector<2x8x64xf32> to vector<2x8x64xbf16>
    "tpu.trace_start"() <{level = 10 : i32, message = "bqd,bkd->bqk"}> : () -> ()
    %cst_41 = arith.constant dense<0.000000e+00> : vector<2x8x8xf32>
    %172 = tpu.matmul %165, %168, %cst_41 {dimension_numbers = #tpu.dot_dimension_numbers<[2], [2], [1], [1], [0, 0, 0, 1, 1, 1], [0], [0]>} : vector<2x8x64xbf16>, vector<2x8x64xbf16>, vector<2x8x8xf32> -> vector<2x8x8xf32>
    "tpu.trace_stop"() : () -> ()
    %173 = arith.addf %172, %42 : vector<2x8x8xf32>
    %cst_42 = arith.constant dense<0xFF800000> : vector<2x8xf32>
    %174 = vector.multi_reduction <maximumf>, %173, %cst_42 [2] : vector<2x8x8xf32> to vector<2x8xf32>
    %175 = vector.shape_cast %174 : vector<2x8xf32> to vector<2x8x1xf32>
    %176 = vector.broadcast %175 : vector<2x8x1xf32> to vector<2x8x8xf32>
    %177 = arith.subf %173, %176 : vector<2x8x8xf32>
    %178 = math.exp %177 : vector<2x8x8xf32>
    %cst_43 = arith.constant dense<0.000000e+00> : vector<2x8xf32>
    %179 = vector.multi_reduction <add>, %178, %cst_43 [2] : vector<2x8x8xf32> to vector<2x8xf32>
    %180 = vector.shape_cast %179 : vector<2x8xf32> to vector<2x8x1xf32>
    %181 = tpu.reciprocal %180 {approx = true} : vector<2x8x1xf32> -> vector<2x8x1xf32>
    %182 = vector.broadcast %181 : vector<2x8x1xf32> to vector<2x8x8xf32>
    %183 = arith.mulf %178, %182 : vector<2x8x8xf32>
    %184 = arith.truncf %183 : vector<2x8x8xf32> to vector<2x8x8xbf16>
    "tpu.trace_start"() <{level = 10 : i32, message = "bqk,bkd->bqd"}> : () -> ()
    %cst_44 = arith.constant dense<0.000000e+00> : vector<2x8x64xf32>
    %185 = tpu.matmul %184, %171, %cst_44 {dimension_numbers = #tpu.dot_dimension_numbers<[2], [1], [1], [2], [0, 0, 0, 1, 1, 2], [0], [0]>} : vector<2x8x8xbf16>, vector<2x8x64xbf16>, vector<2x8x64xf32> -> vector<2x8x64xf32>
    "tpu.trace_stop"() : () -> ()
    %186 = vector.shape_cast %185 : vector<2x8x64xf32> to vector<16x64xf32>
    %187 = tpu.concatenate %66, %90, %114, %138, %162, %186 in 1 : vector<16x64xf32>, vector<16x64xf32>, vector<16x64xf32>, vector<16x64xf32>, vector<16x64xf32>, vector<16x64xf32> -> vector<16x384xf32>
    %188 = arith.truncf %187 : vector<16x384xf32> to vector<16x384xbf16>
    %c0_45 = arith.constant 0 : index
    %c0_46 = arith.constant 0 : index
    %189 = vector.load %arg7[%c0_45, %c0_46] : memref<384x384xbf16, #tpu.memory_space<vmem>>, vector<384x384xbf16>
    %cst_47 = arith.constant dense<0.000000e+00> : vector<16x384xf32>
    %190 = tpu.matmul %188, %189, %cst_47 {dimension_numbers = #tpu.dot_dimension_numbers<[1], [0], [0], [1], [0, 0, 1, 1], [], []>} : vector<16x384xbf16>, vector<384x384xbf16>, vector<16x384xf32> -> vector<16x384xf32>
    %c0_48 = arith.constant 0 : index
    %c0_49 = arith.constant 0 : index
    %191 = vector.load %arg8[%c0_48, %c0_49] : memref<1x384xf32, #tpu.memory_space<vmem>>, vector<1x384xf32>
    %192 = vector.broadcast %191 : vector<1x384xf32> to vector<16x384xf32>
    %193 = arith.addf %190, %192 : vector<16x384xf32>
    %c0_50 = arith.constant 0 : index
    %c0_51 = arith.constant 0 : index
    %194 = vector.load %arg9[%c0_50, %c0_51] : memref<1x384xf32, #tpu.memory_space<vmem>>, vector<1x384xf32>
    %c0_52 = arith.constant 0 : index
    %c0_53 = arith.constant 0 : index
    %195 = vector.load %arg10[%c0_52, %c0_53] : memref<1x384xf32, #tpu.memory_space<vmem>>, vector<1x384xf32>
    %cst_54 = arith.constant dense<0.000000e+00> : vector<16xf32>
    %196 = vector.multi_reduction <add>, %193, %cst_54 [1] : vector<16x384xf32> to vector<16xf32>
    %197 = vector.shape_cast %196 : vector<16xf32> to vector<16x1xf32>
    %cst_55 = arith.constant 3.840000e+02 : f32
    %198 = vector.broadcast %cst_55 : f32 to vector<16x1xf32>
    %199 = arith.divf %197, %198 : vector<16x1xf32>
    %200 = vector.broadcast %199 : vector<16x1xf32> to vector<16x384xf32>
    %201 = arith.subf %193, %200 : vector<16x384xf32>
    %202 = vector.broadcast %199 : vector<16x1xf32> to vector<16x384xf32>
    %203 = arith.subf %193, %202 : vector<16x384xf32>
    %204 = arith.mulf %201, %203 : vector<16x384xf32>
    %cst_56 = arith.constant dense<0.000000e+00> : vector<16xf32>
    %205 = vector.multi_reduction <add>, %204, %cst_56 [1] : vector<16x384xf32> to vector<16xf32>
    %206 = vector.shape_cast %205 : vector<16xf32> to vector<16x1xf32>
    %cst_57 = arith.constant 3.840000e+02 : f32
    %207 = vector.broadcast %cst_57 : f32 to vector<16x1xf32>
    %208 = arith.divf %206, %207 : vector<16x1xf32>
    %209 = vector.broadcast %199 : vector<16x1xf32> to vector<16x384xf32>
    %210 = arith.subf %193, %209 : vector<16x384xf32>
    %cst_58 = arith.constant 9.99999974E-6 : f32
    %211 = vector.broadcast %cst_58 : f32 to vector<16x1xf32>
    %212 = arith.addf %208, %211 : vector<16x1xf32>
    %213 = math.rsqrt %212 : vector<16x1xf32>
    %214 = vector.broadcast %213 : vector<16x1xf32> to vector<16x384xf32>
    %215 = arith.mulf %210, %214 : vector<16x384xf32>
    %216 = vector.broadcast %194 : vector<1x384xf32> to vector<16x384xf32>
    %217 = arith.mulf %215, %216 : vector<16x384xf32>
    %218 = vector.broadcast %195 : vector<1x384xf32> to vector<16x384xf32>
    %219 = arith.addf %217, %218 : vector<16x384xf32>
    %220 = arith.truncf %219 : vector<16x384xf32> to vector<16x384xbf16>
    %c0_59 = arith.constant 0 : index
    %c0_60 = arith.constant 0 : index
    %221 = vector.load %arg11[%c0_59, %c0_60] : memref<384x1536xbf16, #tpu.memory_space<vmem>>, vector<384x1536xbf16>
    %cst_61 = arith.constant dense<0.000000e+00> : vector<16x1536xf32>
    %222 = tpu.matmul %220, %221, %cst_61 {dimension_numbers = #tpu.dot_dimension_numbers<[1], [0], [0], [1], [0, 0, 1, 1], [], []>} : vector<16x384xbf16>, vector<384x1536xbf16>, vector<16x1536xf32> -> vector<16x1536xf32>
    %c0_62 = arith.constant 0 : index
    %c0_63 = arith.constant 0 : index
    %223 = vector.load %arg12[%c0_62, %c0_63] : memref<1x1536xf32, #tpu.memory_space<vmem>>, vector<1x1536xf32>
    %224 = vector.broadcast %223 : vector<1x1536xf32> to vector<16x1536xf32>
    %225 = arith.addf %222, %224 : vector<16x1536xf32>
    %cst_64 = arith.constant 0.000000e+00 : f32
    %226 = vector.broadcast %cst_64 : f32 to vector<16x1536xf32>
    %227 = arith.maximumf %225, %226 : vector<16x1536xf32>
    %228 = arith.truncf %227 : vector<16x1536xf32> to vector<16x1536xbf16>
    %c0_65 = arith.constant 0 : index
    %c0_66 = arith.constant 0 : index
    %229 = vector.load %arg13[%c0_65, %c0_66] : memref<1536x384xbf16, #tpu.memory_space<vmem>>, vector<1536x384xbf16>
    %cst_67 = arith.constant dense<0.000000e+00> : vector<16x384xf32>
    %230 = tpu.matmul %228, %229, %cst_67 {dimension_numbers = #tpu.dot_dimension_numbers<[1], [0], [0], [1], [0, 0, 1, 1], [], []>} : vector<16x1536xbf16>, vector<1536x384xbf16>, vector<16x384xf32> -> vector<16x384xf32>
    %c0_68 = arith.constant 0 : index
    %c0_69 = arith.constant 0 : index
    %231 = vector.load %arg14[%c0_68, %c0_69] : memref<1x384xf32, #tpu.memory_space<vmem>>, vector<1x384xf32>
    %232 = vector.broadcast %231 : vector<1x384xf32> to vector<16x384xf32>
    %233 = arith.addf %230, %232 : vector<16x384xf32>
    %234 = vector.shape_cast %233 : vector<16x384xf32> to vector<2x8x384xf32>
    %c0_70 = arith.constant 0 : index
    %c0_71 = arith.constant 0 : index
    %c0_72 = arith.constant 0 : index
    %235 = vector.load %arg15[%c0_70, %c0_71, %c0_72] : memref<2x8x384xf32, #tpu.memory_space<vmem>>, vector<2x8x384xf32>
    tpu.vector_store %arg15[%c0_70, %c0_71, %c0_72], %234 {strides = array<i32>} : memref<2x8x384xf32, #tpu.memory_space<vmem>>, vector<2x8x384xf32>,
    return
  }
  func.func @transform_0(%arg0: i32) -> (i32, i32, i32) {
    %c0_i32 = arith.constant 0 : i32
    %c0_i32_0 = arith.constant 0 : i32
    %c0_i32_1 = arith.constant 0 : i32
    return %arg0, %c0_i32, %c0_i32_0 : i32, i32, i32
  }
  func.func @transform_1(%arg0: i32) -> (i32, i32) {
    %c0_i32 = arith.constant 0 : i32
    %c0_i32_0 = arith.constant 0 : i32
    %c0_i32_1 = arith.constant 0 : i32
    return %c0_i32, %c0_i32_0 : i32, i32
  }
  func.func @transform_2(%arg0: i32) -> (i32, i32) {
    %c0_i32 = arith.constant 0 : i32
    %c0_i32_0 = arith.constant 0 : i32
    %c0_i32_1 = arith.constant 0 : i32
    return %c0_i32, %c0_i32_0 : i32, i32
  }
  func.func @transform_3(%arg0: i32) -> (i32, i32) {
    %c0_i32 = arith.constant 0 : i32
    %c0_i32_0 = arith.constant 0 : i32
    %c0_i32_1 = arith.constant 0 : i32
    return %c0_i32, %c0_i32_0 : i32, i32
  }
  func.func @transform_4(%arg0: i32) -> (i32, i32) {
    %c0_i32 = arith.constant 0 : i32
    %c0_i32_0 = arith.constant 0 : i32
    %c0_i32_1 = arith.constant 0 : i32
    return %c0_i32, %c0_i32_0 : i32, i32
  }
  func.func @transform_5(%arg0: i32) -> (i32, i32) {
    %c0_i32 = arith.constant 0 : i32
    %c0_i32_0 = arith.constant 0 : i32
    %c0_i32_1 = arith.constant 0 : i32
    return %c0_i32, %c0_i32_0 : i32, i32
  }
  func.func @transform_6(%arg0: i32) -> (i32, i32) {
    %c0_i32 = arith.constant 0 : i32
    %c0_i32_0 = arith.constant 0 : i32
    %c0_i32_1 = arith.constant 0 : i32
    return %c0_i32, %c0_i32_0 : i32, i32
  }
  func.func @transform_7(%arg0: i32) -> (i32, i32) {
    %c0_i32 = arith.constant 0 : i32
    %c0_i32_0 = arith.constant 0 : i32
    %c0_i32_1 = arith.constant 0 : i32
    return %c0_i32, %c0_i32_0 : i32, i32
  }
  func.func @transform_8(%arg0: i32) -> (i32, i32) {
    %c0_i32 = arith.constant 0 : i32
    %c0_i32_0 = arith.constant 0 : i32
    %c0_i32_1 = arith.constant 0 : i32
    return %c0_i32, %c0_i32_0 : i32, i32
  }
  func.func @transform_9(%arg0: i32) -> (i32, i32) {
    %c0_i32 = arith.constant 0 : i32
    %c0_i32_0 = arith.constant 0 : i32
    %c0_i32_1 = arith.constant 0 : i32
    return %c0_i32, %c0_i32_0 : i32, i32
  }
  func.func @transform_10(%arg0: i32) -> (i32, i32) {
    %c0_i32 = arith.constant 0 : i32
    %c0_i32_0 = arith.constant 0 : i32
    %c0_i32_1 = arith.constant 0 : i32
    return %c0_i32, %c0_i32_0 : i32, i32
  }
  func.func @transform_11(%arg0: i32) -> (i32, i32) {
    %c0_i32 = arith.constant 0 : i32
    %c0_i32_0 = arith.constant 0 : i32
    %c0_i32_1 = arith.constant 0 : i32
    return %c0_i32, %c0_i32_0 : i32, i32
  }
  func.func @transform_12(%arg0: i32) -> (i32, i32) {
    %c0_i32 = arith.constant 0 : i32
    %c0_i32_0 = arith.constant 0 : i32
    %c0_i32_1 = arith.constant 0 : i32
    return %c0_i32, %c0_i32_0 : i32, i32
  }
  func.func @transform_13(%arg0: i32) -> (i32, i32) {
    %c0_i32 = arith.constant 0 : i32
    %c0_i32_0 = arith.constant 0 : i32
    %c0_i32_1 = arith.constant 0 : i32
    return %c0_i32, %c0_i32_0 : i32, i32
  }
  func.func @transform_14(%arg0: i32) -> (i32, i32, i32) {
    %c0_i32 = arith.constant 0 : i32
    %c0_i32_0 = arith.constant 0 : i32
    %c0_i32_1 = arith.constant 0 : i32
    return %arg0, %c0_i32, %c0_i32_0 : i32, i32, i32
  }
}

</mosaic_0001>

<bundles_post_ra>
// kernel: tpu_custom_call.1
= control target key start
LH: loop header
LB: loop body
LE: loop exit
PB: predicated region body
PF: predicated region fallthrough
CT: control target
= control target key end

     0   :  { %19 = vsyncpa [#allocation3], 0  ;;  %s13027_s0 = inlined_call_operand.hbm [shape: f32[2,8,384], index: 0, kind: input, shape index: {}]   ;;  %s13028_s1 = inlined_call_operand.hbm [shape: f32[1,384], index: 1, kind: input, shape index: {}]   ;;  %s13029_s2 = inlined_call_operand.hbm [shape: f32[1,384], index: 2, kind: input, shape index: {}]   ;;  %s13030_s3 = inlined_call_operand.hbm [shape: bf16[384,384], index: 3, kind: input, shape index: {}]   ;;  %s13031_s4 = inlined_call_operand.hbm [shape: bf16[384,384], index: 4, kind: input, shape index: {}]   ;;  %s13032_s5 = inlined_call_operand.hbm [shape: bf16[384,384], index: 5, kind: input, shape index: {}]   ;;  %s13033_s6 = inlined_call_operand.hbm [shape: bf16[384,384], index: 6, kind: input, shape index: {}]   ;;  %s13034_s7 = inlined_call_operand.hbm [shape: f32[1,384], index: 7, kind: input, shape index: {}]   ;;  %s13035_s8 = inlined_call_operand.hbm [shape: f32[1,384], index: 8, kind: input, shape index: {}]   ;;  %s13036_s9 = inlined_call_operand.hbm [shape: f32[1,384], index: 9, kind: input, shape index: {}]   ;;  %s13037_s10 = inlined_call_operand.hbm [shape: bf16[384,1536], index: 10, kind: input, shape index: {}]   ;;  %s13038_s11 = inlined_call_operand.hbm [shape: f32[1,1536], index: 11, kind: input, shape index: {}]   ;;  %s13039_s12 = inlined_call_operand.hbm [shape: bf16[1536,384], index: 12, kind: input, shape index: {}]   ;;  %s13040_s13 = inlined_call_operand.hbm [shape: f32[1,384], index: 13, kind: input, shape index: {}]   ;;  %s13041_s14 = inlined_call_operand.hbm [shape: f32[2,8,384], index: 14, kind: output, shape index: {}]  }
   0x1   :  { %20 = vsyncpa [#allocation6], 0 }
   0x2   :  { %21 = vsyncpa [#allocation9], 0 }
   0x3   :  { %22 = vsyncpa [#allocation12], 0 }
   0x4   :  { %23 = vsyncpa [#allocation15], 0 }
   0x5   :  { %24 = vsyncpa [#allocation18], 0 }
   0x6   :  { %25 = vsyncpa [#allocation21], 0 }
   0x7   :  { %26 = vsyncpa [#allocation24], 0 }
   0x8   :  { %27 = vsyncpa [#allocation4], 0  ;;  %s12231_s29 = smov [#allocation5]   ;;  %s12232_s15 = smov [#allocation8]  }
   0x9   :  { %s46_s30 = sshll.u32 %s12231_s29, 4  ;;  %s65_s16 = sshll.u32 %s12232_s15, 4  ;;  %s47_s30 = int_to_ptr.vmem [resolvable:$true] %s46_s30  ;;  %s66_s16 = int_to_ptr.vmem [resolvable:$true] %s65_s16 }
   0xa   :  { %s11921_s17 = scalar_lea.vmem %s47_s30, 48  ;;  %s11925_s18 = scalar_lea.vmem %s47_s30, 64 }
   0xb   :  { %p11922_p0 = scmp.ne.s32.totalorder %s47_s30, %s11921_s17  ;;  %p11926_p1 = scmp.lt.s32.totalorder %s47_s30, %s47_s30 }
   0xc   :  { %p11927_p2 = scmp.lt.s32.totalorder %s11925_s18, %s11921_s17 }
   0xe   :  { %p11928_p3 = por %p11927_p2, %p11926_p1 }
  0x10   :  { %p11929_p4 = pnand %p11928_p3, %p11922_p0 }
  0x12   :  { %11932 = shalt.err (!%p11929_p4)
}
  0x13   :  { %49 = dma.hbm_to_vmem [thread:$0]  %s13028_s1, 48, %s47_s30, [#allocation6]  }
  0x14   :  { %s11941_s21 = scalar_lea.vmem %s66_s16, 9216  ;;  %p11946_p6 = scmp.lt.s32.totalorder %s66_s16, %s66_s16 }
  0x15   :  { %p11942_p5 = scmp.ne.s32.totalorder %s66_s16, %s11941_s21  ;;  %p11947_p7 = scmp.lt.s32.totalorder %s11941_s21, %s11941_s21 }
  0x17   :  { %p11948_p8 = por %p11947_p7, %p11946_p6 }
  0x19   :  { %p11949_p9 = pnand %p11948_p8, %p11942_p5 }
  0x1b   :  { %11952 = shalt.err (!%p11949_p9)
}
  0x1c   :  { %s12233_s22 = smov 192   ;;  %s12234_s23 = smov 12  }
  0x1d   :  { %71 = dma.hbm_to_vmem [thread:$0]  %s13030_s3, 9216, %s66_s16, [#allocation9], %s12233_s22, %s12233_s22, %s12234_s23  }
  0x1e   :  { %s12235_s26 = smov [#allocation11]   ;;  %s12236_s28 = smov [#allocation14]  }
  0x1f   :  { %s89_s27 = sshll.u32 %s12235_s26, 4  ;;  %s114_s1 = sshll.u32 %s12236_s28, 4  ;;  %s90_s27 = int_to_ptr.vmem [resolvable:$true] %s89_s27  ;;  %s115_s1 = int_to_ptr.vmem [resolvable:$true] %s114_s1 }
  0x20   :  { %s11961_s29 = scalar_lea.vmem %s90_s27, 9216  ;;  %p11966_p11 = scmp.lt.s32.totalorder %s90_s27, %s90_s27 }
  0x21   :  { %p11962_p10 = scmp.ne.s32.totalorder %s90_s27, %s11961_s29  ;;  %p11967_p12 = scmp.lt.s32.totalorder %s11961_s29, %s11961_s29 }
  0x23   :  { %p11968_p13 = por %p11967_p12, %p11966_p11 }
  0x25   :  { %p11969_p0 = pnand %p11968_p13, %p11962_p10 }
  0x27   :  { %11972 = shalt.err (!%p11969_p0)
}
  0x28   :  { %95 = dma.hbm_to_vmem [thread:$0]  %s13032_s5, 9216, %s90_s27, [#allocation12], %s12233_s22, %s12233_s22, %s12234_s23  }
  0x29   :  { %s11981_s3 = scalar_lea.vmem %s115_s1, 48  ;;  %s11985_s16 = scalar_lea.vmem %s115_s1, 64 }
  0x2a   :  { %p11982_p1 = scmp.ne.s32.totalorder %s115_s1, %s11981_s3  ;;  %p11986_p2 = scmp.lt.s32.totalorder %s115_s1, %s115_s1 }
  0x2b   :  { %p11987_p3 = scmp.lt.s32.totalorder %s11985_s16, %s11981_s3 }
  0x2d   :  { %p11988_p4 = por %p11987_p3, %p11986_p2 }
  0x2f   :  { %p11989_p5 = pnand %p11988_p4, %p11982_p1 }
  0x31   :  { %11992 = shalt.err (!%p11989_p5)
}
  0x32   :  { %117 = dma.hbm_to_vmem [thread:$0]  %s13034_s7, 48, %s115_s1, [#allocation15]  }
  0x33   :  { %s12237_s19 = smov [#allocation17]   ;;  %s12238_s21 = smov [#allocation20]  }
  0x34   :  { %s134_s20 = sshll.u32 %s12237_s19, 4  ;;  %s156_s24 = sshll.u32 %s12238_s21, 4  ;;  %s135_s20 = int_to_ptr.vmem [resolvable:$true] %s134_s20  ;;  %s157_s24 = int_to_ptr.vmem [resolvable:$true] %s156_s24 }
  0x35   :  { %s12001_s25 = scalar_lea.vmem %s135_s20, 48  ;;  %s12005_s5 = scalar_lea.vmem %s135_s20, 64 }
  0x36   :  { %p12002_p6 = scmp.ne.s32.totalorder %s135_s20, %s12001_s25  ;;  %p12006_p7 = scmp.lt.s32.totalorder %s135_s20, %s135_s20 }
  0x37   :  { %p12007_p8 = scmp.lt.s32.totalorder %s12005_s5, %s12001_s25 }
  0x39   :  { %p12008_p9 = por %p12007_p8, %p12006_p7 }
  0x3b   :  { %p12009_p10 = pnand %p12008_p9, %p12002_p6 }
  0x3d   :  { %12012 = shalt.err (!%p12009_p10)
}
  0x3e   :  { %137 = dma.hbm_to_vmem [thread:$0]  %s13036_s9, 48, %s135_s20, [#allocation18]  }
  0x3f   :  { %s12021_s28 = scalar_lea.vmem %s157_s24, 192  ;;  %p12026_p12 = scmp.lt.s32.totalorder %s157_s24, %s157_s24 }
  0x40   :  { %p12022_p11 = scmp.ne.s32.totalorder %s157_s24, %s12021_s28  ;;  %p12027_p13 = scmp.lt.s32.totalorder %s12021_s28, %s12021_s28 }
  0x42   :  { %p12028_p0 = por %p12027_p13, %p12026_p12 }
  0x44   :  { %p12029_p1 = pnand %p12028_p0, %p12022_p11 }
  0x46   :  { %12032 = shalt.err (!%p12029_p1)
}
  0x47   :  { %159 = dma.hbm_to_vmem [thread:$0]  %s13038_s11, 192, %s157_s24, [#allocation21]  }
  0x48   :  { %s12239_s29 = smov [#allocation2]  }
  0x49   :  { %s33_s30 = sshll.u32 %s12239_s29, 4  ;;  %s34_s30 = int_to_ptr.vmem [resolvable:$true] %s33_s30 }
  0x4a   :  { %s12041_s15 = scalar_lea.vmem %s34_s30, 768  ;;  %p12046_p3 = scmp.lt.s32.totalorder %s34_s30, %s34_s30 }
  0x4b   :  { %p12042_p2 = scmp.ne.s32.totalorder %s34_s30, %s12041_s15  ;;  %p12047_p4 = scmp.lt.s32.totalorder %s12041_s15, %s12041_s15 }
  0x4d   :  { %p12048_p5 = por %p12047_p4, %p12046_p3 }
  0x4f   :  { %p12049_p6 = pnand %p12048_p5, %p12042_p2 }
  0x51   :  { %12052 = shalt.err (!%p12049_p6)
}
  0x52   :  { %s12240_s9 = smov 384   ;;  %s12241_s3 = smov 24  }
  0x53   :  { %39 = dma.hbm_to_vmem [thread:$0]  %s13027_s0, 768, %s34_s30, [#allocation3], %s12240_s9, %s12240_s9, %s12241_s3  }
  0x54   :  { %s12242_s11 = smov [#allocation7]   ;;  %s12243_s19 = smov [#allocation10]  }
  0x55   :  { %s56_s18 = sshll.u32 %s12242_s11, 4  ;;  %s77_s20 = sshll.u32 %s12243_s19, 4  ;;  %s57_s18 = int_to_ptr.vmem [resolvable:$true] %s56_s18  ;;  %s78_s20 = int_to_ptr.vmem [resolvable:$true] %s77_s20 }
  0x56   :  { %s12061_s21 = scalar_lea.vmem %s57_s18, 48  ;;  %s12065_s24 = scalar_lea.vmem %s57_s18, 64 }
  0x57   :  { %p12062_p7 = scmp.ne.s32.totalorder %s57_s18, %s12061_s21  ;;  %p12066_p8 = scmp.lt.s32.totalorder %s57_s18, %s57_s18 }
  0x58   :  { %p12067_p9 = scmp.lt.s32.totalorder %s12065_s24, %s12061_s21 }
  0x5a   :  { %p12068_p10 = por %p12067_p9, %p12066_p8 }
  0x5c   :  { %p12069_p11 = pnand %p12068_p10, %p12062_p7 }
  0x5e   :  { %12072 = shalt.err (!%p12069_p11)
}
  0x5f   :  { %59 = dma.hbm_to_vmem [thread:$0]  %s13029_s2, 48, %s57_s18, [#allocation6]  }
  0x60   :  { %s12081_s26 = scalar_lea.vmem %s78_s20, 9216  ;;  %p12086_p13 = scmp.lt.s32.totalorder %s78_s20, %s78_s20 }
  0x61   :  { %p12082_p12 = scmp.ne.s32.totalorder %s78_s20, %s12081_s26  ;;  %p12087_p0 = scmp.lt.s32.totalorder %s12081_s26, %s12081_s26 }
  0x63   :  { %p12088_p1 = por %p12087_p0, %p12086_p13 }
  0x65   :  { %p12089_p2 = pnand %p12088_p1, %p12082_p12 }
  0x67   :  { %12092 = shalt.err (!%p12089_p2)
}
  0x68   :  { %83 = dma.hbm_to_vmem [thread:$0]  %s13031_s4, 9216, %s78_s20, [#allocation9], %s12233_s22, %s12233_s22, %s12234_s23  }
  0x69   :  { %s12244_s28 = smov [#allocation13]   ;;  %s12245_s1 = smov [#allocation16]  }
  0x6a   :  { %s101_s7 = sshll.u32 %s12244_s28, 4  ;;  %s124_s2 = sshll.u32 %s12245_s1, 4  ;;  %s102_s7 = int_to_ptr.vmem [resolvable:$true] %s101_s7  ;;  %s125_s2 = int_to_ptr.vmem [resolvable:$true] %s124_s2 }
  0x6b   :  { %s12101_s29 = scalar_lea.vmem %s102_s7, 9216  ;;  %p12106_p4 = scmp.lt.s32.totalorder %s102_s7, %s102_s7 }
  0x6c   :  { %p12102_p3 = scmp.ne.s32.totalorder %s102_s7, %s12101_s29  ;;  %p12107_p5 = scmp.lt.s32.totalorder %s12101_s29, %s12101_s29 }
  0x6e   :  { %p12108_p6 = por %p12107_p5, %p12106_p4 }
  0x70   :  { %p12109_p7 = pnand %p12108_p6, %p12102_p3 }
  0x72   :  { %12112 = shalt.err (!%p12109_p7)
}
  0x73   :  { %107 = dma.hbm_to_vmem [thread:$0]  %s13033_s6, 9216, %s102_s7, [#allocation12], %s12233_s22, %s12233_s22, %s12234_s23  }
  0x74   :  { %s12121_s4 = scalar_lea.vmem %s125_s2, 48  ;;  %s12125_s16 = scalar_lea.vmem %s125_s2, 64 }
  0x75   :  { %p12122_p8 = scmp.ne.s32.totalorder %s125_s2, %s12121_s4  ;;  %p12126_p9 = scmp.lt.s32.totalorder %s125_s2, %s125_s2 }
  0x76   :  { %p12127_p10 = scmp.lt.s32.totalorder %s12125_s16, %s12121_s4 }
  0x78   :  { %p12128_p11 = por %p12127_p10, %p12126_p9 }
  0x7a   :  { %p12129_p12 = pnand %p12128_p11, %p12122_p8 }
  0x7c   :  { %12132 = shalt.err (!%p12129_p12)
}
  0x7d   :  { %127 = dma.hbm_to_vmem [thread:$0]  %s13035_s8, 48, %s125_s2, [#allocation15]  }
  0x7e   :  { %s12246_s18 = smov [#allocation19]  }
  0x7f   :  { %s143_s19 = sshll.u32 %s12246_s18, 4  ;;  %s144_s19 = int_to_ptr.vmem [resolvable:$true] %s143_s19 }
  0x80   :  { %s12141_s20 = scalar_lea.vmem %s144_s19, 36864  ;;  %p12146_p0 = scmp.lt.s32.totalorder %s144_s19, %s144_s19 }
  0x81   :  { %p12142_p13 = scmp.ne.s32.totalorder %s144_s19, %s12141_s20  ;;  %p12147_p1 = scmp.lt.s32.totalorder %s12141_s20, %s12141_s20 }
  0x83   :  { %p12148_p2 = por %p12147_p1, %p12146_p0 }
  0x85   :  { %p12149_p3 = pnand %p12148_p2, %p12142_p13 }
  0x87   :  { %12152 = shalt.err (!%p12149_p3)
}
  0x88   :  { %s12247_s6 = smov 768   ;;  %s12248_s21 = smov 48  }
  0x89   :  { %149 = dma.hbm_to_vmem [thread:$0]  %s13037_s10, 36864, %s144_s19, [#allocation18], %s12247_s6, %s12247_s6, %s12248_s21  }
  0x8a   :  { %s12249_s5 = smov [#allocation22]   ;;  %s12250_s0 = smov [#allocation23]  }
  0x8b   :  { %s165_s26 = sshll.u32 %s12249_s5, 4  ;;  %s178_s8 = sshll.u32 %s12250_s0, 4  ;;  %s166_s26 = int_to_ptr.vmem [resolvable:$true] %s165_s26  ;;  %s179_s8 = int_to_ptr.vmem [resolvable:$true] %s178_s8 }
  0x8c   :  { %s12161_s27 = scalar_lea.vmem %s166_s26, 36864  ;;  %p12166_p5 = scmp.lt.s32.totalorder %s166_s26, %s166_s26 }
  0x8d   :  { %p12162_p4 = scmp.ne.s32.totalorder %s166_s26, %s12161_s27  ;;  %p12167_p6 = scmp.lt.s32.totalorder %s12161_s27, %s12161_s27 }
  0x8f   :  { %p12168_p7 = por %p12167_p6, %p12166_p5 }
  0x91   :  { %p12169_p8 = pnand %p12168_p7, %p12162_p4 }
  0x93   :  { %12172 = shalt.err (!%p12169_p8)
}
  0x94   :  { %171 = dma.hbm_to_vmem [thread:$0]  %s13039_s12, 36864, %s166_s26, [#allocation21], %s12233_s22, %s12233_s22, %s12234_s23  }
  0x95   :  { %s12181_s10 = scalar_lea.vmem %s179_s8, 48  ;;  %s12185_s1 = scalar_lea.vmem %s179_s8, 64 }
  0x96   :  { %p12182_p9 = scmp.ne.s32.totalorder %s179_s8, %s12181_s10  ;;  %p12186_p10 = scmp.lt.s32.totalorder %s179_s8, %s179_s8 }
  0x97   :  { %p12187_p11 = scmp.lt.s32.totalorder %s12185_s1, %s12181_s10 }
  0x99   :  { %p12188_p12 = por %p12187_p11, %p12186_p10 }
  0x9b   :  { %p12189_p13 = pnand %p12188_p12, %p12182_p9 }
  0x9d   :  { %12192 = shalt.err (!%p12189_p13)
}
  0x9e   :  { %181 = dma.hbm_to_vmem [thread:$0]  %s13040_s13, 48, %s179_s8, [#allocation24]  }
  0x9f   :  { %12213 = dma.done.wait [#allocation3], 768  }
  0xa0   :  { %12214 = vsyncadd [#allocation3], 4294966528 }
  0xa1   :  { %12215 = dma.done.wait [#allocation6], 96  }
  0xa2   :  { %12216 = vsyncadd [#allocation6], 4294967200 }
  0xa3   :  { %12217 = dma.done.wait [#allocation9], 18432  }
  0xa4   :  { %12218 = vsyncadd [#allocation9], 4294948864 }
  0xa5   :  { %12219 = dma.done.wait [#allocation12], 18432  }
  0xa6   :  { %12220 = vsyncadd [#allocation12], 4294948864 }
  0xa7   :  { %12221 = dma.done.wait [#allocation15], 96  }
  0xa8   :  { %12222 = vsyncadd [#allocation15], 4294967200 }
  0xa9   :  { %12223 = dma.done.wait [#allocation18], 36912  }
  0xaa   :  { %12224 = vsyncadd [#allocation18], 4294930384 }
  0xab   :  { %12225 = dma.done.wait [#allocation21], 37056  }
  0xac   :  { %12226 = vsyncadd [#allocation21], 4294930240 }
  0xad   :  { %12227 = dma.done.wait [#allocation24], 48  }
  0xae   :  { %12228 = vsyncadd [#allocation24], 4294967248  ;;  %v225_v0 = vld [vmem:[#allocation2] sm:$0xff]  ;;  %v226_v1 = vld [vmem:[#allocation2 + $0x8] sm:$0xff]  ;;  %vm12253_vm0 = vmmov 0   ;;  %vm2279_vm1 = vcmask 523264  }
  0xaf   :  { %v227_v2 = vld [vmem:[#allocation2 + $0x10] sm:$0xff]  ;;  %v233_v3 = vadd.f32 %v226_v1, %v225_v0  ;;  %v228_v4 = vld [vmem:[#allocation2 + $0x18] sm:$0xff]  ;;  %v229_v5 = vld [vmem:[#allocation2 + $0x20] sm:$0xff]  ;;  %vm2400_vm2 = vcmask 1043456   ;;  %vm2372_vm4 = vcmask 64512   ;;  %s12255_s12 = smov 64  }
  0xb0   :  { %v230_v6 = vld [vmem:[#allocation2 + $0x28] sm:$0xff]  ;;  %v237_v7 = vadd.f32 %v229_v5, %v228_v4  ;;  %v10657_v10 = vld [vmem:[#allocation8 + $0xac] ss:$12 sps:$4 sm:$0xff]   ;;  %v10663_v14 = vld [vmem:[#allocation8 + $0x7c] ss:$12 sps:$4 sm:$0xff]   ;;  %s12256_s13 = smov [#allocation25]  }
  0xb1   :  { %v234_v8 = vadd.f32 %v233_v3, %v227_v2  ;;  %v10659_v11 = vld [vmem:[#allocation8 + $0xa8] ss:$12 sps:$4 sm:$0xff]   ;;  %803 = vmatprep.subr.bf16.mxu0 %v10657_v10  ;;  %v10662_v13 = vld [vmem:[#allocation8 + $0x90] ss:$12 sps:$4 sm:$0xff]   ;;  %v10665_v15 = vld [vmem:[#allocation8 + $0x78] ss:$12 sps:$4 sm:$0xff]  }
  0xb2   :  { %v238_v9 = vadd.f32 %v237_v7, %v230_v6  ;;  %v10660_v12 = vld [vmem:[#allocation8 + $0x94] ss:$12 sps:$4 sm:$0xff]   ;;  %804 = vmatpush1.bf16.msra.mxu0 %v10659_v11  ;;  %v10681_v16 = vld [vmem:[#allocation8 + $0x22c] ss:$12 sps:$4 sm:$0xff]   ;;  %v10666_v17 = vld [vmem:[#allocation8 + $0x64] ss:$12 sps:$4 sm:$0xff]  }
  0xb3   :  { %235 = vadd.xlane.f32.xlu0 %v234_v8  ;;  %805 = vmatprep.subr.bf16.mxu0 %v10660_v12  ;;  %v10685_v18 = vld [vmem:[#allocation8 + $0x228] ss:$12 sps:$4 sm:$0xff]   ;;  %v10668_v19 = vld [vmem:[#allocation8 + $0x60] ss:$12 sps:$4 sm:$0xff]   ;;  %v10674_v23 = vld [vmem:[#allocation8 + $0x30] ss:$12 sps:$4 sm:$0xff]  }
  0xb4   :  { %846 = vmatprep.subr.bf16.mxu1 %v10681_v16  ;;  %v10669_v20 = vld [vmem:[#allocation8 + $0x4c] ss:$12 sps:$4 sm:$0xff]   ;;  %v10671_v21 = vld [vmem:[#allocation8 + $0x48] ss:$12 sps:$4 sm:$0xff]   ;;  %v10678_v26 = vld [vmem:[#allocation8 + $0x4] ss:$12 sps:$4 sm:$0xff]  }
  0xb5   :  { %847 = vmatpush1.bf16.msra.mxu1 %v10685_v18  ;;  %v10672_v22 = vld [vmem:[#allocation8 + $0x34] ss:$12 sps:$4 sm:$0xff]   ;;  %v10675_v24 = vld [vmem:[#allocation8 + $0x1c] ss:$12 sps:$4 sm:$0xff]   ;;  %v10677_v25 = vld [vmem:[#allocation8 + $0x18] ss:$12 sps:$4 sm:$0xff]  }
  0xb6   :  { %806 = vmatpush1.bf16.msra.mxu0 %v10662_v13  ;;  %v10680_v27 = vld [vmem:[#allocation8] ss:$12 sps:$4 sm:$0xff]   ;;  %v10686_v29 = vld [vmem:[#allocation8 + $0x168] ss:$12 sps:$4 sm:$0xff]   ;;  %v10691_v52 = vld [vmem:[#allocation8 + $0x210] ss:$12 sps:$4 sm:$0xff]  }
  0xb7   :  { %239 = vadd.xlane.f32.xlu0 %v238_v9  ;;  %807 = vmatprep.subr.bf16.mxu0 %v10663_v14  ;;  %v10683_v28 = vld [vmem:[#allocation8 + $0x16c] ss:$12 sps:$4 sm:$0xff]   ;;  %v10687_v50 = vld [vmem:[#allocation8 + $0x214] ss:$12 sps:$4 sm:$0xff]   ;;  %v10692_v53 = vld [vmem:[#allocation8 + $0x150] ss:$12 sps:$4 sm:$0xff]  }
  0xb8   :  { %v10689_v51 = vld [vmem:[#allocation8 + $0x154] ss:$12 sps:$4 sm:$0xff]   ;;  %848 = vmatprep.subr.bf16.mxu1 %v10687_v50  ;;  %v10693_v54 = vld [vmem:[#allocation8 + $0x1fc] ss:$12 sps:$4 sm:$0xff]   ;;  %v10697_v56 = vld [vmem:[#allocation8 + $0x1f8] ss:$12 sps:$4 sm:$0xff]  }
  0xb9   :  { %849 = vmatpush1.bf16.msra.mxu1 %v10691_v52  ;;  %v10695_v55 = vld [vmem:[#allocation8 + $0x13c] ss:$12 sps:$4 sm:$0xff]   ;;  %v10698_v57 = vld [vmem:[#allocation8 + $0x138] ss:$12 sps:$4 sm:$0xff]   ;;  %v10703_v60 = vld [vmem:[#allocation8 + $0x1e0] ss:$12 sps:$4 sm:$0xff]  }
  0xba   :  { %808 = vmatpush1.bf16.msra.mxu0 %v10665_v15  ;;  %850 = vmatprep.subr.bf16.mxu1 %v10693_v54  ;;  %v10699_v58 = vld [vmem:[#allocation8 + $0x1e4] ss:$12 sps:$4 sm:$0xff]   ;;  %v10704_v61 = vld [vmem:[#allocation8 + $0x120] ss:$12 sps:$4 sm:$0xff]   ;;  %v10719_v7 = vld [vmem:[#allocation8 + $0xdc] ss:$12 sps:$4 sm:$0xff]  }
  0xbb   :  { %809 = vmatprep.subr.bf16.mxu0 %v10666_v17  ;;  %v10701_v59 = vld [vmem:[#allocation8 + $0x124] ss:$12 sps:$4 sm:$0xff]   ;;  %v10705_v62 = vld [vmem:[#allocation8 + $0x1cc] ss:$12 sps:$4 sm:$0xff]   ;;  %v10713_v3 = vld [vmem:[#allocation8 + $0xf4] ss:$12 sps:$4 sm:$0xff]  }
  0xbc   :  { %v10707_v63 = vld [vmem:[#allocation8 + $0x10c] ss:$12 sps:$4 sm:$0xff]   ;;  %v12251_v9 = vmov 0   ;;  %v10723_v11 = vld [vmem:[#allocation8 + $0x184] ss:$12 sps:$4 sm:$0xff]   ;;  %v12252_v16 = vmov 0.0  }
  0xbd   :  { %851 = vmatpush1.bf16.msra.mxu1 %v10697_v56  ;;  %v10721_v8 = vld [vmem:[#allocation8 + $0x198] ss:$12 sps:$4 sm:$0xff]   ;;  %878 = vmatprep.mubr.bf16.mxu1 %v12251_v9  ;;  %v10727_v13 = vld [vmem:[#allocation8 + $0x180] ss:$12 sps:$4 sm:$0xff]   ;;  %v10729_v15 = vld [vmem:[#allocation8 + $0x170] ss:$12 sps:$4 sm:$0xff]  }
  0xbe   :  { %810 = vmatpush1.bf16.msra.mxu0 %v10668_v19  ;;  %852 = vmatprep.subr.bf16.mxu1 %v10699_v58  ;;  %v10722_v10 = vld [vmem:[#allocation8 + $0xd8] ss:$12 sps:$4 sm:$0xff]   ;;  %v10728_v14 = vld [vmem:[#allocation8 + $0xc0] ss:$12 sps:$4 sm:$0xff]   ;;  %s9181_s22 = sshll.u32 %s12256_s13, 4  ;;  %s9182_s22 = int_to_ptr.vmem [resolvable:$true] %s9181_s22 }
  0xbf   :  { %811 = vmatprep.subr.bf16.mxu0 %v10669_v20  ;;  %v10725_v12 = vld [vmem:[#allocation8 + $0xc4] ss:$12 sps:$4 sm:$0xff]   ;;  %s12193_s23 = scalar_lea.vmem %s9182_s22, 768  ;;  %p12198_p1 = scmp.lt.s32.totalorder %s9182_s22, %s9182_s22 }
  0xc0   :  { %p12194_p0 = scmp.ne.s32.totalorder %s9182_s22, %s12193_s23  ;;  %p12199_p2 = scmp.lt.s32.totalorder %s12193_s23, %s12193_s23 }
  0xc1   :  { %853 = vmatpush1.bf16.msra.mxu1 %v10703_v60 }
  0xc2   :  { %812 = vmatpush1.bf16.msra.mxu0 %v10671_v21  ;;  %854 = vmatprep.subr.bf16.mxu1 %v10705_v62  ;;  %v10733_v62 = vld [vmem:[#allocation8 + $0x98] ss:$12 sps:$4 sm:$0xff]   ;;  %p12200_p3 = por %p12199_p2, %p12198_p1 }
  0xc3   :  { %813 = vmatprep.subr.bf16.mxu0 %v10672_v22 }
  0xc4   :  { %p12201_p4 = pnand %p12200_p3, %p12194_p0 }
  0xc6   :  { %814 = vmatpush1.bf16.msra.mxu0 %v10674_v23  ;;  %v277_v23 = vlaneseq }
  0xc7   :  { %815 = vmatprep.subr.bf16.mxu0 %v10675_v24 }
  0xc8   :  { %v12419_v24 = vshrl.u32 %v277_v23, 7 }
  0xca   :  { %816 = vmatpush1.bf16.msra.mxu0 %v10677_v25  ;;  %v12422_v25 = vsub.s32 1, %v12419_v24 }
  0xcb   :  { %817 = vmatprep.subr.bf16.mxu0 %v10678_v26  ;;  %v12425_v26 = vsub.s32 2, %v12419_v24 }
  0xce   :  { %818 = vmatpush1.bf16.msra.mxu0 %v10680_v27  ;;  %v231_v27 = vld [vmem:[#allocation5] sm:$0x7] }
  0xcf   :  { %819 = vmatprep.subr.bf16.mxu0 %v10683_v28  ;;  %v12428_v28 = vsub.s32 0, %v12419_v24 }
  0xd2   :  { %820 = vmatpush2.bf16.msra.mxu0 %v10686_v29 }
  0xd3   :  { %821 = vmatprep.subr.bf16.mxu0 %v10689_v51 }
  0xd6   :  { %822 = vmatpush2.bf16.msra.mxu0 %v10692_v53 }
  0xd7   :  { %823 = vmatprep.subr.bf16.mxu0 %v10695_v55 }
  0xda   :  { %824 = vmatpush2.bf16.msra.mxu0 %v10698_v57  ;;  %v10730_v57 = vld [vmem:[#allocation8 + $0xb0] ss:$12 sps:$4 sm:$0xff]  }
  0xdb   :  { %825 = vmatprep.subr.bf16.mxu0 %v10701_v59 }
  0xde   :  { %826 = vmatpush2.bf16.msra.mxu0 %v10704_v61 }
  0xdf   :  { %827 = vmatprep.subr.bf16.mxu0 %v10707_v63  ;;  %v10734_v63 = vld [vmem:[#allocation8 + $0x218] ss:$12 sps:$4 sm:$0xff]  }
 0x13c   :  { %v236_v30 = vpop.xlane.xlu0 %235 }
 0x13d   :  { %v242_v31 = vmul.f32 0.0026041667, %v236_v30  ;;  %v232_v30 = vld [vmem:[#allocation7] sm:$0x7] }
 0x13e   :  { %v302_v50 = vrot.slane %v232_v30, %v12428_v28 }
 0x13f   :  { %v12392_v32 = vsub.f32 %v225_v0, %v242_v31  ;;  %v12394_v33 = vsub.f32 %v226_v1, %v242_v31  ;;  %v12396_v34 = vsub.f32 %v227_v2, %v242_v31  ;;  %v10709_v0 = vld [vmem:[#allocation8 + $0x1c8] ss:$12 sps:$4 sm:$0xff]  }
 0x140   :  { %v240_v35 = vpop.xlane.xlu0 %239  ;;  %v10710_v1 = vld [vmem:[#allocation8 + $0x108] ss:$12 sps:$4 sm:$0xff]   ;;  %855 = vmatpush1.bf16.msra.mxu1 %v10709_v0  ;;  %v10735_v0 = vld [vmem:[#allocation8 + $0x140] ss:$12 sps:$4 sm:$0xff]  }
 0x141   :  { %v243_v36 = vmul.f32 0.0026041667, %v240_v35  ;;  %v250_v37 = vmul.f32 %v12392_v32, %v12392_v32  ;;  %v251_v38 = vmul.f32 %v12394_v33, %v12394_v33  ;;  %v252_v39 = vmul.f32 %v12396_v34, %v12396_v34  ;;  %v10711_v2 = vld [vmem:[#allocation8 + $0x1b4] ss:$12 sps:$4 sm:$0xff]   ;;  %828 = vmatpush2.bf16.msra.mxu0 %v10710_v1 }
 0x142   :  { %856 = vmatprep.subr.bf16.mxu1 %v10711_v2  ;;  %829 = vmatprep.subr.bf16.mxu0 %v10713_v3  ;;  %v284_v35 = vrot.slane %v231_v27, %v12422_v25  ;;  %v10736_v1 = vld [vmem:[#allocation8 + $0x80] ss:$12 sps:$4 sm:$0xff]   ;;  %v10738_v3 = vld [vmem:[#allocation8 + $0x128] ss:$12 sps:$4 sm:$0xff]  }
 0x143   :  { %v12404_v40 = vsub.f32 %v228_v4, %v243_v36  ;;  %v12406_v41 = vsub.f32 %v229_v5, %v243_v36  ;;  %v12408_v42 = vsub.f32 %v230_v6, %v243_v36  ;;  %v256_v43 = vadd.f32 %v251_v38, %v250_v37  ;;  %v10715_v4 = vld [vmem:[#allocation8 + $0x1b0] ss:$12 sps:$4 sm:$0xff]   ;;  %v10737_v2 = vld [vmem:[#allocation8 + $0x200] ss:$12 sps:$4 sm:$0xff]  }
 0x144   :  { %v10716_v5 = vld [vmem:[#allocation8 + $0xf0] ss:$12 sps:$4 sm:$0xff]   ;;  %857 = vmatpush1.bf16.msra.mxu1 %v10715_v4  ;;  %v288_v37 = vrot.slane %v231_v27, %v12425_v26  ;;  %v10739_v4 = vld [vmem:[#allocation8 + $0x68] ss:$12 sps:$4 sm:$0xff]  }
 0x145   :  { %v257_v44 = vadd.f32 %v256_v43, %v252_v39  ;;  %v253_v45 = vmul.f32 %v12404_v40, %v12404_v40  ;;  %v254_v46 = vmul.f32 %v12406_v41, %v12406_v41  ;;  %v255_v47 = vmul.f32 %v12408_v42, %v12408_v42  ;;  %v10717_v6 = vld [vmem:[#allocation8 + $0x19c] ss:$12 sps:$4 sm:$0xff]   ;;  %830 = vmatpush2.bf16.msra.mxu0 %v10716_v5 }
 0x146   :  { %858 = vmatprep.subr.bf16.mxu1 %v10717_v6  ;;  %831 = vmatprep.subr.bf16.mxu0 %v10719_v7  ;;  %v280_v39 = vrot.slane %v231_v27, %v12428_v28  ;;  %v10740_v5 = vld [vmem:[#allocation8 + $0x1e8] ss:$12 sps:$4 sm:$0xff]   ;;  %v10741_v6 = vld [vmem:[#allocation8 + $0x110] ss:$12 sps:$4 sm:$0xff]  }
 0x147   :  { %258 = vadd.xlane.f32.xlu1 %v257_v44  ;;  %v260_v48 = vadd.f32 %v254_v46, %v253_v45  ;;  %v306_v44 = vrot.slane %v232_v30, %v12422_v25  ;;  %v310_v45 = vrot.slane %v232_v30, %v12425_v26  ;;  %v10742_v7 = vld [vmem:[#allocation8 + $0x50] ss:$12 sps:$4 sm:$0xff]   ;;  %v10756_v27 = vld [vmem:[#allocation10 + $0x228] ss:$12 sps:$4 sm:$0xff]  }
 0x148   :  { %859 = vmatpush1.bf16.msra.mxu1 %v10721_v8  ;;  %v10743_v8 = vld [vmem:[#allocation8 + $0x1d0] ss:$12 sps:$4 sm:$0xff]   ;;  %v10764_v30 = vld [vmem:[#allocation10 + $0x214] ss:$12 sps:$4 sm:$0xff]  }
 0x149   :  { %v261_v49 = vadd.f32 %v260_v48, %v255_v47  ;;  %832 = vmatpush2.bf16.msra.mxu0 %v10722_v10  ;;  %860 = vmatprep.subr.bf16.mxu1 %v10723_v11  ;;  %v10744_v10 = vld [vmem:[#allocation8 + $0xf8] ss:$12 sps:$4 sm:$0xff]  }
 0x14a   :  { %833 = vmatprep.subr.bf16.mxu0 %v10725_v12  ;;  %v10745_v11 = vld [vmem:[#allocation8 + $0x38] ss:$12 sps:$4 sm:$0xff]  }
 0x14b   :  { %262 = vadd.xlane.f32.xlu1 %v261_v49  ;;  %v10746_v12 = vld [vmem:[#allocation8 + $0x1b8] ss:$12 sps:$4 sm:$0xff]  }
 0x14c   :  { %861 = vmatpush1.bf16.msra.mxu1 %v10727_v13  ;;  %v10747_v13 = vld [vmem:[#allocation8 + $0xe0] ss:$12 sps:$4 sm:$0xff]  }
 0x14d   :  { %834 = vmatpush2.bf16.msra.mxu0 %v10728_v14  ;;  %10088 = vmatprep.subr.bf16.mxu1 %v10729_v15  ;;  %v10748_v14 = vld [vmem:[#allocation8 + $0x20] ss:$12 sps:$4 sm:$0xff]  }
 0x14e   :  { %10392 = vmatprep.subr.bf16.mxu0 %v12252_v16  ;;  %v10749_v15 = vld [vmem:[#allocation8 + $0x1a0] ss:$12 sps:$4 sm:$0xff]  }
 0x1d0   :  { %v259_v17 = vpop.xlane.xlu1 %258 }
 0x1d1   :  { %v264_v18 = vmul.f32 0.0026041667, %v259_v17  ;;  %v10750_v17 = vld [vmem:[#allocation8 + $0xc8] ss:$12 sps:$4 sm:$0xff]  }
 0x1d3   :  { %v266_v19 = vadd.f32 1e-05, %v264_v18  ;;  %v10751_v18 = vld [vmem:[#allocation8 + $0x8] ss:$12 sps:$4 sm:$0xff]  }
 0x1d4   :  { %v263_v20 = vpop.xlane.xlu1 %262 }
 0x1d5   :  { %11857 = vrsqrt.f32 %v266_v19  ;;  %v265_v21 = vmul.f32 0.0026041667, %v263_v20  ;;  %v10752_v19 = vld [vmem:[#allocation8 + $0x188] ss:$12 sps:$4 sm:$0xff]   ;;  %v10755_v20 = vld [vmem:[#allocation10 + $0xac] ss:$12 sps:$4 sm:$0xff]  }
 0x1d7   :  { %v267_v22 = vadd.f32 1e-05, %v265_v21  ;;  %v10753_v21 = vld [vmem:[#allocation10 + $0xa8] ss:$12 sps:$4 sm:$0xff]  }
 0x1d9   :  { %11859 = vrsqrt.f32 %v267_v22  ;;  %v10758_v22 = vld [vmem:[#allocation10 + $0x22c] ss:$12 sps:$4 sm:$0xff]  }
 0x1e2   :  { %v11858_v29 = vpop.eup %11857 }
 0x1e3   :  { %v271_v31 = vmul.f32 %v11858_v29, %v12394_v33  ;;  %v272_v36 = vmul.f32 %v11858_v29, %v12396_v34  ;;  %v270_v38 = vmul.f32 %v11858_v29, %v12392_v32  ;;  %v10761_v29 = vld [vmem:[#allocation10 + $0x94] ss:$12 sps:$4 sm:$0xff]  }
 0x1e5   :  { %v293_v47 = vmul.f32 %v284_v35, %v271_v31  ;;  %v294_v48 = vmul.f32 %v288_v37, %v272_v36  ;;  %v292_v34 = vmul.f32 %v280_v39, %v270_v38  ;;  %v10759_v31 = vld [vmem:[#allocation10 + $0x90] ss:$12 sps:$4 sm:$0xff]  }
 0x1e6   :  { %v11860_v43 = vpop.eup %11859  ;;  %v10767_v36 = vld [vmem:[#allocation10 + $0x7c] ss:$12 sps:$4 sm:$0xff]  }
 0x1e7   :  { %v274_v46 = vmul.f32 %v11860_v43, %v12406_v41  ;;  %v275_v33 = vmul.f32 %v11860_v43, %v12408_v42  ;;  %v273_v49 = vmul.f32 %v11860_v43, %v12404_v40  ;;  %v315_v53 = vadd.f32 %v306_v44, %v293_v47  ;;  %v10731_v41 = vld [vmem:[#allocation8 + $0x230] ss:$12 sps:$4 sm:$0xff]   ;;  %v10732_v40 = vld [vmem:[#allocation8 + $0x158] ss:$12 sps:$4 sm:$0xff]  }
 0x1e8   :  { %v316_v55 = vadd.f32 %v310_v45, %v294_v48  ;;  %v314_v58 = vadd.f32 %v302_v50, %v292_v34  ;;  %v10770_v38 = vld [vmem:[#allocation10 + $0x1fc] ss:$12 sps:$4 sm:$0xff]   ;;  %v10773_v43 = vld [vmem:[#allocation10 + $0x64] ss:$12 sps:$4 sm:$0xff]   ;;  %v10779_v47 = vld [vmem:[#allocation10 + $0x4c] ss:$12 sps:$4 sm:$0xff]  }
 0x1e9   :  { %v296_v51 = vmul.f32 %v284_v35, %v274_v46  ;;  %v297_v32 = vmul.f32 %v288_v37, %v275_v33  ;;  %v295_v52 = vmul.f32 %v280_v39, %v273_v49  ;;  %v10762_v35 = vld [vmem:[#allocation10 + $0x210] ss:$12 sps:$4 sm:$0xff]   ;;  %v10765_v37 = vld [vmem:[#allocation10 + $0x78] ss:$12 sps:$4 sm:$0xff]   ;;  %v10774_v46 = vld [vmem:[#allocation10 + $0x1e0] ss:$12 sps:$4 sm:$0xff]  }
 0x1ea   :  { %v10768_v39 = vld [vmem:[#allocation10 + $0x1f8] ss:$12 sps:$4 sm:$0xff]   ;;  %v10777_v48 = vld [vmem:[#allocation10 + $0x48] ss:$12 sps:$4 sm:$0xff]  }
 0x1eb   :  { %v318_v54 = vadd.f32 %v306_v44, %v296_v51  ;;  %v319_v56 = vadd.f32 %v310_v45, %v297_v32  ;;  %v317_v59 = vadd.f32 %v302_v50, %v295_v52  ;;  %v10776_v44 = vld [vmem:[#allocation10 + $0x1e4] ss:$12 sps:$4 sm:$0xff]   ;;  %v10771_v45 = vld [vmem:[#allocation10 + $0x60] ss:$12 sps:$4 sm:$0xff]   ;;  %v10780_v49 = vld [vmem:[#allocation10 + $0x1c8] ss:$12 sps:$4 sm:$0xff]  }
 0x1ec   :  { %v10782_v33 = vld [vmem:[#allocation10 + $0x1cc] ss:$12 sps:$4 sm:$0xff]   ;;  %v10785_v34 = vld [vmem:[#allocation10 + $0x34] ss:$12 sps:$4 sm:$0xff]   ;;  %v10783_v51 = vld [vmem:[#allocation10 + $0x30] ss:$12 sps:$4 sm:$0xff]  }
 0x1ed   :  { %v12442_v60 = vpack.c.bf16 %v318_v54, %v315_v53  ;;  %v12444_v42 = vpack.c.bf16 %v319_v56, %v316_v55  ;;  %v12446_v61 = vpack.c.bf16 %v317_v59, %v314_v58  ;;  %v10788_v50 = vld [vmem:[#allocation10 + $0x1b4] ss:$12 sps:$4 sm:$0xff]   ;;  %v10786_v32 = vld [vmem:[#allocation10 + $0x1b0] ss:$12 sps:$4 sm:$0xff]   ;;  %v10789_v54 = vld [vmem:[#allocation10 + $0x18] ss:$12 sps:$4 sm:$0xff]  }
 0x1ee   :  { %v10791_v52 = vld [vmem:[#allocation10 + $0x1c] ss:$12 sps:$4 sm:$0xff]   ;;  %v10792_v55 = vld [vmem:[#allocation10 + $0x198] ss:$12 sps:$4 sm:$0xff]   ;;  %v10795_v58 = vld [vmem:[#allocation10] ss:$12 sps:$4 sm:$0xff]  }
 0x1ef   :  { %835 = vmatprep.mubr.bf16.mxu0 %v12442_v60  ;;  %879 = vmatmul.mubr.bf16.vlgmr.msra.gmra.mxu1 %v12444_v42  ;;  %v10794_v53 = vld [vmem:[#allocation10 + $0x19c] ss:$12 sps:$4 sm:$0xff]   ;;  %v10797_v56 = vld [vmem:[#allocation10 + $0x4] ss:$12 sps:$4 sm:$0xff]   ;;  %v10798_v59 = vld [vmem:[#allocation10 + $0x180] ss:$12 sps:$4 sm:$0xff]  }
 0x1f0   :  { %10089 = vmatpush3.bf16.msra.mxu1 %v10730_v57  ;;  %836 = vmatmul.mubr.bf16.vlgmr.msra.gmra.mxu0 %v12446_v61  ;;  %v10800_v57 = vld [vmem:[#allocation10 + $0x184] ss:$12 sps:$4 sm:$0xff]  }
 0x1f1   :  { %921 = vmatprep.mubr.bf16.mxu1 %v12442_v60  ;;  %10393 = vmatpush3.bf16.msra.mxu0 %v10731_v41  ;;  %v10803_v41 = vld [vmem:[#allocation10 + $0x16c] ss:$12 sps:$4 sm:$0xff]  }
 0x1f2   :  { %10090 = vmatprep.subr.bf16.mxu1 %v10732_v40  ;;  %10394 = vmatprep.subr.bf16.mxu0 %v12252_v16  ;;  %v10804_v40 = vld [vmem:[#allocation10 + $0x170] ss:$12 sps:$4 sm:$0xff]  }
 0x1f3   :  { %10408 = vmatprep.mubr.msk.bf16.mxu0 %vm12253_vm0, %v12252_v16 }
 0x1f4   :  { %10091 = vmatpush3.bf16.msra.mxu1 %v10733_v62  ;;  %v10801_v62 = vld [vmem:[#allocation10 + $0x168] ss:$12 sps:$4 sm:$0xff]  }
 0x1f5   :  { %10395 = vmatpush3.bf16.msra.mxu0 %v10734_v63  ;;  %10092 = vmatprep.subr.bf16.mxu1 %v10735_v0  ;;  %v10805_v63 = vld [vmem:[#allocation10 + $0xb0] ss:$12 sps:$4 sm:$0xff]   ;;  %v10808_v0 = vld [vmem:[#allocation10 + $0x154] ss:$12 sps:$4 sm:$0xff]  }
 0x1f6   :  { %10396 = vmatprep.subr.bf16.mxu0 %v12252_v16 }
 0x1f8   :  { %10093 = vmatpush3.bf16.msra.mxu1 %v10736_v1  ;;  %v10809_v1 = vld [vmem:[#allocation10 + $0x158] ss:$12 sps:$4 sm:$0xff]  }
 0x1f9   :  { %10397 = vmatpush3.bf16.msra.mxu0 %v10737_v2  ;;  %10094 = vmatprep.subr.bf16.mxu1 %v10738_v3  ;;  %v10806_v2 = vld [vmem:[#allocation10 + $0x150] ss:$12 sps:$4 sm:$0xff]   ;;  %v10810_v3 = vld [vmem:[#allocation10 + $0x98] ss:$12 sps:$4 sm:$0xff]  }
 0x1fa   :  { %10398 = vmatprep.subr.bf16.mxu0 %v12252_v16 }
 0x1fc   :  { %10095 = vmatpush3.bf16.msra.mxu1 %v10739_v4  ;;  %v10813_v4 = vld [vmem:[#allocation10 + $0x13c] ss:$12 sps:$4 sm:$0xff]  }
 0x1fd   :  { %10399 = vmatpush3.bf16.msra.mxu0 %v10740_v5  ;;  %10096 = vmatprep.subr.bf16.mxu1 %v10741_v6  ;;  %v10814_v5 = vld [vmem:[#allocation10 + $0x140] ss:$12 sps:$4 sm:$0xff]   ;;  %v10811_v6 = vld [vmem:[#allocation10 + $0x138] ss:$12 sps:$4 sm:$0xff]  }
 0x1fe   :  { %10400 = vmatprep.subr.bf16.mxu0 %v12252_v16 }
 0x200   :  { %10097 = vmatpush3.bf16.msra.mxu1 %v10742_v7  ;;  %v10815_v7 = vld [vmem:[#allocation10 + $0x80] ss:$12 sps:$4 sm:$0xff]  }
 0x201   :  { %10401 = vmatpush3.bf16.msra.mxu0 %v10743_v8  ;;  %10098 = vmatprep.subr.bf16.mxu1 %v10744_v10  ;;  %v10818_v8 = vld [vmem:[#allocation10 + $0x124] ss:$12 sps:$4 sm:$0xff]   ;;  %v10819_v10 = vld [vmem:[#allocation10 + $0x128] ss:$12 sps:$4 sm:$0xff]  }
 0x202   :  { %10402 = vmatprep.subr.bf16.mxu0 %v12252_v16 }
 0x204   :  { %10099 = vmatpush3.bf16.msra.mxu1 %v10745_v11  ;;  %v10816_v11 = vld [vmem:[#allocation10 + $0x120] ss:$12 sps:$4 sm:$0xff]  }
 0x205   :  { %10403 = vmatpush3.bf16.msra.mxu0 %v10746_v12  ;;  %10100 = vmatprep.subr.bf16.mxu1 %v10747_v13  ;;  %v10820_v12 = vld [vmem:[#allocation10 + $0x68] ss:$12 sps:$4 sm:$0xff]   ;;  %v10823_v13 = vld [vmem:[#allocation10 + $0x10c] ss:$12 sps:$4 sm:$0xff]  }
 0x206   :  { %10404 = vmatprep.subr.bf16.mxu0 %v12252_v16 }
 0x208   :  { %10101 = vmatpush3.bf16.msra.mxu1 %v10748_v14  ;;  %v10824_v14 = vld [vmem:[#allocation10 + $0x110] ss:$12 sps:$4 sm:$0xff]  }
 0x209   :  { %10405 = vmatpush3.bf16.msra.mxu0 %v10749_v15  ;;  %10102 = vmatprep.subr.bf16.mxu1 %v10750_v17  ;;  %v10821_v15 = vld [vmem:[#allocation10 + $0x108] ss:$12 sps:$4 sm:$0xff]   ;;  %v10825_v17 = vld [vmem:[#allocation10 + $0x50] ss:$12 sps:$4 sm:$0xff]  }
 0x20a   :  { %10406 = vmatprep.subr.bf16.mxu0 %v12252_v16 }
 0x20c   :  { %10103 = vmatpush3.bf16.msra.mxu1 %v10751_v18  ;;  %v10828_v18 = vld [vmem:[#allocation10 + $0xf4] ss:$12 sps:$4 sm:$0xff]  }
 0x20d   :  { %10407 = vmatpush3.bf16.msra.mxu0 %v10752_v19  ;;  %1451 = vmatprep.subr.bf16.mxu1 %v10755_v20  ;;  %v10829_v19 = vld [vmem:[#allocation10 + $0xf8] ss:$12 sps:$4 sm:$0xff]   ;;  %v10826_v20 = vld [vmem:[#allocation10 + $0xf0] ss:$12 sps:$4 sm:$0xff]  }
 0x20e   :  { %1494 = vmatprep.subr.bf16.mxu0 %v10758_v22  ;;  %v10833_v22 = vld [vmem:[#allocation10 + $0xdc] ss:$12 sps:$4 sm:$0xff]  }
 0x20f   :  { %922 = vmatmul.mubr.bf16.vlgmr.msra.gmra.mxu1 %v12446_v61 }
 0x210   :  { %10409 = vmatmul.mubr.bf16.vlgmr.msra.gmra.mxu0 %v12444_v42  ;;  %1452 = vmatpush1.bf16.msra.mxu1 %v10753_v21  ;;  %v10830_v21 = vld [vmem:[#allocation10 + $0x38] ss:$12 sps:$4 sm:$0xff]  }
 0x211   :  { %1483 = vmatprep.mubr.bf16.mxu1 %v12442_v60  ;;  %1495 = vmatpush1.bf16.msra.mxu0 %v10756_v27  ;;  %v10834_v27 = vld [vmem:[#allocation10 + $0xe0] ss:$12 sps:$4 sm:$0xff]  }
 0x212   :  { %1453 = vmatprep.subr.bf16.mxu1 %v10761_v29  ;;  %1496 = vmatprep.subr.bf16.mxu0 %v10764_v30  ;;  %v10831_v29 = vld [vmem:[#allocation10 + $0xd8] ss:$12 sps:$4 sm:$0xff]   ;;  %v10835_v30 = vld [vmem:[#allocation10 + $0x20] ss:$12 sps:$4 sm:$0xff]  }
 0x213   :  { %1526 = vmatprep.mubr.bf16.mxu0 %v12251_v9 }
 0x214   :  { %1454 = vmatpush1.bf16.msra.mxu1 %v10759_v31  ;;  %v10838_v31 = vld [vmem:[#allocation10 + $0xc4] ss:$12 sps:$4 sm:$0xff]  }
 0x215   :  { %1497 = vmatpush1.bf16.msra.mxu0 %v10762_v35  ;;  %1455 = vmatprep.subr.bf16.mxu1 %v10767_v36  ;;  %v10839_v35 = vld [vmem:[#allocation10 + $0xc8] ss:$12 sps:$4 sm:$0xff]   ;;  %v10836_v36 = vld [vmem:[#allocation10 + $0xc0] ss:$12 sps:$4 sm:$0xff]  }
 0x216   :  { %1498 = vmatprep.subr.bf16.mxu0 %v10770_v38  ;;  %v10844_v38 = vld [vmem:[#allocation11 + $0xac] ss:$12 sps:$4 sm:$0xff]  }
 0x218   :  { %1456 = vmatpush1.bf16.msra.mxu1 %v10765_v37  ;;  %v10840_v37 = vld [vmem:[#allocation10 + $0x8] ss:$12 sps:$4 sm:$0xff]  }
 0x219   :  { %1499 = vmatpush1.bf16.msra.mxu0 %v10768_v39  ;;  %1457 = vmatprep.subr.bf16.mxu1 %v10773_v43  ;;  %v10841_v39 = vld [vmem:[#allocation10 + $0x230] ss:$12 sps:$4 sm:$0xff]   ;;  %v10842_v43 = vld [vmem:[#allocation11 + $0xa8] ss:$12 sps:$4 sm:$0xff]  }
 0x21a   :  { %1500 = vmatprep.subr.bf16.mxu0 %v10776_v44  ;;  %v10848_v44 = vld [vmem:[#allocation11 + $0x94] ss:$12 sps:$4 sm:$0xff]  }
 0x21c   :  { %1458 = vmatpush1.bf16.msra.mxu1 %v10771_v45  ;;  %v10845_v45 = vld [vmem:[#allocation10 + $0x218] ss:$12 sps:$4 sm:$0xff]  }
 0x21d   :  { %1501 = vmatpush1.bf16.msra.mxu0 %v10774_v46  ;;  %1459 = vmatprep.subr.bf16.mxu1 %v10779_v47  ;;  %v10846_v46 = vld [vmem:[#allocation11 + $0x90] ss:$12 sps:$4 sm:$0xff]  }
 0x21e   :  { %1502 = vmatprep.subr.bf16.mxu0 %v10782_v33  ;;  %v10852_v47 = vld [vmem:[#allocation11 + $0x7c] ss:$12 sps:$4 sm:$0xff]   ;;  %v10849_v33 = vld [vmem:[#allocation10 + $0x200] ss:$12 sps:$4 sm:$0xff]  }
 0x220   :  { %1460 = vmatpush1.bf16.msra.mxu1 %v10777_v48  ;;  %v10850_v48 = vld [vmem:[#allocation11 + $0x78] ss:$12 sps:$4 sm:$0xff]  }
 0x221   :  { %1503 = vmatpush1.bf16.msra.mxu0 %v10780_v49  ;;  %1461 = vmatprep.subr.bf16.mxu1 %v10785_v34  ;;  %v10856_v49 = vld [vmem:[#allocation11 + $0x64] ss:$12 sps:$4 sm:$0xff]   ;;  %v10853_v34 = vld [vmem:[#allocation10 + $0x1e8] ss:$12 sps:$4 sm:$0xff]  }
 0x222   :  { %1504 = vmatprep.subr.bf16.mxu0 %v10788_v50  ;;  %v10854_v50 = vld [vmem:[#allocation11 + $0x60] ss:$12 sps:$4 sm:$0xff]  }
 0x224   :  { %1462 = vmatpush1.bf16.msra.mxu1 %v10783_v51  ;;  %v10860_v51 = vld [vmem:[#allocation11 + $0x4c] ss:$12 sps:$4 sm:$0xff]  }
 0x225   :  { %1505 = vmatpush1.bf16.msra.mxu0 %v10786_v32  ;;  %1463 = vmatprep.subr.bf16.mxu1 %v10791_v52  ;;  %v10857_v32 = vld [vmem:[#allocation10 + $0x1d0] ss:$12 sps:$4 sm:$0xff]   ;;  %v10858_v52 = vld [vmem:[#allocation11 + $0x48] ss:$12 sps:$4 sm:$0xff]  }
 0x226   :  { %1506 = vmatprep.subr.bf16.mxu0 %v10794_v53  ;;  %v10864_v53 = vld [vmem:[#allocation11 + $0x34] ss:$12 sps:$4 sm:$0xff]  }
 0x228   :  { %1464 = vmatpush1.bf16.msra.mxu1 %v10789_v54  ;;  %v10861_v54 = vld [vmem:[#allocation10 + $0x1b8] ss:$12 sps:$4 sm:$0xff]  }
 0x229   :  { %1507 = vmatpush1.bf16.msra.mxu0 %v10792_v55  ;;  %1465 = vmatprep.subr.bf16.mxu1 %v10797_v56  ;;  %v10862_v55 = vld [vmem:[#allocation11 + $0x30] ss:$12 sps:$4 sm:$0xff]  }
 0x22a   :  { %1508 = vmatprep.subr.bf16.mxu0 %v10800_v57  ;;  %v10868_v56 = vld [vmem:[#allocation11 + $0x1c] ss:$12 sps:$4 sm:$0xff]   ;;  %v10865_v57 = vld [vmem:[#allocation10 + $0x1a0] ss:$12 sps:$4 sm:$0xff]  }
 0x22c   :  { %1466 = vmatpush1.bf16.msra.mxu1 %v10795_v58  ;;  %v10866_v58 = vld [vmem:[#allocation11 + $0x18] ss:$12 sps:$4 sm:$0xff]  }
 0x22d   :  { %1509 = vmatpush1.bf16.msra.mxu0 %v10798_v59  ;;  %1467 = vmatprep.subr.bf16.mxu1 %v10803_v41  ;;  %v10872_v59 = vld [vmem:[#allocation11 + $0x4] ss:$12 sps:$4 sm:$0xff]   ;;  %v10869_v41 = vld [vmem:[#allocation10 + $0x188] ss:$12 sps:$4 sm:$0xff]  }
 0x22e   :  { %10119 = vmatprep.subr.bf16.mxu0 %v10804_v40  ;;  %v10870_v40 = vld [vmem:[#allocation11] ss:$12 sps:$4 sm:$0xff]  }
 0x230   :  { %1468 = vmatpush2.bf16.msra.mxu1 %v10801_v62  ;;  %1527 = vmatmul.mubr.bf16.vlgmr.msra.gmra.mxu0 %v12444_v42  ;;  %v10875_v62 = vld [vmem:[#allocation11 + $0x22c] ss:$12 sps:$4 sm:$0xff]  }
 0x231   :  { %10120 = vmatpush3.bf16.msra.mxu0 %v10805_v63  ;;  %1569 = vmatprep.mubr.bf16.mxu0 %v12442_v60  ;;  %v10878_v63 = vld [vmem:[#allocation11 + $0x16c] ss:$12 sps:$4 sm:$0xff]  }
 0x232   :  { %1469 = vmatprep.subr.bf16.mxu1 %v10808_v0  ;;  %10121 = vmatprep.subr.bf16.mxu0 %v10809_v1  ;;  %v10873_v0 = vld [vmem:[#allocation11 + $0x228] ss:$12 sps:$4 sm:$0xff]  }
 0x233   :  { %v10876_v1 = vld [vmem:[#allocation11 + $0x168] ss:$12 sps:$4 sm:$0xff]  }
 0x234   :  { %1470 = vmatpush2.bf16.msra.mxu1 %v10806_v2  ;;  %v10881_v2 = vld [vmem:[#allocation11 + $0x214] ss:$12 sps:$4 sm:$0xff]  }
 0x235   :  { %10122 = vmatpush3.bf16.msra.mxu0 %v10810_v3  ;;  %1471 = vmatprep.subr.bf16.mxu1 %v10813_v4  ;;  %v10884_v3 = vld [vmem:[#allocation11 + $0x154] ss:$12 sps:$4 sm:$0xff]   ;;  %v10879_v4 = vld [vmem:[#allocation11 + $0x210] ss:$12 sps:$4 sm:$0xff]  }
 0x236   :  { %10123 = vmatprep.subr.bf16.mxu0 %v10814_v5  ;;  %v10882_v5 = vld [vmem:[#allocation11 + $0x150] ss:$12 sps:$4 sm:$0xff]  }
 0x238   :  { %1472 = vmatpush2.bf16.msra.mxu1 %v10811_v6  ;;  %v10887_v6 = vld [vmem:[#allocation11 + $0x1fc] ss:$12 sps:$4 sm:$0xff]  }
 0x239   :  { %10124 = vmatpush3.bf16.msra.mxu0 %v10815_v7  ;;  %1473 = vmatprep.subr.bf16.mxu1 %v10818_v8  ;;  %v10890_v7 = vld [vmem:[#allocation11 + $0x13c] ss:$12 sps:$4 sm:$0xff]   ;;  %v10885_v8 = vld [vmem:[#allocation11 + $0x1f8] ss:$12 sps:$4 sm:$0xff]  }
 0x23a   :  { %10125 = vmatprep.subr.bf16.mxu0 %v10819_v10  ;;  %v10888_v10 = vld [vmem:[#allocation11 + $0x138] ss:$12 sps:$4 sm:$0xff]  }
 0x23c   :  { %1474 = vmatpush2.bf16.msra.mxu1 %v10816_v11  ;;  %v10893_v11 = vld [vmem:[#allocation11 + $0x1e4] ss:$12 sps:$4 sm:$0xff]  }
 0x23d   :  { %10126 = vmatpush3.bf16.msra.mxu0 %v10820_v12  ;;  %1475 = vmatprep.subr.bf16.mxu1 %v10823_v13  ;;  %v10896_v12 = vld [vmem:[#allocation11 + $0x124] ss:$12 sps:$4 sm:$0xff]   ;;  %v10891_v13 = vld [vmem:[#allocation11 + $0x1e0] ss:$12 sps:$4 sm:$0xff]  }
 0x23e   :  { %10127 = vmatprep.subr.bf16.mxu0 %v10824_v14  ;;  %v10894_v14 = vld [vmem:[#allocation11 + $0x120] ss:$12 sps:$4 sm:$0xff]  }
 0x240   :  { %1476 = vmatpush2.bf16.msra.mxu1 %v10821_v15  ;;  %v10899_v15 = vld [vmem:[#allocation11 + $0x1cc] ss:$12 sps:$4 sm:$0xff]  }
 0x241   :  { %10128 = vmatpush3.bf16.msra.mxu0 %v10825_v17  ;;  %1477 = vmatprep.subr.bf16.mxu1 %v10828_v18  ;;  %v10902_v17 = vld [vmem:[#allocation11 + $0x10c] ss:$12 sps:$4 sm:$0xff]   ;;  %v10897_v18 = vld [vmem:[#allocation11 + $0x1c8] ss:$12 sps:$4 sm:$0xff]  }
 0x242   :  { %10129 = vmatprep.subr.bf16.mxu0 %v10829_v19  ;;  %v10900_v19 = vld [vmem:[#allocation11 + $0x108] ss:$12 sps:$4 sm:$0xff]  }
 0x244   :  { %1478 = vmatpush2.bf16.msra.mxu1 %v10826_v20  ;;  %v10905_v20 = vld [vmem:[#allocation11 + $0x1b4] ss:$12 sps:$4 sm:$0xff]  }
 0x245   :  { %10130 = vmatpush3.bf16.msra.mxu0 %v10830_v21  ;;  %1479 = vmatprep.subr.bf16.mxu1 %v10833_v22  ;;  %v10908_v21 = vld [vmem:[#allocation11 + $0xf4] ss:$12 sps:$4 sm:$0xff]   ;;  %v10903_v22 = vld [vmem:[#allocation11 + $0x1b0] ss:$12 sps:$4 sm:$0xff]  }
 0x246   :  { %10131 = vmatprep.subr.bf16.mxu0 %v10834_v27  ;;  %v10906_v27 = vld [vmem:[#allocation11 + $0xf0] ss:$12 sps:$4 sm:$0xff]  }
 0x248   :  { %1480 = vmatpush2.bf16.msra.mxu1 %v10831_v29  ;;  %v10911_v29 = vld [vmem:[#allocation11 + $0x19c] ss:$12 sps:$4 sm:$0xff]  }
 0x249   :  { %10132 = vmatpush3.bf16.msra.mxu0 %v10835_v30  ;;  %1481 = vmatprep.subr.bf16.mxu1 %v10838_v31  ;;  %v10914_v30 = vld [vmem:[#allocation11 + $0xdc] ss:$12 sps:$4 sm:$0xff]   ;;  %v10909_v31 = vld [vmem:[#allocation11 + $0x198] ss:$12 sps:$4 sm:$0xff]  }
 0x24a   :  { %10133 = vmatprep.subr.bf16.mxu0 %v10839_v35  ;;  %v10912_v35 = vld [vmem:[#allocation11 + $0xd8] ss:$12 sps:$4 sm:$0xff]  }
 0x24c   :  { %1482 = vmatpush2.bf16.msra.mxu1 %v10836_v36  ;;  %v10917_v36 = vld [vmem:[#allocation11 + $0x184] ss:$12 sps:$4 sm:$0xff]  }
 0x24d   :  { %10134 = vmatpush3.bf16.msra.mxu0 %v10840_v37  ;;  %10412 = vmatprep.subr.bf16.mxu1 %v12252_v16  ;;  %v10920_v37 = vld [vmem:[#allocation11 + $0xc4] ss:$12 sps:$4 sm:$0xff]  }
 0x24e   :  { %2099 = vmatprep.subr.bf16.mxu0 %v10844_v38  ;;  %v10915_v38 = vld [vmem:[#allocation11 + $0x180] ss:$12 sps:$4 sm:$0xff]  }
 0x24f   :  { %1484 = vmatmul.mubr.bf16.vlgmr.msra.gmra.mxu1 %v12446_v61 }
 0x250   :  { %1570 = vmatmul.mubr.bf16.vlgmr.msra.gmra.mxu0 %v12446_v61  ;;  %10413 = vmatpush3.bf16.msra.mxu1 %v10841_v39  ;;  %v10918_v39 = vld [vmem:[#allocation11 + $0xc0] ss:$12 sps:$4 sm:$0xff]  }
 0x251   :  { %2100 = vmatpush1.bf16.msra.mxu0 %v10842_v43  ;;  %2131 = vmatprep.mubr.bf16.mxu0 %v12442_v60  ;;  %v10921_v43 = vld [vmem:[#allocation11 + $0x170] ss:$12 sps:$4 sm:$0xff]  }
 0x252   :  { %10414 = vmatprep.subr.bf16.mxu1 %v12252_v16  ;;  %2101 = vmatprep.subr.bf16.mxu0 %v10848_v44  ;;  %v10922_v44 = vld [vmem:[#allocation11 + $0xb0] ss:$12 sps:$4 sm:$0xff]  }
 0x253   :  { %10428 = vmatprep.mubr.msk.bf16.mxu1 %vm12253_vm0, %v12252_v16 }
 0x254   :  { %10415 = vmatpush3.bf16.msra.mxu1 %v10845_v45  ;;  %v10923_v45 = vld [vmem:[#allocation11 + $0x230] ss:$12 sps:$4 sm:$0xff]  }
 0x255   :  { %2102 = vmatpush1.bf16.msra.mxu0 %v10846_v46  ;;  %10416 = vmatprep.subr.bf16.mxu1 %v12252_v16  ;;  %v10924_v46 = vld [vmem:[#allocation11 + $0x158] ss:$12 sps:$4 sm:$0xff]  }
 0x256   :  { %2103 = vmatprep.subr.bf16.mxu0 %v10852_v47  ;;  %v10925_v47 = vld [vmem:[#allocation11 + $0x98] ss:$12 sps:$4 sm:$0xff]  }
 0x258   :  { %10417 = vmatpush3.bf16.msra.mxu1 %v10849_v33  ;;  %v10926_v33 = vld [vmem:[#allocation11 + $0x218] ss:$12 sps:$4 sm:$0xff]  }
 0x259   :  { %2104 = vmatpush1.bf16.msra.mxu0 %v10850_v48  ;;  %10418 = vmatprep.subr.bf16.mxu1 %v12252_v16  ;;  %v10927_v48 = vld [vmem:[#allocation11 + $0x140] ss:$12 sps:$4 sm:$0xff]  }
 0x25a   :  { %2105 = vmatprep.subr.bf16.mxu0 %v10856_v49  ;;  %v10928_v49 = vld [vmem:[#allocation11 + $0x80] ss:$12 sps:$4 sm:$0xff]  }
 0x25c   :  { %10419 = vmatpush3.bf16.msra.mxu1 %v10853_v34  ;;  %v10929_v34 = vld [vmem:[#allocation11 + $0x200] ss:$12 sps:$4 sm:$0xff]  }
 0x25d   :  { %2106 = vmatpush1.bf16.msra.mxu0 %v10854_v50  ;;  %10420 = vmatprep.subr.bf16.mxu1 %v12252_v16  ;;  %v10930_v50 = vld [vmem:[#allocation11 + $0x128] ss:$12 sps:$4 sm:$0xff]  }
 0x25e   :  { %2107 = vmatprep.subr.bf16.mxu0 %v10860_v51  ;;  %v10931_v51 = vld [vmem:[#allocation11 + $0x68] ss:$12 sps:$4 sm:$0xff]  }
 0x260   :  { %10421 = vmatpush3.bf16.msra.mxu1 %v10857_v32  ;;  %v10933_v32 = vld [vmem:[#allocation11 + $0x110] ss:$12 sps:$4 sm:$0xff]  }
 0x261   :  { %2108 = vmatpush1.bf16.msra.mxu0 %v10858_v52  ;;  %10422 = vmatprep.subr.bf16.mxu1 %v12252_v16  ;;  %v10934_v52 = vld [vmem:[#allocation11 + $0x50] ss:$12 sps:$4 sm:$0xff]  }
 0x262   :  { %2109 = vmatprep.subr.bf16.mxu0 %v10864_v53  ;;  %v10935_v53 = vld [vmem:[#allocation11 + $0x1d0] ss:$12 sps:$4 sm:$0xff]  }
 0x264   :  { %10423 = vmatpush3.bf16.msra.mxu1 %v10861_v54  ;;  %v10936_v54 = vld [vmem:[#allocation11 + $0xf8] ss:$12 sps:$4 sm:$0xff]  }
 0x265   :  { %2110 = vmatpush1.bf16.msra.mxu0 %v10862_v55  ;;  %10424 = vmatprep.subr.bf16.mxu1 %v12252_v16  ;;  %v10937_v55 = vld [vmem:[#allocation11 + $0x38] ss:$12 sps:$4 sm:$0xff]  }
 0x266   :  { %2111 = vmatprep.subr.bf16.mxu0 %v10868_v56  ;;  %v10938_v56 = vld [vmem:[#allocation11 + $0x1b8] ss:$12 sps:$4 sm:$0xff]  }
 0x268   :  { %10425 = vmatpush3.bf16.msra.mxu1 %v10865_v57  ;;  %v10939_v57 = vld [vmem:[#allocation11 + $0xe0] ss:$12 sps:$4 sm:$0xff]  }
 0x269   :  { %2112 = vmatpush1.bf16.msra.mxu0 %v10866_v58  ;;  %10426 = vmatprep.subr.bf16.mxu1 %v12252_v16  ;;  %v10940_v58 = vld [vmem:[#allocation11 + $0x20] ss:$12 sps:$4 sm:$0xff]  }
 0x26a   :  { %2113 = vmatprep.subr.bf16.mxu0 %v10872_v59  ;;  %v10941_v59 = vld [vmem:[#allocation11 + $0x1a0] ss:$12 sps:$4 sm:$0xff]  }
 0x26c   :  { %10427 = vmatpush3.bf16.msra.mxu1 %v10869_v41  ;;  %v10942_v41 = vld [vmem:[#allocation11 + $0xc8] ss:$12 sps:$4 sm:$0xff]  }
 0x26d   :  { %2114 = vmatpush1.bf16.msra.mxu0 %v10870_v40  ;;  %2142 = vmatprep.subr.bf16.mxu1 %v10875_v62  ;;  %v10943_v40 = vld [vmem:[#allocation11 + $0x8] ss:$12 sps:$4 sm:$0xff]  }
 0x26e   :  { %2115 = vmatprep.subr.bf16.mxu0 %v10878_v63  ;;  %v10944_v62 = vld [vmem:[#allocation11 + $0x188] ss:$12 sps:$4 sm:$0xff]  }
 0x26f   :  { %10429 = vmatmul.mubr.bf16.vlgmr.msra.gmra.mxu1 %v12444_v42 }
 0x270   :  { %2143 = vmatpush1.bf16.msra.mxu1 %v10873_v0  ;;  %2174 = vmatprep.mubr.bf16.mxu1 %v12251_v9 }
 0x271   :  { %2116 = vmatpush2.bf16.msra.mxu0 %v10876_v1  ;;  %2144 = vmatprep.subr.bf16.mxu1 %v10881_v2 }
 0x272   :  { %2117 = vmatprep.subr.bf16.mxu0 %v10884_v3 }
 0x274   :  { %2145 = vmatpush1.bf16.msra.mxu1 %v10879_v4 }
 0x275   :  { %2118 = vmatpush2.bf16.msra.mxu0 %v10882_v5  ;;  %2146 = vmatprep.subr.bf16.mxu1 %v10887_v6 }
 0x276   :  { %2119 = vmatprep.subr.bf16.mxu0 %v10890_v7 }
 0x278   :  { %2147 = vmatpush1.bf16.msra.mxu1 %v10885_v8 }
 0x279   :  { %2120 = vmatpush2.bf16.msra.mxu0 %v10888_v10  ;;  %2148 = vmatprep.subr.bf16.mxu1 %v10893_v11 }
 0x27a   :  { %2121 = vmatprep.subr.bf16.mxu0 %v10896_v12 }
 0x27c   :  { %2149 = vmatpush1.bf16.msra.mxu1 %v10891_v13 }
 0x27d   :  { %2122 = vmatpush2.bf16.msra.mxu0 %v10894_v14  ;;  %2150 = vmatprep.subr.bf16.mxu1 %v10899_v15 }
 0x27e   :  { %2123 = vmatprep.subr.bf16.mxu0 %v10902_v17 }
 0x280   :  { %2151 = vmatpush1.bf16.msra.mxu1 %v10897_v18 }
 0x281   :  { %2124 = vmatpush2.bf16.msra.mxu0 %v10900_v19  ;;  %2152 = vmatprep.subr.bf16.mxu1 %v10905_v20 }
 0x282   :  { %2125 = vmatprep.subr.bf16.mxu0 %v10908_v21 }
 0x284   :  { %2153 = vmatpush1.bf16.msra.mxu1 %v10903_v22 }
 0x285   :  { %2126 = vmatpush2.bf16.msra.mxu0 %v10906_v27  ;;  %2154 = vmatprep.subr.bf16.mxu1 %v10911_v29 }
 0x286   :  { %2127 = vmatprep.subr.bf16.mxu0 %v10914_v30 }
 0x288   :  { %2155 = vmatpush1.bf16.msra.mxu1 %v10909_v31 }
 0x289   :  { %2128 = vmatpush2.bf16.msra.mxu0 %v10912_v35  ;;  %2156 = vmatprep.subr.bf16.mxu1 %v10917_v36 }
 0x28a   :  { %2129 = vmatprep.subr.bf16.mxu0 %v10920_v37 }
 0x28c   :  { %2157 = vmatpush1.bf16.msra.mxu1 %v10915_v38 }
 0x28d   :  { %2130 = vmatpush2.bf16.msra.mxu0 %v10918_v39  ;;  %10150 = vmatprep.subr.bf16.mxu1 %v10921_v43 }
 0x28e   :  { %10432 = vmatprep.subr.bf16.mxu0 %v12252_v16 }
 0x28f   :  { %2175 = vmatmul.mubr.bf16.vlgmr.msra.gmra.mxu1 %v12444_v42 }
 0x290   :  { %2132 = vmatmul.mubr.bf16.vlgmr.msra.gmra.mxu0 %v12446_v61  ;;  %10151 = vmatpush3.bf16.msra.mxu1 %v10922_v44 }
 0x291   :  { %2217 = vmatprep.mubr.bf16.mxu1 %v12442_v60  ;;  %10433 = vmatpush3.bf16.msra.mxu0 %v10923_v45  ;;  %v10932_v60 = vld [vmem:[#allocation11 + $0x1e8] ss:$12 sps:$4 sm:$0xff]  }
 0x292   :  { %10152 = vmatprep.subr.bf16.mxu1 %v10924_v46  ;;  %10434 = vmatprep.subr.bf16.mxu0 %v12252_v16 }
 0x293   :  { %10448 = vmatprep.mubr.msk.bf16.mxu0 %vm12253_vm0, %v12252_v16 }
 0x294   :  { %10153 = vmatpush3.bf16.msra.mxu1 %v10925_v47 }
 0x295   :  { %10435 = vmatpush3.bf16.msra.mxu0 %v10926_v33  ;;  %10154 = vmatprep.subr.bf16.mxu1 %v10927_v48 }
 0x296   :  { %10436 = vmatprep.subr.bf16.mxu0 %v12252_v16 }
 0x298   :  { %10155 = vmatpush3.bf16.msra.mxu1 %v10928_v49 }
 0x299   :  { %10437 = vmatpush3.bf16.msra.mxu0 %v10929_v34  ;;  %10156 = vmatprep.subr.bf16.mxu1 %v10930_v50 }
 0x29a   :  { %10438 = vmatprep.subr.bf16.mxu0 %v12252_v16 }
 0x29c   :  { %10157 = vmatpush3.bf16.msra.mxu1 %v10931_v51 }
 0x29d   :  { %10439 = vmatpush3.bf16.msra.mxu0 %v10932_v60  ;;  %10158 = vmatprep.subr.bf16.mxu1 %v10933_v32 }
 0x29e   :  { %10440 = vmatprep.subr.bf16.mxu0 %v12252_v16 }
 0x2a0   :  { %10159 = vmatpush3.bf16.msra.mxu1 %v10934_v52 }
 0x2a1   :  { %10441 = vmatpush3.bf16.msra.mxu0 %v10935_v53  ;;  %10160 = vmatprep.subr.bf16.mxu1 %v10936_v54 }
 0x2a2   :  { %10442 = vmatprep.subr.bf16.mxu0 %v12252_v16 }
 0x2a4   :  { %10161 = vmatpush3.bf16.msra.mxu1 %v10937_v55 }
 0x2a5   :  { %10443 = vmatpush3.bf16.msra.mxu0 %v10938_v56  ;;  %10162 = vmatprep.subr.bf16.mxu1 %v10939_v57 }
 0x2a6   :  { %10444 = vmatprep.subr.bf16.mxu0 %v12252_v16 }
 0x2a8   :  { %10163 = vmatpush3.bf16.msra.mxu1 %v10940_v58 }
 0x2a9   :  { %10445 = vmatpush3.bf16.msra.mxu0 %v10941_v59  ;;  %10164 = vmatprep.subr.bf16.mxu1 %v10942_v41 }
 0x2aa   :  { %10446 = vmatprep.subr.bf16.mxu0 %v12252_v16 }
 0x2ac   :  { %10165 = vmatpush3.bf16.msra.mxu1 %v10943_v40 }
 0x2ad   :  { %10447 = vmatpush3.bf16.msra.mxu0 %v10944_v62  ;;  %10452 = vmatprep.subr.bf16.mxu1 %v12252_v16 }
 0x2ae   :  { %10500 = vmatprep.subr.bf16.mxu0 %v12252_v16 }
 0x2af   :  { %2218 = vmatmul.mubr.bf16.vlgmr.msra.gmra.mxu1 %v12446_v61  ;;  %v880_v63 = vpop.f32.mrf.mxu1 }
 0x2b0   :  { %10449 = vmatmul.mubr.bf16.vlgmr.msra.gmra.mxu0 %v12444_v42  ;;  %10454 = vmatprep.mubr.msk.bf16.mxu1 %vm12253_vm0, %v12252_v16  ;;  %v837_v0 = vpop.f32.mrf.mxu0 }
 0x2b1   :  { %10502 = vmatprep.mubr.msk.bf16.mxu0 %vm12253_vm0, %v12252_v16  ;;  %v882_v1 = vpop.f32.mrf.mxu1  ;;  %v881_v47 = vadd.f32 %v880_v63, %v837_v0 }
 0x2b2   :  { %v839_v2 = vpop.f32.mrf.mxu0 }
 0x2b3   :  { %v884_v3 = vpop.f32.mrf.mxu1  ;;  %v883_v34 = vadd.f32 %v882_v1, %v839_v2  ;;  %v12525_v51 = vpack.c.bf16 %v881_v47, %v881_v47 }
 0x2b4   :  { %v841_v4 = vpop.f32.mrf.mxu0 }
 0x2b5   :  { %v12503_v5 = vpop.f32.mrf.mxu1  ;;  %v12527_v60 = vpack.c.bf16 %v883_v34, %v883_v34  ;;  %v885_v52 = vadd.f32 %v884_v3, %v841_v4 }
 0x2b6   :  { %v12505_v6 = vpop.f32.mrf.mxu0 }
 0x2b7   :  { %v12540_v53 = vpack.c.bf16 %v885_v52, %v885_v52 }
 0x2cf   :  { %v10104_v7 = vpop.f32.mrf.mxu1 }
 0x2d0   :  { %v964_v61 = vpop.f32.mrf.mxu0 }
 0x2d1   :  { %v10105_v8 = vpop.f32.mrf.mxu1 }
 0x2d2   :  { %v10106_v42 = vadd.f32 %v10105_v8, %v10104_v7  ;;  %v10410_v10 = vpop.f32.mrf.mxu0 }
 0x2d3   :  { %v10107_v11 = vpop.f32.mrf.mxu1 }
 0x2d4   :  { %v12507_v12 = vadd.f32 %v10106_v42, %v964_v61  ;;  %v967_v13 = vpop.f32.mrf.mxu0 }
 0x2d5   :  { %v10108_v14 = vpop.f32.mrf.mxu1 }
 0x2d6   :  { %v10109_v15 = vadd.f32 %v10108_v14, %v10107_v11  ;;  %v10411_v17 = vpop.f32.mrf.mxu0 }
 0x2d8   :  { %v12509_v18 = vadd.f32 %v10109_v15, %v967_v13 }
 0x2f0   :  { %v1528_v19 = vpop.f32.mrf.mxu0 }
 0x2f2   :  { %v1530_v20 = vpop.f32.mrf.mxu0 }
 0x2f4   :  { %v1532_v21 = vpop.f32.mrf.mxu0 }
 0x2f6   :  { %v12511_v22 = vpop.f32.mrf.mxu0 }
 0x30f   :  { %v1485_v27 = vpop.f32.mrf.mxu1 }
 0x310   :  { %v1529_v29 = vadd.f32 %v1528_v19, %v1485_v27  ;;  %v10135_v30 = vpop.f32.mrf.mxu0 }
 0x311   :  { %v1487_v31 = vpop.f32.mrf.mxu1 }
 0x312   :  { %v12513_v35 = vpack.c.bf16 %v1529_v29, %v1529_v29  ;;  %v1531_v36 = vadd.f32 %v1530_v20, %v1487_v31  ;;  %v10136_v37 = vpop.f32.mrf.mxu0 }
 0x313   :  { %v10137_v38 = vadd.f32 %v10136_v37, %v10135_v30  ;;  %v1489_v39 = vpop.f32.mrf.mxu1 }
 0x314   :  { %v2284_v43 = vsel %vm2279_vm1, %v12513_v35, 0  ;;  %v12517_v44 = vpack.c.bf16 %v1531_v36, %v1531_v36  ;;  %v1533_v45 = vadd.f32 %v1532_v21, %v1489_v39  ;;  %v10138_v46 = vpop.f32.mrf.mxu0  ;;  %v12254_v39 = vmov -1e+30  }
 0x315   :  { %10453 = vmatpush3.bf16.xpose.msra.mxu1 %v2284_v43  ;;  %v12546_v54 = vpop.f32.mrf.mxu1 }
 0x316   :  { %v2726_v33 = vsel %vm2279_vm1, %v12517_v44, 0  ;;  %v10139_v48 = vpop.f32.mrf.mxu0  ;;  %10458 = vmatprep.subr.bf16.mxu1 %v12252_v16  ;;  %v12522_v50 = vpack.c.bf16 %v1533_v45, %v1533_v45 }
 0x317   :  { %v10140_v49 = vadd.f32 %v10139_v48, %v10138_v46  ;;  %10501 = vmatpush3.bf16.xpose.msra.mxu0 %v2726_v33 }
 0x318   :  { %10512 = vmatprep.subr.bf16.mxu0 %v12252_v16  ;;  %v2330_v32 = vsel %vm2279_vm1, %v12522_v50, 0 }
 0x31c   :  { %10455 = vmatmul.mubr.msk.bf16.vlgmr.msra.gmra.mxu1 %vm2279_vm1, %v12525_v51 }
 0x31d   :  { %10459 = vmatpush3.bf16.xpose.msra.mxu1 %v2330_v32  ;;  %10460 = vmatprep.mubr.msk.bf16.mxu1 %vm12253_vm0, %v12252_v16 }
 0x31e   :  { %10503 = vmatmul.mubr.msk.bf16.vlgmr.msra.gmra.mxu0 %vm2279_vm1, %v12527_v60  ;;  %10464 = vmatprep.subr.bf16.mxu1 %v12252_v16 }
 0x31f   :  { %10514 = vmatprep.mubr.msk.bf16.mxu0 %vm12253_vm0, %v12252_v16 }
 0x324   :  { %10461 = vmatmul.mubr.msk.bf16.vlgmr.msra.gmra.mxu1 %vm2279_vm1, %v12540_v53 }
 0x325   :  { %10466 = vmatprep.mubr.msk.bf16.mxu1 %vm12253_vm0, %v12252_v16 }
 0x32f   :  { %v1612_v55 = vpop.f32.mrf.mxu1 }
 0x330   :  { %v12548_v56 = vadd.f32 %v10137_v38, %v1612_v55  ;;  %v2270_v38 = vand.u32 127, %v277_v23 }
 0x331   :  { %v10430_v57 = vpop.f32.mrf.mxu1 }
 0x332   :  { %vm2271_vm3 = vcmp.ge.s32.totalorder %v12419_v24, %v2270_v38 }
 0x333   :  { %v1615_v58 = vpop.f32.mrf.mxu1  ;;  %v12574_v43 = vsel %vm2271_vm3, 0.0, %v12254_v39 }
 0x334   :  { %v12550_v59 = vadd.f32 %v10140_v49, %v1615_v58 }
 0x335   :  { %v10431_v41 = vpop.f32.mrf.mxu1 }
 0x34f   :  { %v2176_v40 = vpop.f32.mrf.mxu1 }
 0x350   :  { %v2133_v62 = vpop.f32.mrf.mxu0 }
 0x351   :  { %v2177_v63 = vadd.f32 %v2176_v40, %v2133_v62  ;;  %v2178_v0 = vpop.f32.mrf.mxu1 }
 0x352   :  { %v2135_v1 = vpop.f32.mrf.mxu0 }
 0x353   :  { %v12552_v2 = vpack.c.bf16 %v2177_v63, %v2177_v63  ;;  %v2179_v3 = vadd.f32 %v2178_v0, %v2135_v1  ;;  %v2180_v4 = vpop.f32.mrf.mxu1 }
 0x354   :  { %v2137_v7 = vpop.f32.mrf.mxu0 }
 0x355   :  { %v2402_v61 = vsel %vm2400_vm2, %v12552_v2, 0  ;;  %v12556_v8 = vpack.c.bf16 %v2179_v3, %v2179_v3  ;;  %v12558_v42 = vadd.f32 %v2180_v4, %v2137_v7  ;;  %v12564_v11 = vpop.f32.mrf.mxu1 }
 0x356   :  { %10465 = vmatpush3.bf16.msra.mxu1 %v2402_v61  ;;  %v12566_v13 = vpop.f32.mrf.mxu0 }
 0x357   :  { %v2842_v10 = vsel %vm2400_vm2, %v12556_v8, 0  ;;  %10470 = vmatprep.subr.bf16.mxu1 %v12252_v16 }
 0x358   :  { %10513 = vmatpush3.bf16.msra.mxu0 %v2842_v10 }
 0x359   :  { %10524 = vmatprep.subr.bf16.mxu0 %v12252_v16 }
 0x36f   :  { %v10166_v14 = vpop.f32.mrf.mxu1 }
 0x370   :  { %v2260_v15 = vpop.f32.mrf.mxu0 }
 0x371   :  { %v10167_v17 = vpop.f32.mrf.mxu1 }
 0x372   :  { %v10168_v19 = vadd.f32 %v10167_v17, %v10166_v14  ;;  %v10450_v20 = vpop.f32.mrf.mxu0 }
 0x373   :  { %v10169_v21 = vpop.f32.mrf.mxu1 }
 0x374   :  { %v12568_v27 = vadd.f32 %v10168_v19, %v2260_v15  ;;  %v2263_v29 = vpop.f32.mrf.mxu0 }
 0x375   :  { %v10170_v30 = vpop.f32.mrf.mxu1 }
 0x376   :  { %v10171_v31 = vadd.f32 %v10170_v30, %v10169_v21  ;;  %v10451_v36 = vpop.f32.mrf.mxu0  ;;  %v2278_v21 = vpack.c.bf16 %v12558_v42, %v12558_v42 }
 0x378   :  { %v12570_v37 = vadd.f32 %v10171_v31, %v2263_v29 }
 0x3dc   :  { %v2320_v45 = vpop.f32.mrf.mxu1 }
 0x3dd   :  { %v2321_v46 = vadd.f32 %v2320_v45, %v12574_v43 }
 0x3de   :  { %v10456_v47 = vpop.f32.mrf.mxu1  ;;  %v12577_v33 = vpop.f32.mrf.mxu0 }
 0x3df   :  { %v2373_v48 = vsel %vm2372_vm4, %v2321_v46, -inf }
 0x3e0   :  { %v10504_v49 = vpop.f32.mrf.mxu0  ;;  %2374 = vmax.xlane.f32.xlu0 %v2373_v48  ;;  %v2323_v34 = vpop.f32.mrf.mxu1 }
 0x3e2   :  { %v10457_v32 = vpop.f32.mrf.mxu1  ;;  %v2765_v52 = vpop.f32.mrf.mxu0 }
 0x3e4   :  { %v2366_v23 = vpop.f32.mrf.mxu1  ;;  %v10505_v55 = vpop.f32.mrf.mxu0 }
 0x3e5   :  { %v2367_v57 = vadd.f32 %v2366_v23, %v12574_v43 }
 0x3e6   :  { %v10462_v58 = vpop.f32.mrf.mxu1 }
 0x3e7   :  { %v2376_v41 = vsel %vm2372_vm4, %v2367_v57, -inf }
 0x3e8   :  { %2377 = vmax.xlane.f32.xlu1 %v2376_v41  ;;  %v2369_v40 = vpop.f32.mrf.mxu1 }
 0x3ea   :  { %v10463_v62 = vpop.f32.mrf.mxu1 }
 0x469   :  { %v2375_v63 = vpop.xlane.xlu0 %2374 }
 0x46a   :  { %v2379_v0 = vsub.f32 %v2321_v46, %v2375_v63 }
 0x46c   :  { %v2381_v1 = vmul.f32 1.442695, %v2379_v0 }
 0x46e   :  { %11861 = vpow2.f32 %v2381_v1 }
 0x471   :  { %v2378_v3 = vpop.xlane.xlu1 %2377 }
 0x472   :  { %v2380_v4 = vsub.f32 %v2367_v57, %v2378_v3 }
 0x474   :  { %v2383_v7 = vmul.f32 1.442695, %v2380_v4 }
 0x476   :  { %11863 = vpow2.f32 %v2383_v7 }
 0x47b   :  { %v11862_v61 = vpop.eup %11861 }
 0x47c   :  { %v2385_v10 = vsel %vm2372_vm4, %v11862_v61, 0.0 }
 0x47d   :  { %2386 = vadd.xlane.f32.xlu0 %v2385_v10 }
 0x483   :  { %v11864_v14 = vpop.eup %11863 }
 0x484   :  { %v2388_v15 = vsel %vm2372_vm4, %v11864_v14, 0.0 }
 0x485   :  { %2389 = vadd.xlane.f32.xlu1 %v2388_v15 }
 0x493   :  { %2494 = vrot.lane.b32.xlu0 %v12513_v35, %s12255_s12  ;;  %v2448_v35 = vsel %vm2400_vm2, %v2278_v21, 0 }
 0x496   :  { %2491 = vrot.lane.b32.xlu1 %v12525_v51, %s12255_s12 }
 0x49a   :  { %2546 = vrot.lane.b32.xlu1 %v12522_v50, %s12255_s12 }
 0x49e   :  { %2543 = vrot.lane.b32.xlu1 %v12540_v53, %s12255_s12 }
 0x506   :  { %v2387_v17 = vpop.xlane.xlu0 %2386 }
 0x507   :  { %11865 = vrcp.f32 %v2387_v17 }
 0x50a   :  { %v2495_v53 = vpop.permute.xlu0 %2494 }
 0x50b   :  { %v2500_v38 = vsel %vm2279_vm1, %v2495_v53, 0 }
 0x50e   :  { %v2390_v19 = vpop.xlane.xlu1 %2389 }
 0x50f   :  { %11867 = vrcp.f32 %v2390_v19 }
 0x512   :  { %v2492_v36 = vpop.permute.xlu1 %2491 }
 0x514   :  { %v11866_v20 = vpop.eup %11865 }
 0x515   :  { %v2393_v29 = vmul.f32 %v11866_v20, %v11862_v61  ;;  %v2763_v61 = vadd.f32 %v12577_v33, %v12574_v43 }
 0x516   :  { %v2547_v42 = vpop.permute.xlu1 %2546 }
 0x517   :  { %v2395_v30 = vpack.c.bf16 %v2393_v29, %v2393_v29  ;;  %v2552_v39 = vsel %vm2279_vm1, %v2547_v42, 0  ;;  %v2814_v10 = vsel %vm2372_vm4, %v2763_v61, -inf }
 0x519   :  { %10467 = vmatmul.mubr.msk.bf16.vlgmr.msra.gmra.mxu1 %vm2372_vm4, %v2395_v30 }
 0x51a   :  { %10471 = vmatpush3.bf16.msra.mxu1 %v2448_v35  ;;  %10472 = vmatprep.mubr.msk.bf16.mxu1 %vm12253_vm0, %v12252_v16  ;;  %v2544_v45 = vpop.permute.xlu1 %2543 }
 0x51b   :  { %10476 = vmatprep.subr.bf16.mxu1 %v12252_v16 }
 0x51c   :  { %v11868_v50 = vpop.eup %11867 }
 0x51d   :  { %v2394_v51 = vmul.f32 %v11868_v50, %v11864_v14  ;;  %v1535_v14 = vadd.f32 %v12511_v22, %v12546_v54 }
 0x51f   :  { %v2396_v31 = vpack.c.bf16 %v2394_v51, %v2394_v51  ;;  %v2719_v15 = vpack.c.bf16 %v1535_v14, %v1535_v14 }
 0x521   :  { %10473 = vmatmul.mubr.msk.bf16.vlgmr.msra.gmra.mxu1 %vm2372_vm4, %v2396_v31 }
 0x522   :  { %10477 = vmatpush3.bf16.xpose.msra.mxu1 %v2500_v38  ;;  %10478 = vmatprep.mubr.msk.bf16.mxu1 %vm12253_vm0, %v12252_v16 }
 0x523   :  { %10482 = vmatprep.subr.bf16.mxu1 %v12252_v16 }
 0x529   :  { %10479 = vmatmul.mubr.msk.bf16.vlgmr.msra.gmra.mxu1 %vm2279_vm1, %v2492_v36 }
 0x52a   :  { %10483 = vmatpush3.bf16.xpose.msra.mxu1 %v2552_v39  ;;  %10484 = vmatprep.mubr.msk.bf16.mxu1 %vm12253_vm0, %v12252_v16 }
 0x52b   :  { %10488 = vmatprep.subr.bf16.mxu1 %v12252_v16 }
 0x531   :  { %10485 = vmatmul.mubr.msk.bf16.vlgmr.msra.gmra.mxu1 %vm2279_vm1, %v2544_v45 }
 0x532   :  { %10490 = vmatprep.mubr.msk.bf16.mxu1 %vm12253_vm0, %v12252_v16 }
 0x5d9   :  { %v12612_v46 = vpop.f32.mrf.mxu1 }
 0x5db   :  { %v10468_v47 = vpop.f32.mrf.mxu1 }
 0x5dd   :  { %v2441_v48 = vpop.f32.mrf.mxu1 }
 0x5df   :  { %v10469_v49 = vpop.f32.mrf.mxu1 }
 0x5e0   :  { %v2183_v49 = vadd.f32 %v12564_v11, %v12566_v13 }
 0x5e1   :  { %v12614_v34 = vpop.f32.mrf.mxu1 }
 0x5e3   :  { %v10474_v32 = vpop.f32.mrf.mxu1 }
 0x5e4   :  { %v2772_v32 = vsel %vm2279_vm1, %v2719_v15, 0 }
 0x5e5   :  { %v2487_v52 = vpop.f32.mrf.mxu1 }
 0x5e6   :  { %v887_v52 = vadd.f32 %v12503_v5, %v12505_v6 }
 0x5e7   :  { %v10475_v23 = vpop.f32.mrf.mxu1 }
 0x5e8   :  { %v12647_v23 = vpack.c.bf16 %v2183_v49, %v2183_v49 }
 0x5e9   :  { %v2536_v55 = vpop.f32.mrf.mxu1 }
 0x5ea   :  { %v2537_v57 = vadd.f32 %v2536_v55, %v12574_v43  ;;  %v2717_v55 = vpack.c.bf16 %v887_v52, %v887_v52 }
 0x5eb   :  { %v10480_v58 = vpop.f32.mrf.mxu1 }
 0x5ec   :  { %v2594_v41 = vsel %vm2372_vm4, %v2537_v57, -inf }
 0x5ed   :  { %2595 = vmax.xlane.f32.xlu0 %v2594_v41  ;;  %v2539_v40 = vpop.f32.mrf.mxu1 }
 0x5ef   :  { %v10481_v62 = vpop.f32.mrf.mxu1 }
 0x5f1   :  { %v2588_v63 = vpop.f32.mrf.mxu1 }
 0x5f2   :  { %v2589_v0 = vadd.f32 %v2588_v63, %v12574_v43 }
 0x5f3   :  { %v10486_v1 = vpop.f32.mrf.mxu1 }
 0x5f4   :  { %v2597_v3 = vsel %vm2372_vm4, %v2589_v0, -inf }
 0x5f5   :  { %2598 = vmax.xlane.f32.xlu1 %v2597_v3  ;;  %v2591_v4 = vpop.f32.mrf.mxu1 }
 0x5f7   :  { %v10487_v7 = vpop.f32.mrf.mxu1 }
 0x606   :  { %2668 = vrot.lane.b32.xlu1 %v2278_v21, %s12255_s12 }
 0x62a   :  { %2815 = vmax.xlane.f32.xlu1 %v2814_v10 }
 0x63b   :  { %2986 = vrot.lane.b32.xlu1 %v2719_v15, %s12255_s12 }
 0x676   :  { %v2596_v17 = vpop.xlane.xlu0 %2595 }
 0x677   :  { %v2600_v19 = vsub.f32 %v2537_v57, %v2596_v17  ;;  %v2888_v57 = vsel %vm2400_vm2, %v12647_v23, 0 }
 0x679   :  { %v2602_v20 = vmul.f32 1.442695, %v2600_v19 }
 0x67b   :  { %11869 = vpow2.f32 %v2602_v20 }
 0x67e   :  { %v2599_v29 = vpop.xlane.xlu1 %2598 }
 0x67f   :  { %v2601_v30 = vsub.f32 %v2589_v0, %v2599_v29 }
 0x681   :  { %v2604_v35 = vmul.f32 1.442695, %v2601_v30 }
 0x682   :  { %v2669_v42 = vpop.permute.xlu1 %2668 }
 0x683   :  { %11871 = vpow2.f32 %v2604_v35  ;;  %v2674_v45 = vsel %vm2400_vm2, %v2669_v42, 0 }
 0x688   :  { %v11870_v21 = vpop.eup %11869 }
 0x689   :  { %v2606_v33 = vsel %vm2372_vm4, %v11870_v21, 0.0 }
 0x68a   :  { %2607 = vadd.xlane.f32.xlu0 %v2606_v33 }
 0x690   :  { %v11872_v50 = vpop.eup %11871 }
 0x691   :  { %v2609_v51 = vsel %vm2372_vm4, %v11872_v50, 0.0 }
 0x692   :  { %2610 = vadd.xlane.f32.xlu0 %v2609_v51 }
 0x6a8   :  { %2619 = vrot.lane.b32.xlu0 %v12552_v2, %s12255_s12 }
 0x6b3   :  { %v2816_v11 = vpop.xlane.xlu1 %2815 }
 0x6b4   :  { %v2820_v13 = vsub.f32 %v2763_v61, %v2816_v11 }
 0x6b6   :  { %v2822_v6 = vmul.f32 1.442695, %v2820_v13 }
 0x713   :  { %v2608_v22 = vpop.xlane.xlu0 %2607 }
 0x714   :  { %11873 = vrcp.f32 %v2608_v22 }
 0x71b   :  { %v2611_v54 = vpop.xlane.xlu0 %2610 }
 0x71c   :  { %11875 = vrcp.f32 %v2611_v54 }
 0x71d   :  { %11877 = vpow2.f32 %v2822_v6 }
 0x71f   :  { %v2620_v53 = vpop.permute.xlu0 %2619 }
 0x720   :  { %v2625_v31 = vsel %vm2400_vm2, %v2620_v53, 0 }
 0x721   :  { %v11874_v36 = vpop.eup %11873  ;;  %10489 = vmatpush3.bf16.msra.mxu1 %v2625_v31 }
 0x722   :  { %10494 = vmatprep.subr.bf16.mxu1 %v12252_v16  ;;  %v2614_v38 = vmul.f32 %v11874_v36, %v11870_v21 }
 0x724   :  { %v2616_v39 = vpack.c.bf16 %v2614_v38, %v2614_v38 }
 0x726   :  { %10491 = vmatmul.mubr.msk.bf16.vlgmr.msra.gmra.mxu1 %vm2372_vm4, %v2616_v39 }
 0x727   :  { %10495 = vmatpush3.bf16.msra.mxu1 %v2674_v45  ;;  %10496 = vmatprep.mubr.msk.bf16.mxu1 %vm12253_vm0, %v12252_v16 }
 0x728   :  { %10506 = vmatprep.subr.bf16.mxu1 %v12252_v16 }
 0x729   :  { %v11876_v2 = vpop.eup %11875 }
 0x72a   :  { %v2615_v47 = vmul.f32 %v11876_v2, %v11872_v50  ;;  %v11878_v14 = vpop.eup %11877 }
 0x72b   :  { %v2826_v19 = vsel %vm2372_vm4, %v11878_v14, 0.0 }
 0x72c   :  { %v2617_v48 = vpack.c.bf16 %v2615_v47, %v2615_v47 }
 0x72e   :  { %10497 = vmatmul.mubr.msk.bf16.vlgmr.msra.gmra.mxu1 %vm2372_vm4, %v2617_v48 }
 0x72f   :  { %10507 = vmatpush3.bf16.xpose.msra.mxu1 %v2772_v32  ;;  %10508 = vmatprep.mubr.msk.bf16.mxu1 %vm12253_vm0, %v12252_v16 }
 0x730   :  { %10518 = vmatprep.subr.bf16.mxu1 %v12252_v16 }
 0x736   :  { %10509 = vmatmul.mubr.msk.bf16.vlgmr.msra.gmra.mxu1 %vm2279_vm1, %v2717_v55 }
 0x737   :  { %10519 = vmatpush3.bf16.msra.mxu1 %v2888_v57  ;;  %10520 = vmatprep.mubr.msk.bf16.mxu1 %vm12253_vm0, %v12252_v16 }
 0x738   :  { %10530 = vmatprep.subr.bf16.mxu1 %v12252_v16 }
 0x7e6   :  { %v12655_v58 = vpop.f32.mrf.mxu1 }
 0x7e8   :  { %v10492_v5 = vpop.f32.mrf.mxu1 }
 0x7ea   :  { %v2664_v41 = vpop.f32.mrf.mxu1 }
 0x7ec   :  { %v10493_v40 = vpop.f32.mrf.mxu1 }
 0x7ee   :  { %v12657_v62 = vpop.f32.mrf.mxu1 }
 0x7ef   :  { %v10652_v63 = vpack.i.bf16 %v12657_v62, %v12655_v58  ;;  %v10945_v58 = vld [vmem:[#allocation13 + $0xa8] ss:$12 sps:$4 sm:$0xff]   ;;  %v10947_v62 = vld [vmem:[#allocation13 + $0xac] ss:$12 sps:$4 sm:$0xff]  }
 0x7f0   :  { %v10498_v0 = vpop.f32.mrf.mxu1 }
 0x7f2   :  { %v2713_v1 = vpop.f32.mrf.mxu1 }
 0x7f4   :  { %v10499_v3 = vpop.f32.mrf.mxu1 }
 0x7f6   :  { %v2808_v4 = vpop.f32.mrf.mxu1 }
 0x7f7   :  { %v2809_v7 = vadd.f32 %v2808_v4, %v12574_v43 }
 0x7f8   :  { %v10510_v10 = vpop.f32.mrf.mxu1 }
 0x7f9   :  { %v2817_v61 = vsel %vm2372_vm4, %v2809_v7, -inf }
 0x7fa   :  { %2818 = vmax.xlane.f32.xlu0 %v2817_v61  ;;  %v2811_v15 = vpop.f32.mrf.mxu1 }
 0x7fc   :  { %v10511_v17 = vpop.f32.mrf.mxu1 }
 0x7fe   :  { %2827 = vadd.xlane.f32.xlu0 %v2826_v19 }
 0x814   :  { %2934 = vrot.lane.b32.xlu0 %v12517_v44, %s12255_s12  ;;  %v2987_v44 = vpop.permute.xlu1 %2986 }
 0x815   :  { %v2992_v45 = vsel %vm2279_vm1, %v2987_v44, 0  ;;  %v12704_v44 = vpack.c.bf16 %v12548_v56, %v12548_v56  ;;  %v12716_v56 = vpack.c.bf16 %v12568_v27, %v12568_v27 }
 0x883   :  { %v2819_v20 = vpop.xlane.xlu0 %2818 }
 0x884   :  { %v2821_v29 = vsub.f32 %v2809_v7, %v2819_v20 }
 0x886   :  { %v2824_v30 = vmul.f32 1.442695, %v2821_v29 }
 0x887   :  { %v2828_v35 = vpop.xlane.xlu0 %2827 }
 0x888   :  { %11879 = vpow2.f32 %v2824_v30 }
 0x889   :  { %11881 = vrcp.f32 %v2828_v35 }
 0x88b   :  { %v2935_v22 = vpop.permute.xlu0 %2934 }
 0x88c   :  { %v2940_v53 = vsel %vm2279_vm1, %v2935_v22, 0 }
 0x895   :  { %v11880_v21 = vpop.eup %11879 }
 0x896   :  { %v11882_v33 = vpop.eup %11881  ;;  %v2829_v50 = vsel %vm2372_vm4, %v11880_v21, 0.0 }
 0x897   :  { %2830 = vadd.xlane.f32.xlu1 %v2829_v50  ;;  %v2834_v51 = vmul.f32 %v11882_v33, %v11878_v14 }
 0x899   :  { %v2836_v54 = vpack.c.bf16 %v2834_v51, %v2834_v51 }
 0x89b   :  { %10515 = vmatmul.mubr.msk.bf16.vlgmr.msra.gmra.mxu0 %vm2372_vm4, %v2836_v54 }
 0x89c   :  { %10525 = vmatpush3.bf16.xpose.msra.mxu0 %v2940_v53  ;;  %10526 = vmatprep.mubr.msk.bf16.mxu0 %vm12253_vm0, %v12252_v16 }
 0x89d   :  { %10536 = vmatprep.subr.bf16.mxu0 %v12252_v16 }
 0x8a8   :  { %2931 = vrot.lane.b32.xlu1 %v12527_v60, %s12255_s12 }
 0x8ac   :  { %2983 = vrot.lane.b32.xlu1 %v2717_v55, %s12255_s12 }
 0x920   :  { %v2831_v31 = vpop.xlane.xlu1 %2830 }
 0x921   :  { %11883 = vrcp.f32 %v2831_v31 }
 0x924   :  { %v2932_v36 = vpop.permute.xlu1 %2931 }
 0x925   :  { %10527 = vmatmul.mubr.msk.bf16.vlgmr.msra.gmra.mxu0 %vm2279_vm1, %v2932_v36 }
 0x926   :  { %10538 = vmatprep.mubr.msk.bf16.mxu0 %vm12253_vm0, %v12252_v16 }
 0x928   :  { %v2984_v60 = vpop.permute.xlu1 %2983 }
 0x92e   :  { %v11884_v38 = vpop.eup %11883 }
 0x92f   :  { %v2835_v42 = vmul.f32 %v11884_v38, %v11880_v21 }
 0x931   :  { %v2837_v39 = vpack.c.bf16 %v2835_v42, %v2835_v42  ;;  %v3156_v42 = vpack.c.bf16 %v12507_v12, %v12507_v12  ;;  %v12735_v12 = vpack.c.bf16 %v12570_v37, %v12570_v37 }
 0x933   :  { %10521 = vmatmul.mubr.msk.bf16.vlgmr.msra.gmra.mxu1 %vm2372_vm4, %v2837_v39  ;;  %v3159_v39 = vpack.c.bf16 %v12550_v59, %v12550_v59  ;;  %v3157_v59 = vpack.c.bf16 %v12509_v18, %v12509_v18 }
 0x934   :  { %10531 = vmatpush3.bf16.xpose.msra.mxu1 %v2992_v45  ;;  %10532 = vmatprep.mubr.msk.bf16.mxu1 %vm12253_vm0, %v12252_v16 }
 0x935   :  { %10542 = vmatprep.subr.bf16.mxu1 %v12252_v16  ;;  %v3212_v27 = vsel %vm2279_vm1, %v3159_v39, 0 }
 0x93b   :  { %10533 = vmatmul.mubr.msk.bf16.vlgmr.msra.gmra.mxu1 %vm2279_vm1, %v2984_v60  ;;  %v3282_v60 = vsel %vm2400_vm2, %v12716_v56, 0 }
 0x93c   :  { %10544 = vmatprep.mubr.msk.bf16.mxu1 %vm12253_vm0, %v12252_v16 }
 0x95b   :  { %v12686_v2 = vpop.f32.mrf.mxu0 }
 0x95d   :  { %v10516_v47 = vpop.f32.mrf.mxu0 }
 0x95f   :  { %v2881_v48 = vpop.f32.mrf.mxu0 }
 0x960   :  { %v3328_v48 = vsel %vm2400_vm2, %v12735_v12, 0 }
 0x961   :  { %v10517_v49 = vpop.f32.mrf.mxu0 }
 0x9e5   :  { %v2976_v32 = vpop.f32.mrf.mxu0 }
 0x9e6   :  { %v2977_v52 = vadd.f32 %v2976_v32, %v12574_v43 }
 0x9e7   :  { %v10528_v55 = vpop.f32.mrf.mxu0 }
 0x9e8   :  { %v3034_v57 = vsel %vm2372_vm4, %v2977_v52, -inf }
 0x9e9   :  { %3035 = vmax.xlane.f32.xlu0 %v3034_v57  ;;  %v2979_v11 = vpop.f32.mrf.mxu0 }
 0x9eb   :  { %v10529_v13 = vpop.f32.mrf.mxu0 }
 0x9f3   :  { %v12690_v5 = vpop.f32.mrf.mxu1 }
 0x9f5   :  { %v10522_v6 = vpop.f32.mrf.mxu1 }
 0x9f7   :  { %v2927_v41 = vpop.f32.mrf.mxu1 }
 0x9f9   :  { %v10523_v40 = vpop.f32.mrf.mxu1 }
 0x9fb   :  { %v3028_v0 = vpop.f32.mrf.mxu1 }
 0x9fc   :  { %v3029_v1 = vadd.f32 %v3028_v0, %v12574_v43 }
 0x9fd   :  { %v10534_v3 = vpop.f32.mrf.mxu1 }
 0x9fe   :  { %v3037_v4 = vsel %vm2372_vm4, %v3029_v1, -inf }
 0x9ff   :  { %3038 = vmax.xlane.f32.xlu1 %v3037_v4  ;;  %v3031_v7 = vpop.f32.mrf.mxu1 }
 0xa01   :  { %v10535_v10 = vpop.f32.mrf.mxu1 }
 0xa10   :  { %3108 = vrot.lane.b32.xlu1 %v12647_v23, %s12255_s12 }
 0xa72   :  { %v3036_v61 = vpop.xlane.xlu0 %3035 }
 0xa73   :  { %v3040_v14 = vsub.f32 %v2977_v52, %v3036_v61 }
 0xa75   :  { %v3042_v15 = vmul.f32 1.442695, %v3040_v14 }
 0xa77   :  { %11885 = vpow2.f32 %v3042_v15 }
 0xa84   :  { %v11886_v17 = vpop.eup %11885 }
 0xa85   :  { %v3046_v19 = vsel %vm2372_vm4, %v11886_v17, 0.0 }
 0xa86   :  { %3047 = vadd.xlane.f32.xlu0 %v3046_v19 }
 0xa88   :  { %v3039_v20 = vpop.xlane.xlu1 %3038 }
 0xa89   :  { %v3041_v29 = vsub.f32 %v3029_v1, %v3039_v20 }
 0xa8b   :  { %v3044_v30 = vmul.f32 1.442695, %v3041_v29 }
 0xa8c   :  { %v3109_v35 = vpop.permute.xlu1 %3108 }
 0xa8d   :  { %11887 = vpow2.f32 %v3044_v30  ;;  %v3114_v21 = vsel %vm2400_vm2, %v3109_v35, 0 }
 0xa8e   :  { %10543 = vmatpush3.bf16.msra.mxu1 %v3114_v21 }
 0xa8f   :  { %10554 = vmatprep.subr.bf16.mxu1 %v12252_v16 }
 0xa9a   :  { %v11888_v33 = vpop.eup %11887 }
 0xa9b   :  { %v3049_v23 = vsel %vm2372_vm4, %v11888_v33, 0.0 }
 0xa9c   :  { %3050 = vadd.xlane.f32.xlu0 %v3049_v23 }
 0xab2   :  { %3059 = vrot.lane.b32.xlu0 %v12556_v8, %s12255_s12  ;;  %v3166_v8 = vsel %vm2279_vm1, %v12704_v44, 0 }
 0xb0f   :  { %v3048_v50 = vpop.xlane.xlu0 %3047 }
 0xb10   :  { %11889 = vrcp.f32 %v3048_v50 }
 0xb1d   :  { %v11890_v51 = vpop.eup %11889 }
 0xb1e   :  { %v3054_v54 = vmul.f32 %v11890_v51, %v11886_v17 }
 0xb20   :  { %v3056_v36 = vpack.c.bf16 %v3054_v54, %v3054_v54 }
 0xb25   :  { %v3051_v22 = vpop.xlane.xlu0 %3050 }
 0xb26   :  { %11891 = vrcp.f32 %v3051_v22 }
 0xb29   :  { %v3060_v53 = vpop.permute.xlu0 %3059 }
 0xb2a   :  { %v3065_v31 = vsel %vm2400_vm2, %v3060_v53, 0 }
 0xb2b   :  { %10537 = vmatpush3.bf16.msra.mxu0 %v3065_v31 }
 0xb2c   :  { %10548 = vmatprep.subr.bf16.mxu0 %v12252_v16 }
 0xb2e   :  { %10539 = vmatmul.mubr.msk.bf16.vlgmr.msra.gmra.mxu0 %vm2372_vm4, %v3056_v36 }
 0xb2f   :  { %10549 = vmatpush3.bf16.xpose.msra.mxu0 %v3166_v8  ;;  %10550 = vmatprep.mubr.msk.bf16.mxu0 %vm12253_vm0, %v12252_v16 }
 0xb30   :  { %10560 = vmatprep.subr.bf16.mxu0 %v12252_v16 }
 0xb33   :  { %v11892_v38 = vpop.eup %11891 }
 0xb34   :  { %v3055_v45 = vmul.f32 %v11892_v38, %v11888_v33 }
 0xb36   :  { %10551 = vmatmul.mubr.msk.bf16.vlgmr.msra.gmra.mxu0 %vm2279_vm1, %v3156_v42  ;;  %v3057_v47 = vpack.c.bf16 %v3055_v45, %v3055_v45 }
 0xb37   :  { %10561 = vmatpush3.bf16.msra.mxu0 %v3282_v60  ;;  %10562 = vmatprep.mubr.msk.bf16.mxu0 %vm12253_vm0, %v12252_v16 }
 0xb38   :  { %10545 = vmatmul.mubr.msk.bf16.vlgmr.msra.gmra.mxu1 %vm2372_vm4, %v3057_v47  ;;  %10572 = vmatprep.subr.bf16.mxu0 %v12252_v16 }
 0xb39   :  { %10555 = vmatpush3.bf16.xpose.msra.mxu1 %v3212_v27  ;;  %10556 = vmatprep.mubr.msk.bf16.mxu1 %vm12253_vm0, %v12252_v16 }
 0xb3a   :  { %10566 = vmatprep.subr.bf16.mxu1 %v12252_v16 }
 0xb40   :  { %10557 = vmatmul.mubr.msk.bf16.vlgmr.msra.gmra.mxu1 %vm2279_vm1, %v3157_v59 }
 0xb41   :  { %10567 = vmatpush3.bf16.msra.mxu1 %v3328_v48  ;;  %10568 = vmatprep.mubr.msk.bf16.mxu1 %vm12253_vm0, %v12252_v16 }
 0xb42   :  { %10578 = vmatprep.subr.bf16.mxu1 %v12252_v16 }
 0xbee   :  { %v12745_v49 = vpop.f32.mrf.mxu0 }
 0xbf0   :  { %v10540_v32 = vpop.f32.mrf.mxu0 }
 0xbf2   :  { %v3104_v52 = vpop.f32.mrf.mxu0 }
 0xbf4   :  { %v10541_v37 = vpop.f32.mrf.mxu0 }
 0xbf6   :  { %v3202_v55 = vpop.f32.mrf.mxu0 }
 0xbf7   :  { %v3203_v57 = vadd.f32 %v3202_v55, %v12574_v43 }
 0xbf8   :  { %v12748_v18 = vpop.f32.mrf.mxu1  ;;  %v10552_v11 = vpop.f32.mrf.mxu0 }
 0xbf9   :  { %v10647_v13 = vpack.i.bf16 %v12748_v18, %v12745_v49  ;;  %v3254_v6 = vsel %vm2372_vm4, %v3203_v57, -inf }
 0xbfa   :  { %3255 = vmax.xlane.f32.xlu1 %v3254_v6  ;;  %v10546_v41 = vpop.f32.mrf.mxu1  ;;  %v3205_v40 = vpop.f32.mrf.mxu0 }
 0xbfc   :  { %v3153_v0 = vpop.f32.mrf.mxu1  ;;  %v10553_v1 = vpop.f32.mrf.mxu0 }
 0xbfe   :  { %v10547_v3 = vpop.f32.mrf.mxu1 }
 0xc00   :  { %v3248_v4 = vpop.f32.mrf.mxu1 }
 0xc01   :  { %v3249_v7 = vadd.f32 %v3248_v4, %v12574_v43 }
 0xc02   :  { %v10558_v10 = vpop.f32.mrf.mxu1 }
 0xc03   :  { %v3257_v61 = vsel %vm2372_vm4, %v3249_v7, -inf }
 0xc04   :  { %3258 = vmax.xlane.f32.xlu0 %v3257_v61  ;;  %v3251_v14 = vpop.f32.mrf.mxu1 }
 0xc06   :  { %v10559_v15 = vpop.f32.mrf.mxu1 }
 0xc0b   :  { %3426 = vrot.lane.b32.xlu1 %v3159_v39, %s12255_s12 }
 0xc83   :  { %v3256_v17 = vpop.xlane.xlu1 %3255 }
 0xc84   :  { %v3260_v19 = vsub.f32 %v3203_v57, %v3256_v17 }
 0xc86   :  { %v3262_v20 = vmul.f32 1.442695, %v3260_v19 }
 0xc87   :  { %v3427_v22 = vpop.permute.xlu1 %3426 }
 0xc88   :  { %11893 = vpow2.f32 %v3262_v20  ;;  %v3432_v60 = vsel %vm2279_vm1, %v3427_v22, 0 }
 0xc8d   :  { %v3259_v29 = vpop.xlane.xlu0 %3258 }
 0xc8e   :  { %v3261_v30 = vsub.f32 %v3249_v7, %v3259_v29 }
 0xc90   :  { %v3264_v35 = vmul.f32 1.442695, %v3261_v30 }
 0xc92   :  { %11895 = vpow2.f32 %v3264_v35 }
 0xc95   :  { %v11894_v21 = vpop.eup %11893 }
 0xc96   :  { %v3266_v33 = vsel %vm2372_vm4, %v11894_v21, 0.0 }
 0xc97   :  { %3267 = vadd.xlane.f32.xlu0 %v3266_v33 }
 0xc9f   :  { %v11896_v23 = vpop.eup %11895 }
 0xca0   :  { %v3269_v50 = vsel %vm2372_vm4, %v11896_v23, 0.0 }
 0xca1   :  { %3270 = vadd.xlane.f32.xlu1 %v3269_v50 }
 0xcad   :  { %3374 = vrot.lane.b32.xlu0 %v12704_v44, %s12255_s12 }
 0xcb2   :  { %3371 = vrot.lane.b32.xlu1 %v3156_v42, %s12255_s12 }
 0xcb6   :  { %3423 = vrot.lane.b32.xlu1 %v3157_v59, %s12255_s12 }
 0xd20   :  { %v3268_v51 = vpop.xlane.xlu0 %3267 }
 0xd21   :  { %11897 = vrcp.f32 %v3268_v51 }
 0xd24   :  { %v3375_v36 = vpop.permute.xlu0 %3374 }
 0xd25   :  { %v3380_v38 = vsel %vm2279_vm1, %v3375_v36, 0 }
 0xd2a   :  { %v3271_v54 = vpop.xlane.xlu1 %3270 }
 0xd2b   :  { %11899 = vrcp.f32 %v3271_v54 }
 0xd2e   :  { %v11898_v53 = vpop.eup %11897  ;;  %v3372_v39 = vpop.permute.xlu1 %3371 }
 0xd2f   :  { %v3274_v31 = vmul.f32 %v11898_v53, %v11894_v21 }
 0xd31   :  { %v3276_v8 = vpack.c.bf16 %v3274_v31, %v3274_v31 }
 0xd32   :  { %v3424_v47 = vpop.permute.xlu1 %3423 }
 0xd33   :  { %10563 = vmatmul.mubr.msk.bf16.vlgmr.msra.gmra.mxu0 %vm2372_vm4, %v3276_v8 }
 0xd34   :  { %10573 = vmatpush3.bf16.xpose.msra.mxu0 %v3380_v38  ;;  %10574 = vmatprep.mubr.msk.bf16.mxu0 %vm12253_vm0, %v12252_v16 }
 0xd35   :  { %10584 = vmatprep.subr.bf16.mxu0 %v12252_v16 }
 0xd38   :  { %v11900_v44 = vpop.eup %11899 }
 0xd39   :  { %v3275_v42 = vmul.f32 %v11900_v44, %v11896_v23  ;;  %v10948_v44 = vld [vmem:[#allocation13 + $0x90] ss:$12 sps:$4 sm:$0xff]  }
 0xd3b   :  { %10575 = vmatmul.mubr.msk.bf16.vlgmr.msra.gmra.mxu0 %vm2279_vm1, %v3372_v39  ;;  %v3277_v45 = vpack.c.bf16 %v3275_v42, %v3275_v42  ;;  %v10953_v42 = vld [vmem:[#allocation13 + $0x7c] ss:$12 sps:$4 sm:$0xff]  }
 0xd3c   :  { %10586 = vmatprep.mubr.msk.bf16.mxu0 %vm12253_vm0, %v12252_v16  ;;  %v10966_v39 = vld [vmem:[#allocation13 + $0x228] ss:$12 sps:$4 sm:$0xff]  }
 0xd3d   :  { %10569 = vmatmul.mubr.msk.bf16.vlgmr.msra.gmra.mxu1 %vm2372_vm4, %v3277_v45  ;;  %v10968_v45 = vld [vmem:[#allocation13 + $0x22c] ss:$12 sps:$4 sm:$0xff]  }
 0xd3e   :  { %10579 = vmatpush3.bf16.xpose.msra.mxu1 %v3432_v60  ;;  %10580 = vmatprep.mubr.msk.bf16.mxu1 %vm12253_vm0, %v12252_v16  ;;  %v10974_v60 = vld [vmem:[#allocation13 + $0x214] ss:$12 sps:$4 sm:$0xff]  }
 0xd3f   :  { %10590 = vmatprep.subr.bf16.mxu1 %v12252_v16 }
 0xd45   :  { %10581 = vmatmul.mubr.msk.bf16.vlgmr.msra.gmra.mxu1 %vm2279_vm1, %v3424_v47  ;;  %v10951_v47 = vld [vmem:[#allocation13 + $0x78] ss:$12 sps:$4 sm:$0xff]  }
 0xd46   :  { %10592 = vmatprep.mubr.msk.bf16.mxu1 %vm12253_vm0, %v12252_v16 }
 0xdf3   :  { %v12778_v27 = vpop.f32.mrf.mxu0 }
 0xdf5   :  { %v10564_v59 = vpop.f32.mrf.mxu0 }
 0xdf6   :  { %v10956_v59 = vld [vmem:[#allocation13 + $0x64] ss:$12 sps:$4 sm:$0xff]  }
 0xdf7   :  { %v3321_v48 = vpop.f32.mrf.mxu0 }
 0xdf8   :  { %v10972_v48 = vld [vmem:[#allocation13 + $0x210] ss:$12 sps:$4 sm:$0xff]  }
 0xdf9   :  { %v10565_v32 = vpop.f32.mrf.mxu0 }
 0xdfa   :  { %v10980_v32 = vld [vmem:[#allocation13 + $0x1fc] ss:$12 sps:$4 sm:$0xff]  }
 0xdfb   :  { %v3416_v52 = vpop.f32.mrf.mxu0 }
 0xdfc   :  { %v3417_v37 = vadd.f32 %v3416_v52, %v12574_v43  ;;  %v10954_v52 = vld [vmem:[#allocation13 + $0x60] ss:$12 sps:$4 sm:$0xff]  }
 0xdfd   :  { %v12781_v55 = vpop.f32.mrf.mxu1  ;;  %v10576_v57 = vpop.f32.mrf.mxu0 }
 0xdfe   :  { %v3474_v11 = vsel %vm2372_vm4, %v3417_v37, -inf  ;;  %v10978_v57 = vld [vmem:[#allocation13 + $0x1f8] ss:$12 sps:$4 sm:$0xff]  }
 0xdff   :  { %3475 = vmax.xlane.f32.xlu0 %v3474_v11  ;;  %v10570_v6 = vpop.f32.mrf.mxu1  ;;  %v3419_v41 = vpop.f32.mrf.mxu0  ;;  %v10986_v11 = vld [vmem:[#allocation13 + $0x1e4] ss:$12 sps:$4 sm:$0xff]  }
 0xe00   :  { %v10957_v6 = vld [vmem:[#allocation13 + $0x48] ss:$12 sps:$4 sm:$0xff]  }
 0xe01   :  { %v3367_v40 = vpop.f32.mrf.mxu1  ;;  %v10577_v0 = vpop.f32.mrf.mxu0  ;;  %v10962_v41 = vld [vmem:[#allocation13 + $0x34] ss:$12 sps:$4 sm:$0xff]  }
 0xe02   :  { %v10984_v40 = vld [vmem:[#allocation13 + $0x1e0] ss:$12 sps:$4 sm:$0xff]  }
 0xe03   :  { %v10571_v1 = vpop.f32.mrf.mxu1  ;;  %v10992_v0 = vld [vmem:[#allocation13 + $0x1cc] ss:$12 sps:$4 sm:$0xff]  }
 0xe04   :  { %v10960_v1 = vld [vmem:[#allocation13 + $0x30] ss:$12 sps:$4 sm:$0xff]  }
 0xe05   :  { %v3468_v3 = vpop.f32.mrf.mxu1 }
 0xe06   :  { %v3469_v4 = vadd.f32 %v3468_v3, %v12574_v43  ;;  %v10965_v3 = vld [vmem:[#allocation13 + $0x1c] ss:$12 sps:$4 sm:$0xff]  }
 0xe07   :  { %v10582_v7 = vpop.f32.mrf.mxu1 }
 0xe08   :  { %v3477_v10 = vsel %vm2372_vm4, %v3469_v4, -inf  ;;  %v10998_v7 = vld [vmem:[#allocation13 + $0x1b4] ss:$12 sps:$4 sm:$0xff]  }
 0xe09   :  { %3478 = vmax.xlane.f32.xlu1 %v3477_v10  ;;  %v3471_v61 = vpop.f32.mrf.mxu1  ;;  %v10963_v10 = vld [vmem:[#allocation13 + $0x18] ss:$12 sps:$4 sm:$0xff]  }
 0xe0a   :  { %v10971_v61 = vld [vmem:[#allocation13 + $0x4] ss:$12 sps:$4 sm:$0xff]  }
 0xe0b   :  { %v10583_v14 = vpop.f32.mrf.mxu1 }
 0xe0c   :  { %v10996_v14 = vld [vmem:[#allocation13 + $0x1b0] ss:$12 sps:$4 sm:$0xff]  }
 0xe1a   :  { %3548 = vrot.lane.b32.xlu1 %v12735_v12, %s12255_s12 }
 0xe88   :  { %v3476_v15 = vpop.xlane.xlu0 %3475 }
 0xe89   :  { %v3480_v17 = vsub.f32 %v3417_v37, %v3476_v15  ;;  %v10959_v37 = vld [vmem:[#allocation13 + $0x4c] ss:$12 sps:$4 sm:$0xff]   ;;  %v11004_v15 = vld [vmem:[#allocation13 + $0x19c] ss:$12 sps:$4 sm:$0xff]  }
 0xe8b   :  { %v3482_v19 = vmul.f32 1.442695, %v3480_v17  ;;  %v10969_v17 = vld [vmem:[#allocation13] ss:$12 sps:$4 sm:$0xff]  }
 0xe8d   :  { %11901 = vpow2.f32 %v3482_v19  ;;  %v10977_v19 = vld [vmem:[#allocation13 + $0x16c] ss:$12 sps:$4 sm:$0xff]  }
 0xe92   :  { %v3479_v20 = vpop.xlane.xlu1 %3478 }
 0xe93   :  { %v3481_v29 = vsub.f32 %v3469_v4, %v3479_v20  ;;  %v10990_v4 = vld [vmem:[#allocation13 + $0x1c8] ss:$12 sps:$4 sm:$0xff]   ;;  %v11002_v20 = vld [vmem:[#allocation13 + $0x198] ss:$12 sps:$4 sm:$0xff]  }
 0xe95   :  { %v3484_v30 = vmul.f32 1.442695, %v3481_v29  ;;  %v10975_v29 = vld [vmem:[#allocation13 + $0x168] ss:$12 sps:$4 sm:$0xff]  }
 0xe96   :  { %v3549_v35 = vpop.permute.xlu1 %3548 }
 0xe97   :  { %11903 = vpow2.f32 %v3484_v30  ;;  %v3554_v43 = vsel %vm2400_vm2, %v3549_v35, 0  ;;  %v10983_v30 = vld [vmem:[#allocation13 + $0x154] ss:$12 sps:$4 sm:$0xff]   ;;  %v10981_v35 = vld [vmem:[#allocation13 + $0x150] ss:$12 sps:$4 sm:$0xff]  }
 0xe98   :  { %10591 = vmatpush3.bf16.msra.mxu1 %v3554_v43  ;;  %v10989_v43 = vld [vmem:[#allocation13 + $0x13c] ss:$12 sps:$4 sm:$0xff]  }
 0xe99   :  { %4169 = vmatprep.subr.bf16.mxu1 %v10968_v45 }
 0xe9a   :  { %v11902_v21 = vpop.eup %11901 }
 0xe9b   :  { %v3486_v33 = vsel %vm2372_vm4, %v11902_v21, 0.0 }
 0xe9c   :  { %3487 = vadd.xlane.f32.xlu0 %v3486_v33  ;;  %v10995_v33 = vld [vmem:[#allocation13 + $0x124] ss:$12 sps:$4 sm:$0xff]  }
 0xea4   :  { %v11904_v23 = vpop.eup %11903 }
 0xea5   :  { %v3489_v50 = vsel %vm2372_vm4, %v11904_v23, 0.0 }
 0xea6   :  { %3490 = vadd.xlane.f32.xlu0 %v3489_v50  ;;  %v11001_v50 = vld [vmem:[#allocation13 + $0x10c] ss:$12 sps:$4 sm:$0xff]  }
 0xebc   :  { %3499 = vrot.lane.b32.xlu0 %v12716_v56, %s12255_s12 }
 0xec0   :  { %10653 = vrot.lane.b32.xlu0 %v10652_v63, %s12255_s12  ;;  %v10950_v63 = vld [vmem:[#allocation13 + $0x94] ss:$12 sps:$4 sm:$0xff]  }
 0xf25   :  { %v3488_v12 = vpop.xlane.xlu0 %3487 }
 0xf26   :  { %11905 = vrcp.f32 %v3488_v12  ;;  %v10999_v12 = vld [vmem:[#allocation13 + $0x108] ss:$12 sps:$4 sm:$0xff]  }
 0xf2f   :  { %v3491_v51 = vpop.xlane.xlu0 %3490 }
 0xf30   :  { %11907 = vrcp.f32 %v3491_v51  ;;  %v11007_v51 = vld [vmem:[#allocation13 + $0xf4] ss:$12 sps:$4 sm:$0xff]  }
 0xf33   :  { %v11906_v22 = vpop.eup %11905  ;;  %v3500_v54 = vpop.permute.xlu0 %3499 }
 0xf34   :  { %v3505_v53 = vsel %vm2400_vm2, %v3500_v54, 0  ;;  %v3494_v31 = vmul.f32 %v11906_v22, %v11902_v21  ;;  %v10987_v21 = vld [vmem:[#allocation13 + $0x138] ss:$12 sps:$4 sm:$0xff]   ;;  %v11005_v22 = vld [vmem:[#allocation13 + $0xf0] ss:$12 sps:$4 sm:$0xff]  }
 0xf35   :  { %10585 = vmatpush3.bf16.msra.mxu0 %v3505_v53  ;;  %v11010_v53 = vld [vmem:[#allocation13 + $0x184] ss:$12 sps:$4 sm:$0xff]  }
 0xf36   :  { %v3496_v36 = vpack.c.bf16 %v3494_v31, %v3494_v31  ;;  %4126 = vmatprep.subr.bf16.mxu0 %v10947_v62  ;;  %v11008_v31 = vld [vmem:[#allocation13 + $0x180] ss:$12 sps:$4 sm:$0xff]  }
 0xf37   :  { %v11015_v62 = vld [vmem:[#allocation13 + $0xc0] ss:$12 sps:$4 sm:$0xff]  }
 0xf38   :  { %10587 = vmatmul.mubr.msk.bf16.vlgmr.msra.gmra.mxu0 %vm2372_vm4, %v3496_v36  ;;  %v11013_v36 = vld [vmem:[#allocation13 + $0xdc] ss:$12 sps:$4 sm:$0xff]  }
 0xf39   :  { %4127 = vmatpush1.bf16.msra.mxu0 %v10945_v58  ;;  %v11014_v58 = vld [vmem:[#allocation13 + $0x170] ss:$12 sps:$4 sm:$0xff]  }
 0xf3a   :  { %4128 = vmatprep.subr.bf16.mxu0 %v10950_v63  ;;  %v11017_v63 = vld [vmem:[#allocation13 + $0xc4] ss:$12 sps:$4 sm:$0xff]  }
 0xf3d   :  { %v11908_v8 = vpop.eup %11907  ;;  %4129 = vmatpush1.bf16.msra.mxu0 %v10948_v44 }
 0xf3e   :  { %v3495_v56 = vmul.f32 %v11908_v8, %v11904_v23  ;;  %4130 = vmatprep.subr.bf16.mxu0 %v10953_v42  ;;  %v10993_v23 = vld [vmem:[#allocation13 + $0x120] ss:$12 sps:$4 sm:$0xff]  }
 0xf40   :  { %v3497_v38 = vpack.c.bf16 %v3495_v56, %v3495_v56  ;;  %v11011_v56 = vld [vmem:[#allocation13 + $0xd8] ss:$12 sps:$4 sm:$0xff]  }
 0xf41   :  { %4131 = vmatpush1.bf16.msra.mxu0 %v10951_v47 }
 0xf42   :  { %10593 = vmatmul.mubr.msk.bf16.vlgmr.msra.gmra.mxu1 %vm2372_vm4, %v3497_v38  ;;  %4132 = vmatprep.subr.bf16.mxu0 %v10956_v59  ;;  %v10654_v59 = vpop.permute.xlu0 %10653 }
 0xf43   :  { %4201 = vmatprep.mubr.bf16.mxu1 %v12251_v9  ;;  %4170 = vmatpush1.bf16.msra.mxu1 %v10966_v39 }
 0xf44   :  { %4171 = vmatprep.subr.bf16.mxu1 %v10974_v60 }
 0xf45   :  { %4133 = vmatpush1.bf16.msra.mxu0 %v10954_v52 }
 0xf46   :  { %4134 = vmatprep.subr.bf16.mxu0 %v10959_v37  ;;  %v10656_v37 = vunpack.i.h.bf16 %v10654_v59 }
 0xf47   :  { %4172 = vmatpush1.bf16.msra.mxu1 %v10972_v48 }
 0xf48   :  { %4173 = vmatprep.subr.bf16.mxu1 %v10980_v32  ;;  %v3621_v18 = vsel %vm2279_vm1, %v12614_v34, %v10656_v37  ;;  %v11024_v34 = vld [vmem:[#allocation13 + $0x218] ss:$12 sps:$4 sm:$0xff]  }
 0xf49   :  { %4135 = vmatpush1.bf16.msra.mxu0 %v10957_v6 }
 0xf4a   :  { %4136 = vmatprep.subr.bf16.mxu0 %v10962_v41  ;;  %v11018_v41 = vld [vmem:[#allocation13 + $0xb0] ss:$12 sps:$4 sm:$0xff]  }
 0xf4b   :  { %4174 = vmatpush1.bf16.msra.mxu1 %v10978_v57  ;;  %v10655_v57 = vunpack.i.l.bf16 %v10654_v59 }
 0xf4c   :  { %4175 = vmatprep.subr.bf16.mxu1 %v10986_v11 }
 0xf4d   :  { %4137 = vmatpush1.bf16.msra.mxu0 %v10960_v1  ;;  %v11019_v1 = vld [vmem:[#allocation13 + $0x158] ss:$12 sps:$4 sm:$0xff]  }
 0xf4e   :  { %4138 = vmatprep.subr.bf16.mxu0 %v10965_v3 }
 0xf4f   :  { %4176 = vmatpush1.bf16.msra.mxu1 %v10984_v40 }
 0xf50   :  { %4177 = vmatprep.subr.bf16.mxu1 %v10992_v0 }
 0xf51   :  { %4139 = vmatpush1.bf16.msra.mxu0 %v10963_v10  ;;  %v11021_v10 = vld [vmem:[#allocation13 + $0x230] ss:$12 sps:$4 sm:$0xff]  }
 0xf52   :  { %4140 = vmatprep.subr.bf16.mxu0 %v10971_v61  ;;  %v11022_v61 = vld [vmem:[#allocation13 + $0x140] ss:$12 sps:$4 sm:$0xff]  }
 0xf53   :  { %4178 = vmatpush1.bf16.msra.mxu1 %v10990_v4  ;;  %v11020_v4 = vld [vmem:[#allocation13 + $0x98] ss:$12 sps:$4 sm:$0xff]  }
 0xf54   :  { %4179 = vmatprep.subr.bf16.mxu1 %v10998_v7 }
 0xf55   :  { %4141 = vmatpush1.bf16.msra.mxu0 %v10969_v17  ;;  %v11028_v17 = vld [vmem:[#allocation13 + $0x110] ss:$12 sps:$4 sm:$0xff]  }
 0xf56   :  { %4142 = vmatprep.subr.bf16.mxu0 %v10977_v19  ;;  %v11029_v19 = vld [vmem:[#allocation13 + $0x50] ss:$12 sps:$4 sm:$0xff]  }
 0xf57   :  { %4180 = vmatpush1.bf16.msra.mxu1 %v10996_v14 }
 0xf58   :  { %4181 = vmatprep.subr.bf16.mxu1 %v11004_v15  ;;  %v11025_v15 = vld [vmem:[#allocation13 + $0x128] ss:$12 sps:$4 sm:$0xff]  }
 0xf59   :  { %4143 = vmatpush2.bf16.msra.mxu0 %v10975_v29  ;;  %v11031_v29 = vld [vmem:[#allocation13 + $0xf8] ss:$12 sps:$4 sm:$0xff]  }
 0xf5a   :  { %4144 = vmatprep.subr.bf16.mxu0 %v10983_v30  ;;  %v11032_v30 = vld [vmem:[#allocation13 + $0x38] ss:$12 sps:$4 sm:$0xff]  }
 0xf5b   :  { %4182 = vmatpush1.bf16.msra.mxu1 %v11002_v20  ;;  %v11030_v20 = vld [vmem:[#allocation13 + $0x1e8] ss:$12 sps:$4 sm:$0xff]  }
 0xf5c   :  { %4183 = vmatprep.subr.bf16.mxu1 %v11010_v53 }
 0xf5d   :  { %4145 = vmatpush2.bf16.msra.mxu0 %v10981_v35  ;;  %v11033_v35 = vld [vmem:[#allocation13 + $0x1d0] ss:$12 sps:$4 sm:$0xff]  }
 0xf5e   :  { %4146 = vmatprep.subr.bf16.mxu0 %v10989_v43  ;;  %v11034_v43 = vld [vmem:[#allocation13 + $0xe0] ss:$12 sps:$4 sm:$0xff]  }
 0xf5f   :  { %4184 = vmatpush1.bf16.msra.mxu1 %v11008_v31 }
 0xf60   :  { %10229 = vmatprep.subr.bf16.mxu1 %v11014_v58 }
 0xf61   :  { %4147 = vmatpush2.bf16.msra.mxu0 %v10987_v21  ;;  %v11035_v21 = vld [vmem:[#allocation13 + $0x20] ss:$12 sps:$4 sm:$0xff]  }
 0xf62   :  { %4148 = vmatprep.subr.bf16.mxu0 %v10995_v33  ;;  %v11036_v33 = vld [vmem:[#allocation13 + $0x1b8] ss:$12 sps:$4 sm:$0xff]  }
 0xf65   :  { %4149 = vmatpush2.bf16.msra.mxu0 %v10993_v23  ;;  %v11037_v23 = vld [vmem:[#allocation13 + $0xc8] ss:$12 sps:$4 sm:$0xff]  }
 0xf66   :  { %4150 = vmatprep.subr.bf16.mxu0 %v11001_v50  ;;  %v11038_v50 = vld [vmem:[#allocation13 + $0x8] ss:$12 sps:$4 sm:$0xff]  }
 0xf69   :  { %4151 = vmatpush2.bf16.msra.mxu0 %v10999_v12  ;;  %v11039_v12 = vld [vmem:[#allocation13 + $0x1a0] ss:$12 sps:$4 sm:$0xff]  }
 0xf6a   :  { %4152 = vmatprep.subr.bf16.mxu0 %v11007_v51  ;;  %v11040_v51 = vld [vmem:[#allocation13 + $0x188] ss:$12 sps:$4 sm:$0xff]  }
 0xf6d   :  { %4153 = vmatpush2.bf16.msra.mxu0 %v11005_v22 }
 0xf6e   :  { %4154 = vmatprep.subr.bf16.mxu0 %v11013_v36 }
 0xf71   :  { %4155 = vmatpush2.bf16.msra.mxu0 %v11011_v56 }
 0xf72   :  { %4156 = vmatprep.subr.bf16.mxu0 %v11017_v63 }
 0xf75   :  { %4157 = vmatpush2.bf16.msra.mxu0 %v11015_v62 }
 0xf76   :  { %10596 = vmatprep.subr.bf16.mxu0 %v12252_v16 }
 0xff8   :  { %v3541_v54 = vpop.f32.mrf.mxu0 }
 0xffa   :  { %v10588_v8 = vpop.f32.mrf.mxu0 }
 0xffb   :  { %v3725_v8 = vld [vmem:[#allocation14] sm:$0x7] }
 0xffc   :  { %v3544_v38 = vpop.f32.mrf.mxu0  ;;  %v3734_v56 = vrot.slane %v3725_v8, %v12422_v25  ;;  %v3730_v58 = vrot.slane %v3725_v8, %v12428_v28 }
 0xffe   :  { %v10589_v44 = vpop.f32.mrf.mxu0 }
0x1002   :  { %v3590_v42 = vpop.f32.mrf.mxu1 }
0x1003   :  { %v10642_v39 = vpack.i.bf16 %v3590_v42, %v3541_v54 }
0x1004   :  { %v10594_v45 = vpop.f32.mrf.mxu1 }
0x1005   :  { %10643 = vrot.lane.b32.xlu1 %v10642_v39, %s12255_s12  ;;  %v3738_v39 = vrot.slane %v3725_v8, %v12425_v26 }
0x1006   :  { %v3593_v60 = vpop.f32.mrf.mxu1 }
0x1008   :  { %v10595_v47 = vpop.f32.mrf.mxu1 }
0x1009   :  { %10648 = vrot.lane.b32.xlu1 %v10647_v13, %s12255_s12  ;;  %v3620_v13 = vsel %vm2279_vm1, %v12612_v46, %v10655_v57  ;;  %v11023_v46 = vld [vmem:[#allocation13 + $0x80] ss:$12 sps:$4 sm:$0xff]  }
0x100a   :  { %v3626_v14 = vpack.c.bf16 %v3621_v18, %v3620_v13 }
0x1077   :  { %v10644_v48 = vpop.permute.xlu1 %10643 }
0x1078   :  { %v10646_v32 = vunpack.i.h.bf16 %v10644_v48  ;;  %v10645_v52 = vunpack.i.l.bf16 %v10644_v48 }
0x107a   :  { %v3625_v11 = vsel %vm2279_vm1, %v12781_v55, %v10646_v32  ;;  %v3624_v6 = vsel %vm2279_vm1, %v12778_v27, %v10645_v52 }
0x107b   :  { %v12811_v40 = vpack.c.bf16 %v3625_v11, %v3624_v6  ;;  %v10649_v0 = vpop.permute.xlu1 %10648 }
0x107c   :  { %v10651_v3 = vunpack.i.h.bf16 %v10649_v0  ;;  %v10650_v49 = vunpack.i.l.bf16 %v10649_v0 }
0x107d   :  { %4202 = vmatmul.mubr.bf16.vlgmr.msra.gmra.mxu1 %v12811_v40 }
0x107e   :  { %10230 = vmatpush3.bf16.msra.mxu1 %v11018_v41  ;;  %v3622_v55 = vsel %vm2279_vm1, %v12686_v2, %v10650_v49  ;;  %v3623_v27 = vsel %vm2279_vm1, %v12690_v5, %v10651_v3  ;;  %v11026_v2 = vld [vmem:[#allocation13 + $0x68] ss:$12 sps:$4 sm:$0xff]   ;;  %v11027_v5 = vld [vmem:[#allocation13 + $0x200] ss:$12 sps:$4 sm:$0xff]  }
0x107f   :  { %10231 = vmatprep.subr.bf16.mxu1 %v11019_v1  ;;  %v3627_v7 = vpack.c.bf16 %v3623_v27, %v3622_v55 }
0x1081   :  { %4158 = vmatprep.mubr.bf16.mxu0 %v3627_v7  ;;  %4244 = vmatprep.mubr.bf16.mxu1 %v3627_v7 }
0x1082   :  { %10232 = vmatpush3.bf16.msra.mxu1 %v11020_v4  ;;  %4159 = vmatmul.mubr.bf16.vlgmr.msra.gmra.mxu0 %v3626_v14 }
0x1083   :  { %10597 = vmatpush3.bf16.msra.mxu0 %v11021_v10  ;;  %10233 = vmatprep.subr.bf16.mxu1 %v11022_v61  ;;  %v11041_v10 = vld [vmem:[#allocation19 + $0x2a0] ss:$48 sps:$4 sm:$0xff]   ;;  %v11043_v61 = vld [vmem:[#allocation19 + $0x2a4] ss:$48 sps:$4 sm:$0xff]  }
0x1084   :  { %10598 = vmatprep.subr.bf16.mxu0 %v12252_v16  ;;  %10612 = vmatprep.mubr.msk.bf16.mxu0 %vm12253_vm0, %v12252_v16 }
0x1086   :  { %10234 = vmatpush3.bf16.msra.mxu1 %v11023_v46  ;;  %v11044_v46 = vld [vmem:[#allocation19 + $0x240] ss:$48 sps:$4 sm:$0xff]  }
0x1087   :  { %10599 = vmatpush3.bf16.msra.mxu0 %v11024_v34  ;;  %10235 = vmatprep.subr.bf16.mxu1 %v11025_v15  ;;  %v11049_v34 = vld [vmem:[#allocation19 + $0x1e4] ss:$48 sps:$4 sm:$0xff]   ;;  %v11065_v15 = vld [vmem:[#allocation19 + $0x8a0] ss:$48 sps:$4 sm:$0xff]  }
0x1088   :  { %10600 = vmatprep.subr.bf16.mxu0 %v12252_v16 }
0x108a   :  { %10236 = vmatpush3.bf16.msra.mxu1 %v11026_v2  ;;  %v11067_v2 = vld [vmem:[#allocation19 + $0x8a4] ss:$48 sps:$4 sm:$0xff]  }
0x108b   :  { %10601 = vmatpush3.bf16.msra.mxu0 %v11027_v5  ;;  %10237 = vmatprep.subr.bf16.mxu1 %v11028_v17  ;;  %v11047_v5 = vld [vmem:[#allocation19 + $0x1e0] ss:$48 sps:$4 sm:$0xff]   ;;  %v11052_v17 = vld [vmem:[#allocation19 + $0x184] ss:$48 sps:$4 sm:$0xff]  }
0x108c   :  { %10602 = vmatprep.subr.bf16.mxu0 %v12252_v16 }
0x108e   :  { %10238 = vmatpush3.bf16.msra.mxu1 %v11029_v19  ;;  %v11050_v19 = vld [vmem:[#allocation19 + $0x180] ss:$48 sps:$4 sm:$0xff]  }
0x108f   :  { %10603 = vmatpush3.bf16.msra.mxu0 %v11030_v20  ;;  %10239 = vmatprep.subr.bf16.mxu1 %v11031_v29  ;;  %v11055_v20 = vld [vmem:[#allocation19 + $0x124] ss:$48 sps:$4 sm:$0xff]   ;;  %v11053_v29 = vld [vmem:[#allocation19 + $0x120] ss:$48 sps:$4 sm:$0xff]  }
0x1090   :  { %10604 = vmatprep.subr.bf16.mxu0 %v12252_v16 }
0x1092   :  { %10240 = vmatpush3.bf16.msra.mxu1 %v11032_v30  ;;  %v11058_v30 = vld [vmem:[#allocation19 + $0xc4] ss:$48 sps:$4 sm:$0xff]  }
0x1093   :  { %10605 = vmatpush3.bf16.msra.mxu0 %v11033_v35  ;;  %10241 = vmatprep.subr.bf16.mxu1 %v11034_v43  ;;  %v11056_v35 = vld [vmem:[#allocation19 + $0xc0] ss:$48 sps:$4 sm:$0xff]   ;;  %v11061_v43 = vld [vmem:[#allocation19 + $0x64] ss:$48 sps:$4 sm:$0xff]  }
0x1094   :  { %10606 = vmatprep.subr.bf16.mxu0 %v12252_v16 }
0x1096   :  { %10242 = vmatpush3.bf16.msra.mxu1 %v11035_v21  ;;  %v11059_v21 = vld [vmem:[#allocation19 + $0x60] ss:$48 sps:$4 sm:$0xff]  }
0x1097   :  { %10607 = vmatpush3.bf16.msra.mxu0 %v11036_v33  ;;  %10243 = vmatprep.subr.bf16.mxu1 %v11037_v23  ;;  %v11064_v33 = vld [vmem:[#allocation19 + $0x4] ss:$48 sps:$4 sm:$0xff]   ;;  %v11062_v23 = vld [vmem:[#allocation19] ss:$48 sps:$4 sm:$0xff]  }
0x1098   :  { %10608 = vmatprep.subr.bf16.mxu0 %v12252_v16 }
0x109a   :  { %10244 = vmatpush3.bf16.msra.mxu1 %v11038_v50  ;;  %v11070_v50 = vld [vmem:[#allocation19 + $0x5a4] ss:$48 sps:$4 sm:$0xff]  }
0x109b   :  { %10609 = vmatpush3.bf16.msra.mxu0 %v11039_v12  ;;  %6177 = vmatprep.subr.bf16.mxu1 %v11043_v61  ;;  %v11068_v12 = vld [vmem:[#allocation19 + $0x5a0] ss:$48 sps:$4 sm:$0xff]   ;;  %v11103_v61 = vld [vmem:[#allocation19 + $0x664] ss:$48 sps:$4 sm:$0xff]  }
0x109c   :  { %10610 = vmatprep.subr.bf16.mxu0 %v12252_v16 }
0x109d   :  { %4245 = vmatmul.mubr.bf16.vlgmr.msra.gmra.mxu1 %v3626_v14  ;;  %v11046_v14 = vld [vmem:[#allocation19 + $0x244] ss:$48 sps:$4 sm:$0xff]  }
0x109e   :  { %6178 = vmatpush1.bf16.msra.mxu1 %v11041_v10  ;;  %v11098_v10 = vld [vmem:[#allocation19 + $0x3c0] ss:$48 sps:$4 sm:$0xff]  }
0x109f   :  { %10611 = vmatpush3.bf16.msra.mxu0 %v11040_v51  ;;  %6179 = vmatprep.subr.bf16.mxu1 %v11046_v14  ;;  %v11106_v14 = vld [vmem:[#allocation19 + $0x364] ss:$48 sps:$4 sm:$0xff]  }
0x10a0   :  { %6220 = vmatprep.subr.bf16.mxu0 %v11067_v2  ;;  %v11112_v2 = vld [vmem:[#allocation19 + $0x304] ss:$48 sps:$4 sm:$0xff]  }
0x10a2   :  { %10613 = vmatmul.mubr.bf16.vlgmr.msra.gmra.mxu0 %v12811_v40  ;;  %6180 = vmatpush1.bf16.msra.mxu1 %v11044_v46  ;;  %v11101_v46 = vld [vmem:[#allocation19 + $0x660] ss:$48 sps:$4 sm:$0xff]  }
0x10a3   :  { %6252 = vmatprep.mubr.bf16.mxu0 %v12251_v9  ;;  %6181 = vmatprep.subr.bf16.mxu1 %v11049_v34  ;;  %v11104_v34 = vld [vmem:[#allocation19 + $0x360] ss:$48 sps:$4 sm:$0xff]  }
0x10a4   :  { %6221 = vmatpush1.bf16.msra.mxu0 %v11065_v15  ;;  %v11109_v15 = vld [vmem:[#allocation19 + $0x604] ss:$48 sps:$4 sm:$0xff]  }
0x10a6   :  { %6182 = vmatpush1.bf16.msra.mxu1 %v11047_v5  ;;  %v11107_v5 = vld [vmem:[#allocation19 + $0x600] ss:$48 sps:$4 sm:$0xff]  }
0x10a7   :  { %6183 = vmatprep.subr.bf16.mxu1 %v11052_v17  ;;  %v11110_v17 = vld [vmem:[#allocation19 + $0x300] ss:$48 sps:$4 sm:$0xff]  }
0x10aa   :  { %6184 = vmatpush1.bf16.msra.mxu1 %v11050_v19  ;;  %v11115_v19 = vld [vmem:[#allocation19 + $0x2ac] ss:$48 sps:$4 sm:$0xff]  }
0x10ab   :  { %6185 = vmatprep.subr.bf16.mxu1 %v11055_v20  ;;  %v11118_v20 = vld [vmem:[#allocation19 + $0x8ac] ss:$48 sps:$4 sm:$0xff]  }
0x10ae   :  { %6186 = vmatpush1.bf16.msra.mxu1 %v11053_v29 }
0x10af   :  { %6187 = vmatprep.subr.bf16.mxu1 %v11058_v30 }
0x10b2   :  { %6188 = vmatpush1.bf16.msra.mxu1 %v11056_v35 }
0x10b3   :  { %6189 = vmatprep.subr.bf16.mxu1 %v11061_v43 }
0x10b6   :  { %6190 = vmatpush1.bf16.msra.mxu1 %v11059_v21 }
0x10b7   :  { %6191 = vmatprep.subr.bf16.mxu1 %v11064_v33 }
0x10ba   :  { %6192 = vmatpush1.bf16.msra.mxu1 %v11062_v23  ;;  %v4294_v23 = vld [vmem:[#allocation16] sm:$0x7] }
0x10bb   :  { %6193 = vmatprep.subr.bf16.mxu1 %v11070_v50 }
0x10be   :  { %6194 = vmatpush2.bf16.msra.mxu1 %v11068_v12  ;;  %v4295_v12 = vld [vmem:[#allocation17] sm:$0x7] }
0x113d   :  { %v4203_v22 = vpop.f32.mrf.mxu1 }
0x113f   :  { %v4205_v53 = vpop.f32.mrf.mxu1 }
0x1141   :  { %v4207_v36 = vpop.f32.mrf.mxu1 }
0x1142   :  { %v4160_v54 = vpop.f32.mrf.mxu0 }
0x1143   :  { %v4209_v62 = vpop.f32.mrf.mxu1  ;;  %v4161_v42 = vadd.f32 %v4160_v54, %v3730_v58 }
0x1144   :  { %v4162_v31 = vpop.f32.mrf.mxu0 }
0x1145   :  { %v4163_v63 = vadd.f32 %v4162_v31, %v3734_v56  ;;  %v4204_v32 = vadd.f32 %v4203_v22, %v4161_v42 }
0x1146   :  { %v4164_v38 = vpop.f32.mrf.mxu0 }
0x1147   :  { %v12836_v60 = vadd.f32 %v4205_v53, %v4163_v63  ;;  %v4165_v52 = vadd.f32 %v4164_v38, %v3730_v58 }
0x1148   :  { %v4166_v16 = vpop.f32.mrf.mxu0 }
0x1149   :  { %v4167_v47 = vadd.f32 %v4166_v16, %v3734_v56  ;;  %v4296_v1 = vadd.f32 %v12836_v60, %v4204_v32  ;;  %v4208_v3 = vadd.f32 %v4207_v36, %v4165_v52  ;;  %v11076_v52 = vld [vmem:[#allocation19 + $0x544] ss:$48 sps:$4 sm:$0xff]  }
0x114a   :  { %6195 = vmatprep.subr.bf16.mxu1 %v11076_v52 }
0x114b   :  { %v12838_v6 = vadd.f32 %v4209_v62, %v4167_v47 }
0x114d   :  { %v4300_v4 = vadd.f32 %v12838_v6, %v4208_v3 }
0x115d   :  { %v10245_v44 = vpop.f32.mrf.mxu1 }
0x115f   :  { %v10246_v45 = vpop.f32.mrf.mxu1 }
0x1160   :  { %v10247_v59 = vadd.f32 %v10246_v45, %v10245_v44 }
0x1161   :  { %v10248_v48 = vpop.f32.mrf.mxu1 }
0x1162   :  { %v4247_v37 = vadd.f32 %v10247_v59, %v3738_v39  ;;  %v4287_v57 = vpop.f32.mrf.mxu0 }
0x1163   :  { %v10249_v11 = vpop.f32.mrf.mxu1 }
0x1164   :  { %v4288_v41 = vadd.f32 %v4287_v57, %v4247_v37  ;;  %v10250_v40 = vadd.f32 %v10249_v11, %v10248_v48  ;;  %v10614_v0 = vpop.f32.mrf.mxu0  ;;  %v11073_v48 = vld [vmem:[#allocation19 + $0x844] ss:$48 sps:$4 sm:$0xff]   ;;  %v11074_v37 = vld [vmem:[#allocation19 + $0x540] ss:$48 sps:$4 sm:$0xff]  }
0x1165   :  { %6222 = vmatprep.subr.bf16.mxu0 %v11073_v48  ;;  %6196 = vmatpush2.bf16.msra.mxu1 %v11074_v37  ;;  %v11079_v57 = vld [vmem:[#allocation19 + $0x7e4] ss:$48 sps:$4 sm:$0xff]   ;;  %v11077_v11 = vld [vmem:[#allocation19 + $0x7e0] ss:$48 sps:$4 sm:$0xff]  }
0x1166   :  { %v4250_v49 = vadd.f32 %v10250_v40, %v3738_v39  ;;  %v4290_v18 = vpop.f32.mrf.mxu0  ;;  %v4297_v13 = vadd.f32 %v4296_v1, %v4288_v41  ;;  %v11083_v40 = vld [vmem:[#allocation19 + $0x780] ss:$48 sps:$4 sm:$0xff]   ;;  %v11085_v0 = vld [vmem:[#allocation19 + $0x784] ss:$48 sps:$4 sm:$0xff]  }
0x1167   :  { %v11086_v1 = vld [vmem:[#allocation19 + $0x480] ss:$48 sps:$4 sm:$0xff]  }
0x1168   :  { %v4291_v55 = vadd.f32 %v4290_v18, %v4250_v49  ;;  %v10615_v27 = vpop.f32.mrf.mxu0  ;;  %4298 = vadd.xlane.f32.xlu1 %v4297_v13  ;;  %v11091_v49 = vld [vmem:[#allocation19 + $0x724] ss:$48 sps:$4 sm:$0xff]   ;;  %v11089_v13 = vld [vmem:[#allocation19 + $0x720] ss:$48 sps:$4 sm:$0xff]  }
0x1169   :  { %v11094_v18 = vld [vmem:[#allocation19 + $0x424] ss:$48 sps:$4 sm:$0xff]  }
0x116a   :  { %v4301_v7 = vadd.f32 %v4300_v4, %v4291_v55  ;;  %v11097_v27 = vld [vmem:[#allocation19 + $0x6c4] ss:$48 sps:$4 sm:$0xff]  }
0x116b   :  { %v11100_v4 = vld [vmem:[#allocation19 + $0x3c4] ss:$48 sps:$4 sm:$0xff]  }
0x116c   :  { %4302 = vadd.xlane.f32.xlu0 %v4301_v7  ;;  %v11095_v7 = vld [vmem:[#allocation19 + $0x6c0] ss:$48 sps:$4 sm:$0xff]  }
0x11f1   :  { %v4299_v51 = vpop.xlane.xlu1 %4298 }
0x11f2   :  { %v4304_v22 = vmul.f32 0.0026041667, %v4299_v51 }
0x11f4   :  { %v12842_v54 = vsub.f32 %v4204_v32, %v4304_v22  ;;  %v12845_v53 = vsub.f32 %v12836_v60, %v4304_v22  ;;  %v12847_v31 = vsub.f32 %v4288_v41, %v4304_v22  ;;  %v11071_v32 = vld [vmem:[#allocation19 + $0x840] ss:$48 sps:$4 sm:$0xff]   ;;  %v4346_v22 = vrot.slane %v4294_v23, %v12422_v25 }
0x11f5   :  { %v4303_v36 = vpop.xlane.xlu0 %4302  ;;  %6223 = vmatpush1.bf16.msra.mxu0 %v11071_v32  ;;  %v11080_v41 = vld [vmem:[#allocation19 + $0x4e0] ss:$48 sps:$4 sm:$0xff]  }
0x11f6   :  { %v4305_v8 = vmul.f32 0.0026041667, %v4303_v36  ;;  %v4312_v56 = vmul.f32 %v12842_v54, %v12842_v54  ;;  %v4313_v38 = vmul.f32 %v12845_v53, %v12845_v53  ;;  %v4314_v58 = vmul.f32 %v12847_v31, %v12847_v31  ;;  %6224 = vmatprep.subr.bf16.mxu0 %v11079_v57 }
0x11f8   :  { %v12855_v62 = vsub.f32 %v4208_v3, %v4305_v8  ;;  %v12858_v63 = vsub.f32 %v12838_v6, %v4305_v8  ;;  %v12860_v16 = vsub.f32 %v4291_v55, %v4305_v8  ;;  %v4318_v44 = vadd.f32 %v4313_v38, %v4312_v56  ;;  %v11082_v6 = vld [vmem:[#allocation19 + $0x4e4] ss:$48 sps:$4 sm:$0xff]   ;;  %v11092_v55 = vld [vmem:[#allocation19 + $0x420] ss:$48 sps:$4 sm:$0xff]  }
0x11f9   :  { %6197 = vmatprep.subr.bf16.mxu1 %v11082_v6  ;;  %6225 = vmatpush1.bf16.msra.mxu0 %v11077_v11  ;;  %v11088_v3 = vld [vmem:[#allocation19 + $0x484] ss:$48 sps:$4 sm:$0xff]   ;;  %v4350_v8 = vrot.slane %v4294_v23, %v12425_v26  ;;  %v4342_v38 = vrot.slane %v4294_v23, %v12428_v28  ;;  %v11113_v6 = vld [vmem:[#allocation19 + $0x2a8] ss:$48 sps:$4 sm:$0xff]  }
0x11fa   :  { %v4319_v42 = vadd.f32 %v4318_v44, %v4314_v58  ;;  %v4315_v39 = vmul.f32 %v12855_v62, %v12855_v62  ;;  %v4316_v45 = vmul.f32 %v12858_v63, %v12858_v63  ;;  %v4317_v60 = vmul.f32 %v12860_v16, %v12860_v16  ;;  %6198 = vmatpush2.bf16.msra.mxu1 %v11080_v41  ;;  %v11155_v23 = vld [vmem:[#allocation19 + $0x8] ss:$48 sps:$4 sm:$0xff]  }
0x11fb   :  { %6226 = vmatprep.subr.bf16.mxu0 %v11085_v0  ;;  %6199 = vmatprep.subr.bf16.mxu1 %v11088_v3  ;;  %v4368_v44 = vrot.slane %v4295_v12, %v12422_v25  ;;  %v11124_v3 = vld [vmem:[#allocation19 + $0x84c] ss:$48 sps:$4 sm:$0xff]  }
0x11fc   :  { %4320 = vadd.xlane.f32.xlu0 %v4319_v42  ;;  %v4322_v47 = vadd.f32 %v4316_v45, %v4315_v39  ;;  %v4372_v42 = vrot.slane %v4295_v12, %v12425_v26 }
0x11fd   :  { %6227 = vmatpush1.bf16.msra.mxu0 %v11083_v40 }
0x11fe   :  { %v4323_v59 = vadd.f32 %v4322_v47, %v4317_v60  ;;  %6200 = vmatpush2.bf16.msra.mxu1 %v11086_v1  ;;  %6228 = vmatprep.subr.bf16.mxu0 %v11091_v49  ;;  %v11119_v49 = vld [vmem:[#allocation19 + $0x248] ss:$48 sps:$4 sm:$0xff]  }
0x11ff   :  { %6201 = vmatprep.subr.bf16.mxu1 %v11094_v18  ;;  %v11122_v18 = vld [vmem:[#allocation19 + $0x848] ss:$48 sps:$4 sm:$0xff]  }
0x1200   :  { %4324 = vadd.xlane.f32.xlu0 %v4323_v59  ;;  %v4364_v59 = vrot.slane %v4295_v12, %v12428_v28  ;;  %v11163_v12 = vld [vmem:[#allocation19 + $0x5ac] ss:$48 sps:$4 sm:$0xff]  }
0x1201   :  { %6229 = vmatpush1.bf16.msra.mxu0 %v11089_v13  ;;  %v11127_v13 = vld [vmem:[#allocation19 + $0x1ec] ss:$48 sps:$4 sm:$0xff]  }
0x1202   :  { %6202 = vmatpush2.bf16.msra.mxu1 %v11092_v55  ;;  %6230 = vmatprep.subr.bf16.mxu0 %v11097_v27  ;;  %v11130_v55 = vld [vmem:[#allocation19 + $0x7ec] ss:$48 sps:$4 sm:$0xff]   ;;  %v11125_v27 = vld [vmem:[#allocation19 + $0x1e8] ss:$48 sps:$4 sm:$0xff]  }
0x1203   :  { %6203 = vmatprep.subr.bf16.mxu1 %v11100_v4  ;;  %v11128_v4 = vld [vmem:[#allocation19 + $0x7e8] ss:$48 sps:$4 sm:$0xff]  }
0x1205   :  { %6231 = vmatpush1.bf16.msra.mxu0 %v11095_v7  ;;  %v11133_v7 = vld [vmem:[#allocation19 + $0x18c] ss:$48 sps:$4 sm:$0xff]  }
0x1206   :  { %6204 = vmatpush2.bf16.msra.mxu1 %v11098_v10  ;;  %6232 = vmatprep.subr.bf16.mxu0 %v11103_v61  ;;  %v11136_v10 = vld [vmem:[#allocation19 + $0x78c] ss:$48 sps:$4 sm:$0xff]   ;;  %v11131_v61 = vld [vmem:[#allocation19 + $0x188] ss:$48 sps:$4 sm:$0xff]  }
0x1207   :  { %6205 = vmatprep.subr.bf16.mxu1 %v11106_v14  ;;  %v11134_v14 = vld [vmem:[#allocation19 + $0x788] ss:$48 sps:$4 sm:$0xff]  }
0x1209   :  { %6233 = vmatpush1.bf16.msra.mxu0 %v11101_v46  ;;  %v11139_v46 = vld [vmem:[#allocation19 + $0x12c] ss:$48 sps:$4 sm:$0xff]  }
0x120a   :  { %6206 = vmatpush2.bf16.msra.mxu1 %v11104_v34  ;;  %6234 = vmatprep.subr.bf16.mxu0 %v11109_v15  ;;  %v11142_v34 = vld [vmem:[#allocation19 + $0x72c] ss:$48 sps:$4 sm:$0xff]   ;;  %v11137_v15 = vld [vmem:[#allocation19 + $0x128] ss:$48 sps:$4 sm:$0xff]  }
0x120b   :  { %6207 = vmatprep.subr.bf16.mxu1 %v11112_v2  ;;  %v11140_v2 = vld [vmem:[#allocation19 + $0x728] ss:$48 sps:$4 sm:$0xff]  }
0x120d   :  { %6235 = vmatpush1.bf16.msra.mxu0 %v11107_v5  ;;  %v11145_v5 = vld [vmem:[#allocation19 + $0xcc] ss:$48 sps:$4 sm:$0xff]  }
0x120e   :  { %6208 = vmatpush2.bf16.msra.mxu1 %v11110_v17  ;;  %6263 = vmatprep.subr.bf16.mxu0 %v11115_v19  ;;  %v11148_v17 = vld [vmem:[#allocation19 + $0x6cc] ss:$48 sps:$4 sm:$0xff]   ;;  %v11143_v19 = vld [vmem:[#allocation19 + $0xc8] ss:$48 sps:$4 sm:$0xff]  }
0x120f   :  { %6306 = vmatprep.subr.bf16.mxu1 %v11118_v20  ;;  %v11146_v20 = vld [vmem:[#allocation19 + $0x6c8] ss:$48 sps:$4 sm:$0xff]  }
0x1285   :  { %v4321_v29 = vpop.xlane.xlu0 %4320 }
0x1286   :  { %v4326_v30 = vmul.f32 0.0026041667, %v4321_v29  ;;  %v11151_v29 = vld [vmem:[#allocation19 + $0x6c] ss:$48 sps:$4 sm:$0xff]  }
0x1288   :  { %v4328_v35 = vadd.f32 1e-05, %v4326_v30  ;;  %v11154_v30 = vld [vmem:[#allocation19 + $0x66c] ss:$48 sps:$4 sm:$0xff]  }
0x1289   :  { %v4325_v43 = vpop.xlane.xlu0 %4324 }
0x128a   :  { %11909 = vrsqrt.f32 %v4328_v35  ;;  %v4327_v21 = vmul.f32 0.0026041667, %v4325_v43  ;;  %v11149_v35 = vld [vmem:[#allocation19 + $0x68] ss:$48 sps:$4 sm:$0xff]  }
0x128b   :  { %v11152_v43 = vld [vmem:[#allocation19 + $0x668] ss:$48 sps:$4 sm:$0xff]  }
0x128c   :  { %v4329_v33 = vadd.f32 1e-05, %v4327_v21  ;;  %v11157_v21 = vld [vmem:[#allocation19 + $0xc] ss:$48 sps:$4 sm:$0xff]  }
0x128e   :  { %11911 = vrsqrt.f32 %v4329_v33  ;;  %v11160_v33 = vld [vmem:[#allocation19 + $0x60c] ss:$48 sps:$4 sm:$0xff]  }
0x1297   :  { %v11910_v50 = vpop.eup %11909 }
0x1298   :  { %v4333_v51 = vmul.f32 %v11910_v50, %v12845_v53  ;;  %v4334_v36 = vmul.f32 %v11910_v50, %v12847_v31  ;;  %v4332_v56 = vmul.f32 %v11910_v50, %v12842_v54  ;;  %v11158_v50 = vld [vmem:[#allocation19 + $0x608] ss:$48 sps:$4 sm:$0xff]  }
0x129a   :  { %v4355_v45 = vmul.f32 %v4346_v22, %v4333_v51  ;;  %v4356_v60 = vmul.f32 %v4350_v8, %v4334_v36  ;;  %v4354_v31 = vmul.f32 %v4342_v38, %v4332_v56  ;;  %v11166_v51 = vld [vmem:[#allocation19 + $0x2b4] ss:$48 sps:$4 sm:$0xff]   ;;  %v11164_v36 = vld [vmem:[#allocation19 + $0x2b0] ss:$48 sps:$4 sm:$0xff]  }
0x129b   :  { %v11912_v58 = vpop.eup %11911  ;;  %v11172_v56 = vld [vmem:[#allocation19 + $0x254] ss:$48 sps:$4 sm:$0xff]  }
0x129c   :  { %v4336_v39 = vmul.f32 %v11912_v58, %v12858_v63  ;;  %v4337_v53 = vmul.f32 %v11912_v58, %v12860_v16  ;;  %v4335_v47 = vmul.f32 %v11912_v58, %v12855_v62  ;;  %v4377_v52 = vadd.f32 %v4368_v44, %v4355_v45  ;;  %v11116_v16 = vld [vmem:[#allocation19 + $0x8a8] ss:$48 sps:$4 sm:$0xff]   ;;  %v11121_v62 = vld [vmem:[#allocation19 + $0x24c] ss:$48 sps:$4 sm:$0xff]   ;;  %v11170_v58 = vld [vmem:[#allocation19 + $0x250] ss:$48 sps:$4 sm:$0xff]  }
0x129d   :  { %v4378_v57 = vadd.f32 %v4372_v42, %v4356_v60  ;;  %v4376_v41 = vadd.f32 %v4364_v59, %v4354_v31  ;;  %v11176_v45 = vld [vmem:[#allocation19 + $0x1f0] ss:$48 sps:$4 sm:$0xff]   ;;  %v11184_v60 = vld [vmem:[#allocation19 + $0x194] ss:$48 sps:$4 sm:$0xff]  }
0x129e   :  { %v4358_v48 = vmul.f32 %v4346_v22, %v4336_v39  ;;  %v4359_v54 = vmul.f32 %v4350_v8, %v4337_v53  ;;  %v4357_v32 = vmul.f32 %v4342_v38, %v4335_v47  ;;  %v11161_v22 = vld [vmem:[#allocation19 + $0x5a8] ss:$48 sps:$4 sm:$0xff]   ;;  %v11169_v8 = vld [vmem:[#allocation19 + $0x54c] ss:$48 sps:$4 sm:$0xff]   ;;  %v11182_v31 = vld [vmem:[#allocation19 + $0x190] ss:$48 sps:$4 sm:$0xff]  }
0x129f   :  { %v11167_v38 = vld [vmem:[#allocation19 + $0x548] ss:$48 sps:$4 sm:$0xff]   ;;  %v11181_v53 = vld [vmem:[#allocation19 + $0x48c] ss:$48 sps:$4 sm:$0xff]  }
0x12a0   :  { %v4380_v37 = vadd.f32 %v4368_v44, %v4358_v48  ;;  %v4381_v11 = vadd.f32 %v4372_v42, %v4359_v54  ;;  %v4379_v40 = vadd.f32 %v4364_v59, %v4357_v32  ;;  %v11175_v44 = vld [vmem:[#allocation19 + $0x4ec] ss:$48 sps:$4 sm:$0xff]   ;;  %v11178_v42 = vld [vmem:[#allocation19 + $0x1f4] ss:$48 sps:$4 sm:$0xff]   ;;  %v11173_v39 = vld [vmem:[#allocation19 + $0x4e8] ss:$48 sps:$4 sm:$0xff]  }
0x12a1   :  { %v11179_v47 = vld [vmem:[#allocation19 + $0x488] ss:$48 sps:$4 sm:$0xff]   ;;  %v11187_v59 = vld [vmem:[#allocation19 + $0x42c] ss:$48 sps:$4 sm:$0xff]   ;;  %v11190_v48 = vld [vmem:[#allocation19 + $0x134] ss:$48 sps:$4 sm:$0xff]  }
0x12a2   :  { %v12880_v63 = vpack.c.bf16 %v4380_v37, %v4377_v52  ;;  %v12882_v0 = vpack.c.bf16 %v4381_v11, %v4378_v57  ;;  %v12884_v1 = vpack.c.bf16 %v4379_v40, %v4376_v41  ;;  %v11185_v54 = vld [vmem:[#allocation19 + $0x428] ss:$48 sps:$4 sm:$0xff]   ;;  %v11188_v32 = vld [vmem:[#allocation19 + $0x130] ss:$48 sps:$4 sm:$0xff]   ;;  %v11193_v52 = vld [vmem:[#allocation19 + $0x3cc] ss:$48 sps:$4 sm:$0xff]  }
0x12a3   :  { %v11196_v37 = vld [vmem:[#allocation19 + $0xd4] ss:$48 sps:$4 sm:$0xff]   ;;  %v11191_v57 = vld [vmem:[#allocation19 + $0x3c8] ss:$48 sps:$4 sm:$0xff]   ;;  %v11194_v11 = vld [vmem:[#allocation19 + $0xd0] ss:$48 sps:$4 sm:$0xff]  }
0x12a4   :  { %6209 = vmatprep.mubr.bf16.mxu1 %v12880_v63  ;;  %6253 = vmatmul.mubr.bf16.vlgmr.msra.gmra.mxu0 %v12882_v0  ;;  %v11202_v41 = vld [vmem:[#allocation19 + $0x74] ss:$48 sps:$4 sm:$0xff]   ;;  %v11197_v40 = vld [vmem:[#allocation19 + $0x368] ss:$48 sps:$4 sm:$0xff]  }
0x12a5   :  { %6264 = vmatpush1.bf16.msra.mxu0 %v11113_v6  ;;  %6210 = vmatmul.mubr.bf16.vlgmr.msra.gmra.mxu1 %v12884_v1  ;;  %v11199_v6 = vld [vmem:[#allocation19 + $0x36c] ss:$48 sps:$4 sm:$0xff]  }
0x12a6   :  { %6295 = vmatprep.mubr.bf16.mxu0 %v12880_v63  ;;  %6307 = vmatpush1.bf16.msra.mxu1 %v11116_v16  ;;  %v11200_v16 = vld [vmem:[#allocation19 + $0x70] ss:$48 sps:$4 sm:$0xff]  }
0x12a7   :  { %6265 = vmatprep.subr.bf16.mxu0 %v11121_v62  ;;  %6308 = vmatprep.subr.bf16.mxu1 %v11124_v3  ;;  %v11205_v62 = vld [vmem:[#allocation19 + $0x30c] ss:$48 sps:$4 sm:$0xff]   ;;  %v11208_v3 = vld [vmem:[#allocation19 + $0x14] ss:$48 sps:$4 sm:$0xff]  }
0x12a8   :  { %6338 = vmatprep.mubr.bf16.mxu1 %v12251_v9 }
0x12a9   :  { %6266 = vmatpush1.bf16.msra.mxu0 %v11119_v49  ;;  %v11203_v49 = vld [vmem:[#allocation19 + $0x308] ss:$48 sps:$4 sm:$0xff]  }
0x12aa   :  { %6309 = vmatpush1.bf16.msra.mxu1 %v11122_v18  ;;  %6267 = vmatprep.subr.bf16.mxu0 %v11127_v13  ;;  %v11206_v18 = vld [vmem:[#allocation19 + $0x10] ss:$48 sps:$4 sm:$0xff]   ;;  %v11211_v13 = vld [vmem:[#allocation19 + $0x8b4] ss:$48 sps:$4 sm:$0xff]  }
0x12ab   :  { %6310 = vmatprep.subr.bf16.mxu1 %v11130_v55  ;;  %v11214_v55 = vld [vmem:[#allocation19 + $0x5b4] ss:$48 sps:$4 sm:$0xff]  }
0x12ad   :  { %6268 = vmatpush1.bf16.msra.mxu0 %v11125_v27  ;;  %v11209_v27 = vld [vmem:[#allocation19 + $0x8b0] ss:$48 sps:$4 sm:$0xff]  }
0x12ae   :  { %6311 = vmatpush1.bf16.msra.mxu1 %v11128_v4  ;;  %6269 = vmatprep.subr.bf16.mxu0 %v11133_v7  ;;  %v11212_v4 = vld [vmem:[#allocation19 + $0x5b0] ss:$48 sps:$4 sm:$0xff]   ;;  %v11217_v7 = vld [vmem:[#allocation19 + $0x854] ss:$48 sps:$4 sm:$0xff]  }
0x12af   :  { %6312 = vmatprep.subr.bf16.mxu1 %v11136_v10  ;;  %v11220_v10 = vld [vmem:[#allocation19 + $0x554] ss:$48 sps:$4 sm:$0xff]  }
0x12b1   :  { %6270 = vmatpush1.bf16.msra.mxu0 %v11131_v61  ;;  %v11215_v61 = vld [vmem:[#allocation19 + $0x850] ss:$48 sps:$4 sm:$0xff]  }
0x12b2   :  { %6313 = vmatpush1.bf16.msra.mxu1 %v11134_v14  ;;  %6271 = vmatprep.subr.bf16.mxu0 %v11139_v46  ;;  %v11218_v14 = vld [vmem:[#allocation19 + $0x550] ss:$48 sps:$4 sm:$0xff]   ;;  %v11223_v46 = vld [vmem:[#allocation19 + $0x7f4] ss:$48 sps:$4 sm:$0xff]  }
0x12b3   :  { %6314 = vmatprep.subr.bf16.mxu1 %v11142_v34  ;;  %v11226_v34 = vld [vmem:[#allocation19 + $0x4f4] ss:$48 sps:$4 sm:$0xff]  }
0x12b5   :  { %6272 = vmatpush1.bf16.msra.mxu0 %v11137_v15  ;;  %v11221_v15 = vld [vmem:[#allocation19 + $0x7f0] ss:$48 sps:$4 sm:$0xff]  }
0x12b6   :  { %6315 = vmatpush1.bf16.msra.mxu1 %v11140_v2  ;;  %6273 = vmatprep.subr.bf16.mxu0 %v11145_v5  ;;  %v11224_v2 = vld [vmem:[#allocation19 + $0x4f0] ss:$48 sps:$4 sm:$0xff]   ;;  %v11229_v5 = vld [vmem:[#allocation19 + $0x794] ss:$48 sps:$4 sm:$0xff]  }
0x12b7   :  { %6316 = vmatprep.subr.bf16.mxu1 %v11148_v17  ;;  %v11232_v17 = vld [vmem:[#allocation19 + $0x494] ss:$48 sps:$4 sm:$0xff]  }
0x12b9   :  { %6274 = vmatpush1.bf16.msra.mxu0 %v11143_v19  ;;  %v11227_v19 = vld [vmem:[#allocation19 + $0x790] ss:$48 sps:$4 sm:$0xff]  }
0x12ba   :  { %6317 = vmatpush1.bf16.msra.mxu1 %v11146_v20  ;;  %6275 = vmatprep.subr.bf16.mxu0 %v11151_v29  ;;  %v11230_v20 = vld [vmem:[#allocation19 + $0x490] ss:$48 sps:$4 sm:$0xff]   ;;  %v11235_v29 = vld [vmem:[#allocation19 + $0x734] ss:$48 sps:$4 sm:$0xff]  }
0x12bb   :  { %6318 = vmatprep.subr.bf16.mxu1 %v11154_v30  ;;  %v11238_v30 = vld [vmem:[#allocation19 + $0x434] ss:$48 sps:$4 sm:$0xff]  }
0x12bd   :  { %6276 = vmatpush1.bf16.msra.mxu0 %v11149_v35  ;;  %v11233_v35 = vld [vmem:[#allocation19 + $0x730] ss:$48 sps:$4 sm:$0xff]  }
0x12be   :  { %6319 = vmatpush1.bf16.msra.mxu1 %v11152_v43  ;;  %6277 = vmatprep.subr.bf16.mxu0 %v11157_v21  ;;  %v11236_v43 = vld [vmem:[#allocation19 + $0x430] ss:$48 sps:$4 sm:$0xff]   ;;  %v11241_v21 = vld [vmem:[#allocation19 + $0x6d4] ss:$48 sps:$4 sm:$0xff]  }
0x12bf   :  { %6320 = vmatprep.subr.bf16.mxu1 %v11160_v33  ;;  %v11244_v33 = vld [vmem:[#allocation19 + $0x3d4] ss:$48 sps:$4 sm:$0xff]  }
0x12c1   :  { %6278 = vmatpush1.bf16.msra.mxu0 %v11155_v23  ;;  %v11239_v23 = vld [vmem:[#allocation19 + $0x6d0] ss:$48 sps:$4 sm:$0xff]  }
0x12c2   :  { %6321 = vmatpush1.bf16.msra.mxu1 %v11158_v50  ;;  %6279 = vmatprep.subr.bf16.mxu0 %v11163_v12  ;;  %v11242_v50 = vld [vmem:[#allocation19 + $0x3d0] ss:$48 sps:$4 sm:$0xff]   ;;  %v11247_v12 = vld [vmem:[#allocation19 + $0x674] ss:$48 sps:$4 sm:$0xff]  }
0x12c3   :  { %6349 = vmatprep.subr.bf16.mxu1 %v11166_v51  ;;  %v11250_v51 = vld [vmem:[#allocation19 + $0x374] ss:$48 sps:$4 sm:$0xff]  }
0x12c5   :  { %6280 = vmatpush2.bf16.msra.mxu0 %v11161_v22  ;;  %6339 = vmatmul.mubr.bf16.vlgmr.msra.gmra.mxu1 %v12882_v0  ;;  %v11245_v22 = vld [vmem:[#allocation19 + $0x670] ss:$48 sps:$4 sm:$0xff]  }
0x12c6   :  { %6350 = vmatpush1.bf16.msra.mxu1 %v11164_v36  ;;  %6381 = vmatprep.mubr.bf16.mxu1 %v12880_v63  ;;  %v11248_v36 = vld [vmem:[#allocation19 + $0x370] ss:$48 sps:$4 sm:$0xff]  }
0x12c7   :  { %6281 = vmatprep.subr.bf16.mxu0 %v11169_v8  ;;  %6351 = vmatprep.subr.bf16.mxu1 %v11172_v56  ;;  %v11253_v8 = vld [vmem:[#allocation19 + $0x614] ss:$48 sps:$4 sm:$0xff]  }
0x12c8   :  { %v11256_v56 = vld [vmem:[#allocation19 + $0x314] ss:$48 sps:$4 sm:$0xff]  }
0x12c9   :  { %6282 = vmatpush2.bf16.msra.mxu0 %v11167_v38  ;;  %v11251_v38 = vld [vmem:[#allocation19 + $0x610] ss:$48 sps:$4 sm:$0xff]  }
0x12ca   :  { %6352 = vmatpush1.bf16.msra.mxu1 %v11170_v58  ;;  %6283 = vmatprep.subr.bf16.mxu0 %v11175_v44  ;;  %v11254_v58 = vld [vmem:[#allocation19 + $0x310] ss:$48 sps:$4 sm:$0xff]   ;;  %v11259_v44 = vld [vmem:[#allocation19 + $0x2bc] ss:$48 sps:$4 sm:$0xff]  }
0x12cb   :  { %6353 = vmatprep.subr.bf16.mxu1 %v11178_v42  ;;  %v11262_v42 = vld [vmem:[#allocation19 + $0x8bc] ss:$48 sps:$4 sm:$0xff]  }
0x12cd   :  { %6284 = vmatpush2.bf16.msra.mxu0 %v11173_v39  ;;  %v11257_v39 = vld [vmem:[#allocation19 + $0x2b8] ss:$48 sps:$4 sm:$0xff]  }
0x12ce   :  { %6354 = vmatpush1.bf16.msra.mxu1 %v11176_v45  ;;  %6285 = vmatprep.subr.bf16.mxu0 %v11181_v53  ;;  %v11260_v45 = vld [vmem:[#allocation19 + $0x8b8] ss:$48 sps:$4 sm:$0xff]   ;;  %v11265_v53 = vld [vmem:[#allocation19 + $0x25c] ss:$48 sps:$4 sm:$0xff]  }
0x12cf   :  { %6355 = vmatprep.subr.bf16.mxu1 %v11184_v60  ;;  %v11268_v60 = vld [vmem:[#allocation19 + $0x85c] ss:$48 sps:$4 sm:$0xff]  }
0x12d1   :  { %6286 = vmatpush2.bf16.msra.mxu0 %v11179_v47  ;;  %v11263_v47 = vld [vmem:[#allocation19 + $0x258] ss:$48 sps:$4 sm:$0xff]  }
0x12d2   :  { %6356 = vmatpush1.bf16.msra.mxu1 %v11182_v31  ;;  %6287 = vmatprep.subr.bf16.mxu0 %v11187_v59  ;;  %v11266_v31 = vld [vmem:[#allocation19 + $0x858] ss:$48 sps:$4 sm:$0xff]   ;;  %v11271_v59 = vld [vmem:[#allocation19 + $0x1fc] ss:$48 sps:$4 sm:$0xff]  }
0x12d3   :  { %6357 = vmatprep.subr.bf16.mxu1 %v11190_v48  ;;  %v11274_v48 = vld [vmem:[#allocation19 + $0x7fc] ss:$48 sps:$4 sm:$0xff]  }
0x12d5   :  { %6288 = vmatpush2.bf16.msra.mxu0 %v11185_v54  ;;  %v11269_v54 = vld [vmem:[#allocation19 + $0x1f8] ss:$48 sps:$4 sm:$0xff]  }
0x12d6   :  { %6358 = vmatpush1.bf16.msra.mxu1 %v11188_v32  ;;  %6289 = vmatprep.subr.bf16.mxu0 %v11193_v52  ;;  %v11272_v32 = vld [vmem:[#allocation19 + $0x7f8] ss:$48 sps:$4 sm:$0xff]   ;;  %v11277_v52 = vld [vmem:[#allocation19 + $0x19c] ss:$48 sps:$4 sm:$0xff]  }
0x12d7   :  { %6359 = vmatprep.subr.bf16.mxu1 %v11196_v37  ;;  %v11280_v37 = vld [vmem:[#allocation19 + $0x79c] ss:$48 sps:$4 sm:$0xff]  }
0x12d9   :  { %6290 = vmatpush2.bf16.msra.mxu0 %v11191_v57  ;;  %v11275_v57 = vld [vmem:[#allocation19 + $0x198] ss:$48 sps:$4 sm:$0xff]  }
0x12da   :  { %6360 = vmatpush1.bf16.msra.mxu1 %v11194_v11  ;;  %6291 = vmatprep.subr.bf16.mxu0 %v11199_v6  ;;  %v11278_v11 = vld [vmem:[#allocation19 + $0x798] ss:$48 sps:$4 sm:$0xff]   ;;  %v11283_v6 = vld [vmem:[#allocation19 + $0x13c] ss:$48 sps:$4 sm:$0xff]  }
0x12db   :  { %6361 = vmatprep.subr.bf16.mxu1 %v11202_v41  ;;  %v11286_v41 = vld [vmem:[#allocation19 + $0x73c] ss:$48 sps:$4 sm:$0xff]  }
0x12dd   :  { %6292 = vmatpush2.bf16.msra.mxu0 %v11197_v40  ;;  %v11281_v40 = vld [vmem:[#allocation19 + $0x138] ss:$48 sps:$4 sm:$0xff]  }
0x12de   :  { %6362 = vmatpush1.bf16.msra.mxu1 %v11200_v16  ;;  %6293 = vmatprep.subr.bf16.mxu0 %v11205_v62  ;;  %v11284_v16 = vld [vmem:[#allocation19 + $0x738] ss:$48 sps:$4 sm:$0xff]   ;;  %v11289_v62 = vld [vmem:[#allocation19 + $0xdc] ss:$48 sps:$4 sm:$0xff]  }
0x12df   :  { %6363 = vmatprep.subr.bf16.mxu1 %v11208_v3  ;;  %v11292_v3 = vld [vmem:[#allocation19 + $0x6dc] ss:$48 sps:$4 sm:$0xff]  }
0x12e1   :  { %6294 = vmatpush2.bf16.msra.mxu0 %v11203_v49  ;;  %v11287_v49 = vld [vmem:[#allocation19 + $0xd8] ss:$48 sps:$4 sm:$0xff]  }
0x12e2   :  { %6364 = vmatpush1.bf16.msra.mxu1 %v11206_v18  ;;  %6392 = vmatprep.subr.bf16.mxu0 %v11211_v13  ;;  %v11290_v18 = vld [vmem:[#allocation19 + $0x6d8] ss:$48 sps:$4 sm:$0xff]   ;;  %v11295_v13 = vld [vmem:[#allocation19 + $0x7c] ss:$48 sps:$4 sm:$0xff]  }
0x12e3   :  { %6365 = vmatprep.subr.bf16.mxu1 %v11214_v55  ;;  %v11298_v55 = vld [vmem:[#allocation19 + $0x67c] ss:$48 sps:$4 sm:$0xff]  }
0x12e4   :  { %6296 = vmatmul.mubr.bf16.vlgmr.msra.gmra.mxu0 %v12884_v1 }
0x12e5   :  { %6393 = vmatpush1.bf16.msra.mxu0 %v11209_v27  ;;  %6424 = vmatprep.mubr.bf16.mxu0 %v12251_v9  ;;  %v11293_v27 = vld [vmem:[#allocation19 + $0x78] ss:$48 sps:$4 sm:$0xff]  }
0x12e6   :  { %6366 = vmatpush2.bf16.msra.mxu1 %v11212_v4  ;;  %6394 = vmatprep.subr.bf16.mxu0 %v11217_v7  ;;  %v11296_v4 = vld [vmem:[#allocation19 + $0x678] ss:$48 sps:$4 sm:$0xff]   ;;  %v11301_v7 = vld [vmem:[#allocation19 + $0x1c] ss:$48 sps:$4 sm:$0xff]  }
0x12e7   :  { %6367 = vmatprep.subr.bf16.mxu1 %v11220_v10  ;;  %v11304_v10 = vld [vmem:[#allocation19 + $0x61c] ss:$48 sps:$4 sm:$0xff]  }
0x12e9   :  { %6395 = vmatpush1.bf16.msra.mxu0 %v11215_v61  ;;  %v11299_v61 = vld [vmem:[#allocation19 + $0x18] ss:$48 sps:$4 sm:$0xff]  }
0x12ea   :  { %6368 = vmatpush2.bf16.msra.mxu1 %v11218_v14  ;;  %6396 = vmatprep.subr.bf16.mxu0 %v11223_v46  ;;  %v11302_v14 = vld [vmem:[#allocation19 + $0x618] ss:$48 sps:$4 sm:$0xff]   ;;  %v11307_v46 = vld [vmem:[#allocation19 + $0x5bc] ss:$48 sps:$4 sm:$0xff]  }
0x12eb   :  { %6369 = vmatprep.subr.bf16.mxu1 %v11226_v34  ;;  %v11310_v34 = vld [vmem:[#allocation19 + $0x2c4] ss:$48 sps:$4 sm:$0xff]  }
0x12ed   :  { %6397 = vmatpush1.bf16.msra.mxu0 %v11221_v15  ;;  %v11305_v15 = vld [vmem:[#allocation19 + $0x5b8] ss:$48 sps:$4 sm:$0xff]  }
0x12ee   :  { %6370 = vmatpush2.bf16.msra.mxu1 %v11224_v2  ;;  %6398 = vmatprep.subr.bf16.mxu0 %v11229_v5  ;;  %v11308_v2 = vld [vmem:[#allocation19 + $0x2c0] ss:$48 sps:$4 sm:$0xff]   ;;  %v11313_v5 = vld [vmem:[#allocation19 + $0x55c] ss:$48 sps:$4 sm:$0xff]  }
0x12ef   :  { %6371 = vmatprep.subr.bf16.mxu1 %v11232_v17  ;;  %v11316_v17 = vld [vmem:[#allocation19 + $0x264] ss:$48 sps:$4 sm:$0xff]  }
0x12f1   :  { %6399 = vmatpush1.bf16.msra.mxu0 %v11227_v19  ;;  %v11311_v19 = vld [vmem:[#allocation19 + $0x558] ss:$48 sps:$4 sm:$0xff]  }
0x12f2   :  { %6372 = vmatpush2.bf16.msra.mxu1 %v11230_v20  ;;  %6400 = vmatprep.subr.bf16.mxu0 %v11235_v29  ;;  %v11314_v20 = vld [vmem:[#allocation19 + $0x260] ss:$48 sps:$4 sm:$0xff]   ;;  %v11319_v29 = vld [vmem:[#allocation19 + $0x4fc] ss:$48 sps:$4 sm:$0xff]  }
0x12f3   :  { %6373 = vmatprep.subr.bf16.mxu1 %v11238_v30  ;;  %v11322_v30 = vld [vmem:[#allocation19 + $0x204] ss:$48 sps:$4 sm:$0xff]  }
0x12f5   :  { %6401 = vmatpush1.bf16.msra.mxu0 %v11233_v35  ;;  %v11317_v35 = vld [vmem:[#allocation19 + $0x4f8] ss:$48 sps:$4 sm:$0xff]  }
0x12f6   :  { %6374 = vmatpush2.bf16.msra.mxu1 %v11236_v43  ;;  %6402 = vmatprep.subr.bf16.mxu0 %v11241_v21  ;;  %v11320_v43 = vld [vmem:[#allocation19 + $0x200] ss:$48 sps:$4 sm:$0xff]   ;;  %v11325_v21 = vld [vmem:[#allocation19 + $0x49c] ss:$48 sps:$4 sm:$0xff]  }
0x12f7   :  { %6375 = vmatprep.subr.bf16.mxu1 %v11244_v33  ;;  %v11328_v33 = vld [vmem:[#allocation19 + $0x1a4] ss:$48 sps:$4 sm:$0xff]  }
0x12f9   :  { %6403 = vmatpush1.bf16.msra.mxu0 %v11239_v23  ;;  %v11323_v23 = vld [vmem:[#allocation19 + $0x498] ss:$48 sps:$4 sm:$0xff]  }
0x12fa   :  { %6376 = vmatpush2.bf16.msra.mxu1 %v11242_v50  ;;  %6404 = vmatprep.subr.bf16.mxu0 %v11247_v12  ;;  %v11326_v50 = vld [vmem:[#allocation19 + $0x1a0] ss:$48 sps:$4 sm:$0xff]   ;;  %v11331_v12 = vld [vmem:[#allocation19 + $0x43c] ss:$48 sps:$4 sm:$0xff]  }
0x12fb   :  { %6377 = vmatprep.subr.bf16.mxu1 %v11250_v51  ;;  %v11334_v51 = vld [vmem:[#allocation19 + $0x144] ss:$48 sps:$4 sm:$0xff]  }
0x12fd   :  { %6405 = vmatpush1.bf16.msra.mxu0 %v11245_v22  ;;  %v11329_v22 = vld [vmem:[#allocation19 + $0x438] ss:$48 sps:$4 sm:$0xff]  }
0x12fe   :  { %6378 = vmatpush2.bf16.msra.mxu1 %v11248_v36  ;;  %6406 = vmatprep.subr.bf16.mxu0 %v11253_v8  ;;  %v11332_v36 = vld [vmem:[#allocation19 + $0x140] ss:$48 sps:$4 sm:$0xff]   ;;  %v11337_v8 = vld [vmem:[#allocation19 + $0x3dc] ss:$48 sps:$4 sm:$0xff]  }
0x12ff   :  { %6379 = vmatprep.subr.bf16.mxu1 %v11256_v56  ;;  %v11340_v56 = vld [vmem:[#allocation19 + $0xe4] ss:$48 sps:$4 sm:$0xff]  }
0x1301   :  { %6407 = vmatpush1.bf16.msra.mxu0 %v11251_v38  ;;  %v11335_v38 = vld [vmem:[#allocation19 + $0x3d8] ss:$48 sps:$4 sm:$0xff]  }
0x1302   :  { %6380 = vmatpush2.bf16.msra.mxu1 %v11254_v58  ;;  %6435 = vmatprep.subr.bf16.mxu0 %v11259_v44  ;;  %v11338_v58 = vld [vmem:[#allocation19 + $0xe0] ss:$48 sps:$4 sm:$0xff]   ;;  %v11343_v44 = vld [vmem:[#allocation19 + $0x37c] ss:$48 sps:$4 sm:$0xff]  }
0x1303   :  { %6478 = vmatprep.subr.bf16.mxu1 %v11262_v42  ;;  %v11346_v42 = vld [vmem:[#allocation19 + $0x84] ss:$48 sps:$4 sm:$0xff]  }
0x1304   :  { %6425 = vmatmul.mubr.bf16.vlgmr.msra.gmra.mxu0 %v12882_v0 }
0x1305   :  { %6382 = vmatmul.mubr.bf16.vlgmr.msra.gmra.mxu1 %v12884_v1  ;;  %6436 = vmatpush1.bf16.msra.mxu0 %v11257_v39  ;;  %v11341_v39 = vld [vmem:[#allocation19 + $0x378] ss:$48 sps:$4 sm:$0xff]  }
0x1306   :  { %6467 = vmatprep.mubr.bf16.mxu0 %v12880_v63  ;;  %6479 = vmatpush1.bf16.msra.mxu1 %v11260_v45  ;;  %v11344_v45 = vld [vmem:[#allocation19 + $0x80] ss:$48 sps:$4 sm:$0xff]  }
0x1307   :  { %6437 = vmatprep.subr.bf16.mxu0 %v11265_v53  ;;  %6480 = vmatprep.subr.bf16.mxu1 %v11268_v60  ;;  %v11349_v53 = vld [vmem:[#allocation19 + $0x31c] ss:$48 sps:$4 sm:$0xff]   ;;  %v11352_v60 = vld [vmem:[#allocation19 + $0x24] ss:$48 sps:$4 sm:$0xff]  }
0x1308   :  { %6510 = vmatprep.mubr.bf16.mxu1 %v12251_v9 }
0x1309   :  { %6438 = vmatpush1.bf16.msra.mxu0 %v11263_v47  ;;  %v11347_v47 = vld [vmem:[#allocation19 + $0x318] ss:$48 sps:$4 sm:$0xff]  }
0x130a   :  { %6481 = vmatpush1.bf16.msra.mxu1 %v11266_v31  ;;  %6439 = vmatprep.subr.bf16.mxu0 %v11271_v59  ;;  %v11350_v31 = vld [vmem:[#allocation19 + $0x20] ss:$48 sps:$4 sm:$0xff]   ;;  %v11355_v59 = vld [vmem:[#allocation19 + $0x8c4] ss:$48 sps:$4 sm:$0xff]  }
0x130b   :  { %6482 = vmatprep.subr.bf16.mxu1 %v11274_v48  ;;  %v11358_v48 = vld [vmem:[#allocation19 + $0x5c4] ss:$48 sps:$4 sm:$0xff]  }
0x130d   :  { %6440 = vmatpush1.bf16.msra.mxu0 %v11269_v54  ;;  %v11353_v54 = vld [vmem:[#allocation19 + $0x8c0] ss:$48 sps:$4 sm:$0xff]  }
0x130e   :  { %6483 = vmatpush1.bf16.msra.mxu1 %v11272_v32  ;;  %6441 = vmatprep.subr.bf16.mxu0 %v11277_v52  ;;  %v11356_v32 = vld [vmem:[#allocation19 + $0x5c0] ss:$48 sps:$4 sm:$0xff]   ;;  %v11361_v52 = vld [vmem:[#allocation19 + $0x864] ss:$48 sps:$4 sm:$0xff]  }
0x130f   :  { %6484 = vmatprep.subr.bf16.mxu1 %v11280_v37  ;;  %v11364_v37 = vld [vmem:[#allocation19 + $0x564] ss:$48 sps:$4 sm:$0xff]  }
0x1311   :  { %6442 = vmatpush1.bf16.msra.mxu0 %v11275_v57  ;;  %v11359_v57 = vld [vmem:[#allocation19 + $0x860] ss:$48 sps:$4 sm:$0xff]  }
0x1312   :  { %6485 = vmatpush1.bf16.msra.mxu1 %v11278_v11  ;;  %6443 = vmatprep.subr.bf16.mxu0 %v11283_v6  ;;  %v11362_v11 = vld [vmem:[#allocation19 + $0x560] ss:$48 sps:$4 sm:$0xff]   ;;  %v11367_v6 = vld [vmem:[#allocation19 + $0x804] ss:$48 sps:$4 sm:$0xff]  }
0x1313   :  { %6486 = vmatprep.subr.bf16.mxu1 %v11286_v41  ;;  %v11370_v41 = vld [vmem:[#allocation19 + $0x504] ss:$48 sps:$4 sm:$0xff]  }
0x1315   :  { %6444 = vmatpush1.bf16.msra.mxu0 %v11281_v40  ;;  %v11365_v40 = vld [vmem:[#allocation19 + $0x800] ss:$48 sps:$4 sm:$0xff]  }
0x1316   :  { %6487 = vmatpush1.bf16.msra.mxu1 %v11284_v16  ;;  %6445 = vmatprep.subr.bf16.mxu0 %v11289_v62  ;;  %v11368_v16 = vld [vmem:[#allocation19 + $0x500] ss:$48 sps:$4 sm:$0xff]   ;;  %v11373_v62 = vld [vmem:[#allocation19 + $0x7a4] ss:$48 sps:$4 sm:$0xff]  }
0x1317   :  { %6488 = vmatprep.subr.bf16.mxu1 %v11292_v3  ;;  %v11376_v3 = vld [vmem:[#allocation19 + $0x4a4] ss:$48 sps:$4 sm:$0xff]  }
0x1319   :  { %6446 = vmatpush1.bf16.msra.mxu0 %v11287_v49  ;;  %v11371_v49 = vld [vmem:[#allocation19 + $0x7a0] ss:$48 sps:$4 sm:$0xff]  }
0x131a   :  { %6489 = vmatpush1.bf16.msra.mxu1 %v11290_v18  ;;  %6447 = vmatprep.subr.bf16.mxu0 %v11295_v13  ;;  %v11374_v18 = vld [vmem:[#allocation19 + $0x4a0] ss:$48 sps:$4 sm:$0xff]   ;;  %v11379_v13 = vld [vmem:[#allocation19 + $0x744] ss:$48 sps:$4 sm:$0xff]  }
0x131b   :  { %6490 = vmatprep.subr.bf16.mxu1 %v11298_v55  ;;  %v11382_v55 = vld [vmem:[#allocation19 + $0x444] ss:$48 sps:$4 sm:$0xff]  }
0x131d   :  { %6448 = vmatpush1.bf16.msra.mxu0 %v11293_v27  ;;  %v11377_v27 = vld [vmem:[#allocation19 + $0x740] ss:$48 sps:$4 sm:$0xff]  }
0x131e   :  { %6491 = vmatpush1.bf16.msra.mxu1 %v11296_v4  ;;  %6449 = vmatprep.subr.bf16.mxu0 %v11301_v7  ;;  %v11380_v4 = vld [vmem:[#allocation19 + $0x440] ss:$48 sps:$4 sm:$0xff]   ;;  %v11385_v7 = vld [vmem:[#allocation19 + $0x6e4] ss:$48 sps:$4 sm:$0xff]  }
0x131f   :  { %6492 = vmatprep.subr.bf16.mxu1 %v11304_v10  ;;  %v11388_v10 = vld [vmem:[#allocation19 + $0x3e4] ss:$48 sps:$4 sm:$0xff]  }
0x1321   :  { %6450 = vmatpush1.bf16.msra.mxu0 %v11299_v61  ;;  %v11383_v61 = vld [vmem:[#allocation19 + $0x6e0] ss:$48 sps:$4 sm:$0xff]  }
0x1322   :  { %6493 = vmatpush1.bf16.msra.mxu1 %v11302_v14  ;;  %6451 = vmatprep.subr.bf16.mxu0 %v11307_v46  ;;  %v11386_v14 = vld [vmem:[#allocation19 + $0x3e0] ss:$48 sps:$4 sm:$0xff]   ;;  %v11391_v46 = vld [vmem:[#allocation19 + $0x684] ss:$48 sps:$4 sm:$0xff]  }
0x1323   :  { %6521 = vmatprep.subr.bf16.mxu1 %v11310_v34  ;;  %v11394_v34 = vld [vmem:[#allocation19 + $0x384] ss:$48 sps:$4 sm:$0xff]  }
0x1325   :  { %6452 = vmatpush2.bf16.msra.mxu0 %v11305_v15  ;;  %6511 = vmatmul.mubr.bf16.vlgmr.msra.gmra.mxu1 %v12882_v0  ;;  %v11389_v15 = vld [vmem:[#allocation19 + $0x680] ss:$48 sps:$4 sm:$0xff]  }
0x1326   :  { %6522 = vmatpush1.bf16.msra.mxu1 %v11308_v2  ;;  %6553 = vmatprep.mubr.bf16.mxu1 %v12880_v63  ;;  %v11392_v2 = vld [vmem:[#allocation19 + $0x380] ss:$48 sps:$4 sm:$0xff]  }
0x1327   :  { %6453 = vmatprep.subr.bf16.mxu0 %v11313_v5  ;;  %6523 = vmatprep.subr.bf16.mxu1 %v11316_v17  ;;  %v11397_v5 = vld [vmem:[#allocation19 + $0x624] ss:$48 sps:$4 sm:$0xff]  }
0x1328   :  { %v11400_v17 = vld [vmem:[#allocation19 + $0x324] ss:$48 sps:$4 sm:$0xff]  }
0x1329   :  { %6454 = vmatpush2.bf16.msra.mxu0 %v11311_v19  ;;  %v11395_v19 = vld [vmem:[#allocation19 + $0x620] ss:$48 sps:$4 sm:$0xff]  }
0x132a   :  { %6524 = vmatpush1.bf16.msra.mxu1 %v11314_v20  ;;  %6455 = vmatprep.subr.bf16.mxu0 %v11319_v29  ;;  %v11398_v20 = vld [vmem:[#allocation19 + $0x320] ss:$48 sps:$4 sm:$0xff]   ;;  %v11403_v29 = vld [vmem:[#allocation19 + $0x2cc] ss:$48 sps:$4 sm:$0xff]  }
0x132b   :  { %6525 = vmatprep.subr.bf16.mxu1 %v11322_v30  ;;  %v11406_v30 = vld [vmem:[#allocation19 + $0x8cc] ss:$48 sps:$4 sm:$0xff]  }
0x132d   :  { %6456 = vmatpush2.bf16.msra.mxu0 %v11317_v35  ;;  %v12903_v35 = vld [vmem:[#allocation20] sm:$0xff] }
0x132e   :  { %6526 = vmatpush1.bf16.msra.mxu1 %v11320_v43  ;;  %6457 = vmatprep.subr.bf16.mxu0 %v11325_v21  ;;  %v11401_v43 = vld [vmem:[#allocation19 + $0x2c8] ss:$48 sps:$4 sm:$0xff]  }
0x132f   :  { %6527 = vmatprep.subr.bf16.mxu1 %v11328_v33  ;;  %v11404_v21 = vld [vmem:[#allocation19 + $0x8c8] ss:$48 sps:$4 sm:$0xff]   ;;  %v4680_v33 = vrot.slane %v12903_v35, %v12428_v28 }
0x1331   :  { %6458 = vmatpush2.bf16.msra.mxu0 %v11323_v23  ;;  %v11409_v23 = vld [vmem:[#allocation19 + $0x26c] ss:$48 sps:$4 sm:$0xff]  }
0x1332   :  { %6528 = vmatpush1.bf16.msra.mxu1 %v11326_v50  ;;  %6459 = vmatprep.subr.bf16.mxu0 %v11331_v12  ;;  %v11412_v50 = vld [vmem:[#allocation19 + $0x86c] ss:$48 sps:$4 sm:$0xff]  }
0x1333   :  { %6529 = vmatprep.subr.bf16.mxu1 %v11334_v51 }
0x1335   :  { %6460 = vmatpush2.bf16.msra.mxu0 %v11329_v22  ;;  %v11407_v22 = vld [vmem:[#allocation19 + $0x268] ss:$48 sps:$4 sm:$0xff]  }
0x1336   :  { %6530 = vmatpush1.bf16.msra.mxu1 %v11332_v36  ;;  %6461 = vmatprep.subr.bf16.mxu0 %v11337_v8  ;;  %v11410_v8 = vld [vmem:[#allocation19 + $0x868] ss:$48 sps:$4 sm:$0xff]  }
0x1337   :  { %6531 = vmatprep.subr.bf16.mxu1 %v11340_v56  ;;  %v11415_v56 = vld [vmem:[#allocation19 + $0x20c] ss:$48 sps:$4 sm:$0xff]  }
0x1339   :  { %6462 = vmatpush2.bf16.msra.mxu0 %v11335_v38 }
0x133a   :  { %6532 = vmatpush1.bf16.msra.mxu1 %v11338_v58  ;;  %6463 = vmatprep.subr.bf16.mxu0 %v11343_v44  ;;  %v11418_v44 = vld [vmem:[#allocation19 + $0x80c] ss:$48 sps:$4 sm:$0xff]  }
0x133b   :  { %6533 = vmatprep.subr.bf16.mxu1 %v11346_v42 }
0x133d   :  { %6464 = vmatpush2.bf16.msra.mxu0 %v11341_v39 }
0x133e   :  { %6534 = vmatpush1.bf16.msra.mxu1 %v11344_v45  ;;  %6465 = vmatprep.subr.bf16.mxu0 %v11349_v53  ;;  %v11413_v45 = vld [vmem:[#allocation19 + $0x208] ss:$48 sps:$4 sm:$0xff]  }
0x133f   :  { %6535 = vmatprep.subr.bf16.mxu1 %v11352_v60  ;;  %v11416_v60 = vld [vmem:[#allocation19 + $0x808] ss:$48 sps:$4 sm:$0xff]  }
0x1341   :  { %6466 = vmatpush2.bf16.msra.mxu0 %v11347_v47 }
0x1342   :  { %6536 = vmatpush1.bf16.msra.mxu1 %v11350_v31  ;;  %6564 = vmatprep.subr.bf16.mxu0 %v11355_v59  ;;  %v11424_v31 = vld [vmem:[#allocation19 + $0x7ac] ss:$48 sps:$4 sm:$0xff]  }
0x1343   :  { %6537 = vmatprep.subr.bf16.mxu1 %v11358_v48  ;;  %v11419_v48 = vld [vmem:[#allocation19 + $0x1a8] ss:$48 sps:$4 sm:$0xff]  }
0x1344   :  { %6468 = vmatmul.mubr.bf16.vlgmr.msra.gmra.mxu0 %v12884_v1 }
0x1345   :  { %6565 = vmatpush1.bf16.msra.mxu0 %v11353_v54  ;;  %6596 = vmatprep.mubr.bf16.mxu0 %v12251_v9 }
0x1346   :  { %6538 = vmatpush2.bf16.msra.mxu1 %v11356_v32  ;;  %6566 = vmatprep.subr.bf16.mxu0 %v11361_v52  ;;  %v11422_v52 = vld [vmem:[#allocation19 + $0x7a8] ss:$48 sps:$4 sm:$0xff]  }
0x1347   :  { %6539 = vmatprep.subr.bf16.mxu1 %v11364_v37  ;;  %v11430_v37 = vld [vmem:[#allocation19 + $0x74c] ss:$48 sps:$4 sm:$0xff]  }
0x1349   :  { %6567 = vmatpush1.bf16.msra.mxu0 %v11359_v57 }
0x134a   :  { %6540 = vmatpush2.bf16.msra.mxu1 %v11362_v11  ;;  %6568 = vmatprep.subr.bf16.mxu0 %v11367_v6  ;;  %v11425_v11 = vld [vmem:[#allocation19 + $0x148] ss:$48 sps:$4 sm:$0xff]  }
0x134b   :  { %6541 = vmatprep.subr.bf16.mxu1 %v11370_v41  ;;  %v11428_v6 = vld [vmem:[#allocation19 + $0x748] ss:$48 sps:$4 sm:$0xff]   ;;  %v11433_v41 = vld [vmem:[#allocation19 + $0xec] ss:$48 sps:$4 sm:$0xff]  }
0x134d   :  { %6569 = vmatpush1.bf16.msra.mxu0 %v11365_v40  ;;  %v11436_v40 = vld [vmem:[#allocation19 + $0x6ec] ss:$48 sps:$4 sm:$0xff]  }
0x134e   :  { %6542 = vmatpush2.bf16.msra.mxu1 %v11368_v16  ;;  %6570 = vmatprep.subr.bf16.mxu0 %v11373_v62  ;;  %v11431_v62 = vld [vmem:[#allocation19 + $0xe8] ss:$48 sps:$4 sm:$0xff]  }
0x134f   :  { %6543 = vmatprep.subr.bf16.mxu1 %v11376_v3  ;;  %v4684_v3 = vrot.slane %v12903_v35, %v12422_v25 }
0x1351   :  { %6571 = vmatpush1.bf16.msra.mxu0 %v11371_v49  ;;  %v11434_v49 = vld [vmem:[#allocation19 + $0x6e8] ss:$48 sps:$4 sm:$0xff]  }
0x1352   :  { %6544 = vmatpush2.bf16.msra.mxu1 %v11374_v18  ;;  %6572 = vmatprep.subr.bf16.mxu0 %v11379_v13  ;;  %v11439_v18 = vld [vmem:[#allocation19 + $0x8c] ss:$48 sps:$4 sm:$0xff]  }
0x1353   :  { %6545 = vmatprep.subr.bf16.mxu1 %v11382_v55  ;;  %v11442_v13 = vld [vmem:[#allocation19 + $0x68c] ss:$48 sps:$4 sm:$0xff]  }
0x1355   :  { %6573 = vmatpush1.bf16.msra.mxu0 %v11377_v27  ;;  %v11437_v27 = vld [vmem:[#allocation19 + $0x88] ss:$48 sps:$4 sm:$0xff]  }
0x1356   :  { %6546 = vmatpush2.bf16.msra.mxu1 %v11380_v4  ;;  %6574 = vmatprep.subr.bf16.mxu0 %v11385_v7  ;;  %v11440_v7 = vld [vmem:[#allocation19 + $0x688] ss:$48 sps:$4 sm:$0xff]  }
0x1357   :  { %6547 = vmatprep.subr.bf16.mxu1 %v11388_v10  ;;  %v11445_v10 = vld [vmem:[#allocation19 + $0x2c] ss:$48 sps:$4 sm:$0xff]  }
0x1359   :  { %6575 = vmatpush1.bf16.msra.mxu0 %v11383_v61 }
0x135a   :  { %6548 = vmatpush2.bf16.msra.mxu1 %v11386_v14  ;;  %6576 = vmatprep.subr.bf16.mxu0 %v11391_v46  ;;  %v11448_v14 = vld [vmem:[#allocation19 + $0x62c] ss:$48 sps:$4 sm:$0xff]  }
0x135b   :  { %6549 = vmatprep.subr.bf16.mxu1 %v11394_v34  ;;  %v11443_v34 = vld [vmem:[#allocation19 + $0x28] ss:$48 sps:$4 sm:$0xff]  }
0x135d   :  { %6577 = vmatpush1.bf16.msra.mxu0 %v11389_v15 }
0x135e   :  { %6550 = vmatpush2.bf16.msra.mxu1 %v11392_v2  ;;  %6578 = vmatprep.subr.bf16.mxu0 %v11397_v5  ;;  %v11446_v2 = vld [vmem:[#allocation19 + $0x628] ss:$48 sps:$4 sm:$0xff]   ;;  %v11451_v5 = vld [vmem:[#allocation19 + $0x5cc] ss:$48 sps:$4 sm:$0xff]  }
0x135f   :  { %6551 = vmatprep.subr.bf16.mxu1 %v11400_v17  ;;  %v11454_v17 = vld [vmem:[#allocation22 + $0xac] ss:$12 sps:$4 sm:$0xff]  }
0x1361   :  { %6579 = vmatpush1.bf16.msra.mxu0 %v11395_v19 }
0x1362   :  { %6552 = vmatpush2.bf16.msra.mxu1 %v11398_v20  ;;  %6607 = vmatprep.subr.bf16.mxu0 %v11403_v29  ;;  %v11449_v20 = vld [vmem:[#allocation19 + $0x5c8] ss:$48 sps:$4 sm:$0xff]  }
0x1363   :  { %6650 = vmatprep.subr.bf16.mxu1 %v11406_v30  ;;  %v11452_v30 = vld [vmem:[#allocation22 + $0xa8] ss:$12 sps:$4 sm:$0xff]  }
0x1364   :  { %6597 = vmatmul.mubr.bf16.vlgmr.msra.gmra.mxu0 %v12882_v0  ;;  %v6254_v12 = vpop.f32.mrf.mxu0 }
0x1365   :  { %6554 = vmatmul.mubr.bf16.vlgmr.msra.gmra.mxu1 %v12884_v1  ;;  %6608 = vmatpush1.bf16.msra.mxu0 %v11401_v43  ;;  %v6211_v51 = vpop.f32.mrf.mxu1  ;;  %v11457_v43 = vld [vmem:[#allocation19 + $0x56c] ss:$48 sps:$4 sm:$0xff]  }
0x1366   :  { %6639 = vmatprep.mubr.bf16.mxu0 %v12880_v63  ;;  %v6212_v36 = vadd.f32 %v6211_v51, %v4680_v33  ;;  %6651 = vmatpush1.bf16.msra.mxu1 %v11404_v21  ;;  %v6256_v38 = vpop.f32.mrf.mxu0  ;;  %v11421_v63 = vld [vmem:[#allocation19 + $0x1ac] ss:$48 sps:$4 sm:$0xff]   ;;  %v11466_v51 = vld [vmem:[#allocation22 + $0x7c] ss:$12 sps:$4 sm:$0xff]  }
0x1367   :  { %v6213_v58 = vpop.f32.mrf.mxu1  ;;  %6609 = vmatprep.subr.bf16.mxu0 %v11409_v23  ;;  %6652 = vmatprep.subr.bf16.mxu1 %v11412_v50  ;;  %v11460_v21 = vld [vmem:[#allocation22 + $0x94] ss:$12 sps:$4 sm:$0xff]   ;;  %v11455_v23 = vld [vmem:[#allocation19 + $0x568] ss:$48 sps:$4 sm:$0xff]  }
0x1368   :  { %v6255_v42 = vadd.f32 %v6254_v12, %v6212_v36  ;;  %6682 = vmatprep.mubr.bf16.mxu1 %v12251_v9  ;;  %v6258_v47 = vpop.f32.mrf.mxu0  ;;  %v11427_v9 = vld [vmem:[#allocation19 + $0x14c] ss:$48 sps:$4 sm:$0xff]   ;;  %v6214_v4 = vadd.f32 %v6213_v58, %v4684_v3  ;;  %v11464_v36 = vld [vmem:[#allocation22 + $0x78] ss:$12 sps:$4 sm:$0xff]  }
0x1369   :  { %6610 = vmatpush1.bf16.msra.mxu0 %v11407_v22  ;;  %v6215_v39 = vpop.f32.mrf.mxu1  ;;  %v11458_v50 = vld [vmem:[#allocation22 + $0x90] ss:$12 sps:$4 sm:$0xff]  }
0x136a   :  { %v6216_v53 = vadd.f32 %v6215_v39, %v4680_v33  ;;  %6653 = vmatpush1.bf16.msra.mxu1 %v11410_v8  ;;  %6611 = vmatprep.subr.bf16.mxu0 %v11415_v56  ;;  %v6693_v54 = vmax.f32 %v6255_v42, 0.0  ;;  %v6260_v61 = vpop.f32.mrf.mxu0  ;;  %v6257_v15 = vadd.f32 %v6256_v38, %v6214_v4  ;;  %v11463_v12 = vld [vmem:[#allocation19 + $0x50c] ss:$48 sps:$4 sm:$0xff]   ;;  %v11461_v22 = vld [vmem:[#allocation19 + $0x508] ss:$48 sps:$4 sm:$0xff]  }
0x136b   :  { %6654 = vmatprep.subr.bf16.mxu1 %v11418_v44  ;;  %v6217_v16 = vpop.f32.mrf.mxu1  ;;  %v11469_v8 = vld [vmem:[#allocation19 + $0x4ac] ss:$48 sps:$4 sm:$0xff]   ;;  %v11467_v38 = vld [vmem:[#allocation19 + $0x4a8] ss:$48 sps:$4 sm:$0xff]   ;;  %v11476_v39 = vld [vmem:[#allocation22 + $0x48] ss:$12 sps:$4 sm:$0xff]  }
0x136c   :  { %v6259_v59 = vadd.f32 %v6258_v47, %v6216_v53  ;;  %v6218_v55 = vadd.f32 %v6217_v16, %v4684_v3  ;;  %v6694_v29 = vmax.f32 %v6257_v15, 0.0  ;;  %v11472_v56 = vld [vmem:[#allocation22 + $0x64] ss:$12 sps:$4 sm:$0xff]   ;;  %v11478_v44 = vld [vmem:[#allocation22 + $0x4c] ss:$12 sps:$4 sm:$0xff]  }
0x136d   :  { %6612 = vmatpush1.bf16.msra.mxu0 %v11413_v45  ;;  %v11475_v58 = vld [vmem:[#allocation19 + $0x44c] ss:$48 sps:$4 sm:$0xff]   ;;  %v11473_v42 = vld [vmem:[#allocation19 + $0x448] ss:$48 sps:$4 sm:$0xff]   ;;  %v11500_v16 = vld [vmem:[#allocation22 + $0x168] ss:$12 sps:$4 sm:$0xff]  }
0x136e   :  { %v6705_v32 = vmax.f32 %v6259_v59, 0.0  ;;  %6655 = vmatpush1.bf16.msra.mxu1 %v11416_v60  ;;  %6613 = vmatprep.subr.bf16.mxu0 %v11421_v63  ;;  %v6261_v46 = vadd.f32 %v6260_v61, %v6218_v55  ;;  %v11481_v45 = vld [vmem:[#allocation19 + $0x3ec] ss:$48 sps:$4 sm:$0xff]   ;;  %v11479_v60 = vld [vmem:[#allocation19 + $0x3e8] ss:$48 sps:$4 sm:$0xff]  }
0x136f   :  { %6656 = vmatprep.subr.bf16.mxu1 %v11424_v31  ;;  %v11484_v53 = vld [vmem:[#allocation22 + $0x34] ss:$12 sps:$4 sm:$0xff]   ;;  %v11482_v63 = vld [vmem:[#allocation22 + $0x30] ss:$12 sps:$4 sm:$0xff]  }
0x1370   :  { %v12911_v57 = vpack.c.bf16 %v6705_v32, %v6693_v54  ;;  %v6706_v19 = vmax.f32 %v6261_v46, 0.0  ;;  %v11487_v47 = vld [vmem:[#allocation19 + $0x38c] ss:$48 sps:$4 sm:$0xff]   ;;  %v11490_v31 = vld [vmem:[#allocation22 + $0x1c] ss:$12 sps:$4 sm:$0xff]  }
0x1371   :  { %6614 = vmatpush1.bf16.msra.mxu0 %v11419_v48  ;;  %v11485_v59 = vld [vmem:[#allocation19 + $0x388] ss:$48 sps:$4 sm:$0xff]   ;;  %v11488_v48 = vld [vmem:[#allocation22 + $0x18] ss:$12 sps:$4 sm:$0xff]   ;;  %v11493_v54 = vld [vmem:[#allocation19 + $0x32c] ss:$48 sps:$4 sm:$0xff]  }
0x1372   :  { %6657 = vmatpush1.bf16.msra.mxu1 %v11422_v52  ;;  %6615 = vmatprep.subr.bf16.mxu0 %v11427_v9  ;;  %v12915_v33 = vpack.c.bf16 %v6706_v19, %v6694_v29  ;;  %v11496_v32 = vld [vmem:[#allocation22 + $0x4] ss:$12 sps:$4 sm:$0xff]   ;;  %v11491_v52 = vld [vmem:[#allocation19 + $0x328] ss:$48 sps:$4 sm:$0xff]  }
0x1373   :  { %6658 = vmatprep.subr.bf16.mxu1 %v11430_v37  ;;  %v11494_v9 = vld [vmem:[#allocation22] ss:$12 sps:$4 sm:$0xff]   ;;  %v11503_v55 = vld [vmem:[#allocation22 + $0x210] ss:$12 sps:$4 sm:$0xff]  }
0x1374   :  { %v11499_v37 = vld [vmem:[#allocation22 + $0x22c] ss:$12 sps:$4 sm:$0xff]   ;;  %v11506_v4 = vld [vmem:[#allocation22 + $0x150] ss:$12 sps:$4 sm:$0xff]  }
0x1375   :  { %6616 = vmatpush1.bf16.msra.mxu0 %v11425_v11  ;;  %v11502_v11 = vld [vmem:[#allocation22 + $0x16c] ss:$12 sps:$4 sm:$0xff]   ;;  %v11514_v61 = vld [vmem:[#allocation22 + $0x13c] ss:$12 sps:$4 sm:$0xff]   ;;  %v11520_v19 = vld [vmem:[#allocation22 + $0x124] ss:$12 sps:$4 sm:$0xff]  }
0x1376   :  { %6659 = vmatpush1.bf16.msra.mxu1 %v11428_v6  ;;  %6617 = vmatprep.subr.bf16.mxu0 %v11433_v41  ;;  %v4691_v6 = vsub.s32 3, %v12419_v24 }
0x1377   :  { %6660 = vmatprep.subr.bf16.mxu1 %v11436_v40  ;;  %v11497_v40 = vld [vmem:[#allocation22 + $0x228] ss:$12 sps:$4 sm:$0xff]  }
0x1378   :  { %v4692_v3 = vrot.slane %v12903_v35, %v4691_v6 }
0x1379   :  { %6618 = vmatpush1.bf16.msra.mxu0 %v11431_v62  ;;  %v11505_v62 = vld [vmem:[#allocation22 + $0x214] ss:$12 sps:$4 sm:$0xff]  }
0x137a   :  { %6661 = vmatpush1.bf16.msra.mxu1 %v11434_v49  ;;  %6619 = vmatprep.subr.bf16.mxu0 %v11439_v18  ;;  %v11508_v49 = vld [vmem:[#allocation22 + $0x154] ss:$12 sps:$4 sm:$0xff]  }
0x137b   :  { %6662 = vmatprep.subr.bf16.mxu1 %v11442_v13 }
0x137d   :  { %6620 = vmatpush1.bf16.msra.mxu0 %v11437_v27 }
0x137e   :  { %6663 = vmatpush1.bf16.msra.mxu1 %v11440_v7  ;;  %6621 = vmatprep.subr.bf16.mxu0 %v11445_v10  ;;  %v11511_v7 = vld [vmem:[#allocation22 + $0x1fc] ss:$12 sps:$4 sm:$0xff]  }
0x137f   :  { %6664 = vmatprep.subr.bf16.mxu1 %v11448_v14 }
0x1381   :  { %6622 = vmatpush1.bf16.msra.mxu0 %v11443_v34  ;;  %v11509_v34 = vld [vmem:[#allocation22 + $0x1f8] ss:$12 sps:$4 sm:$0xff]  }
0x1382   :  { %6665 = vmatpush1.bf16.msra.mxu1 %v11446_v2  ;;  %6623 = vmatprep.subr.bf16.mxu0 %v11451_v5  ;;  %v11517_v2 = vld [vmem:[#allocation22 + $0x1e4] ss:$12 sps:$4 sm:$0xff]  }
0x1383   :  { %8666 = vmatprep.subr.bf16.mxu1 %v11454_v17 }
0x1385   :  { %6624 = vmatpush2.bf16.msra.mxu0 %v11449_v20  ;;  %6683 = vmatmul.mubr.bf16.vlgmr.msra.gmra.mxu1 %v12882_v0  ;;  %v11470_v0 = vld [vmem:[#allocation22 + $0x60] ss:$12 sps:$4 sm:$0xff]   ;;  %v12920_v41 = vpop.f32.mrf.mxu1 }
0x1386   :  { %8667 = vmatpush1.bf16.msra.mxu1 %v11452_v30  ;;  %8698 = vmatprep.mubr.bf16.mxu1 %v12915_v33  ;;  %v11515_v30 = vld [vmem:[#allocation22 + $0x1e0] ss:$12 sps:$4 sm:$0xff]  }
0x1387   :  { %6625 = vmatprep.subr.bf16.mxu0 %v11457_v43  ;;  %8668 = vmatprep.subr.bf16.mxu1 %v11460_v21  ;;  %v6342_v18 = vpop.f32.mrf.mxu1  ;;  %v11518_v43 = vld [vmem:[#allocation22 + $0x120] ss:$12 sps:$4 sm:$0xff]  }
0x1388   :  { %v11523_v21 = vld [vmem:[#allocation22 + $0x1cc] ss:$12 sps:$4 sm:$0xff]  }
0x1389   :  { %6626 = vmatpush2.bf16.msra.mxu0 %v11455_v23  ;;  %v12928_v14 = vpop.f32.mrf.mxu1 }
0x138a   :  { %8669 = vmatpush1.bf16.msra.mxu1 %v11458_v50  ;;  %6627 = vmatprep.subr.bf16.mxu0 %v11463_v12  ;;  %v11526_v12 = vld [vmem:[#allocation22 + $0x10c] ss:$12 sps:$4 sm:$0xff]  }
0x138b   :  { %8670 = vmatprep.subr.bf16.mxu1 %v11466_v51  ;;  %v6346_v20 = vpop.f32.mrf.mxu1 }
0x138d   :  { %6628 = vmatpush2.bf16.msra.mxu0 %v11461_v22  ;;  %v11521_v22 = vld [vmem:[#allocation22 + $0x1c8] ss:$12 sps:$4 sm:$0xff]  }
0x138e   :  { %8671 = vmatpush1.bf16.msra.mxu1 %v11464_v36  ;;  %6629 = vmatprep.subr.bf16.mxu0 %v11469_v8  ;;  %v11524_v36 = vld [vmem:[#allocation22 + $0x108] ss:$12 sps:$4 sm:$0xff]  }
0x138f   :  { %8672 = vmatprep.subr.bf16.mxu1 %v11472_v56  ;;  %v11529_v8 = vld [vmem:[#allocation22 + $0x1b4] ss:$12 sps:$4 sm:$0xff]  }
0x1390   :  { %v11532_v56 = vld [vmem:[#allocation22 + $0xf4] ss:$12 sps:$4 sm:$0xff]  }
0x1391   :  { %6630 = vmatpush2.bf16.msra.mxu0 %v11467_v38  ;;  %v11527_v38 = vld [vmem:[#allocation22 + $0x1b0] ss:$12 sps:$4 sm:$0xff]  }
0x1392   :  { %8673 = vmatpush1.bf16.msra.mxu1 %v11470_v0  ;;  %6631 = vmatprep.subr.bf16.mxu0 %v11475_v58  ;;  %v11530_v0 = vld [vmem:[#allocation22 + $0xf0] ss:$12 sps:$4 sm:$0xff]  }
0x1393   :  { %8674 = vmatprep.subr.bf16.mxu1 %v11478_v44  ;;  %v11535_v58 = vld [vmem:[#allocation22 + $0x19c] ss:$12 sps:$4 sm:$0xff]  }
0x1394   :  { %v11538_v44 = vld [vmem:[#allocation22 + $0xdc] ss:$12 sps:$4 sm:$0xff]  }
0x1395   :  { %6632 = vmatpush2.bf16.msra.mxu0 %v11473_v42  ;;  %v11533_v42 = vld [vmem:[#allocation22 + $0x198] ss:$12 sps:$4 sm:$0xff]  }
0x1396   :  { %8675 = vmatpush1.bf16.msra.mxu1 %v11476_v39  ;;  %6633 = vmatprep.subr.bf16.mxu0 %v11481_v45  ;;  %v11536_v39 = vld [vmem:[#allocation22 + $0xd8] ss:$12 sps:$4 sm:$0xff]  }
0x1397   :  { %8676 = vmatprep.subr.bf16.mxu1 %v11484_v53  ;;  %v11541_v45 = vld [vmem:[#allocation22 + $0x184] ss:$12 sps:$4 sm:$0xff]  }
0x1398   :  { %v11544_v53 = vld [vmem:[#allocation22 + $0xc4] ss:$12 sps:$4 sm:$0xff]  }
0x1399   :  { %6634 = vmatpush2.bf16.msra.mxu0 %v11479_v60  ;;  %v11539_v60 = vld [vmem:[#allocation22 + $0x180] ss:$12 sps:$4 sm:$0xff]  }
0x139a   :  { %8677 = vmatpush1.bf16.msra.mxu1 %v11482_v63  ;;  %6635 = vmatprep.subr.bf16.mxu0 %v11487_v47  ;;  %v11542_v63 = vld [vmem:[#allocation22 + $0xc0] ss:$12 sps:$4 sm:$0xff]  }
0x139b   :  { %8678 = vmatprep.subr.bf16.mxu1 %v11490_v31  ;;  %v11547_v47 = vld [vmem:[#allocation22 + $0x2ec] ss:$12 sps:$4 sm:$0xff]  }
0x139c   :  { %v11550_v31 = vld [vmem:[#allocation22 + $0x3ac] ss:$12 sps:$4 sm:$0xff]  }
0x139d   :  { %6636 = vmatpush2.bf16.msra.mxu0 %v11485_v59  ;;  %v4699_v59 = vsub.s32 5, %v12419_v24 }
0x139e   :  { %8679 = vmatpush1.bf16.msra.mxu1 %v11488_v48  ;;  %6637 = vmatprep.subr.bf16.mxu0 %v11493_v54  ;;  %v11545_v48 = vld [vmem:[#allocation22 + $0x2e8] ss:$12 sps:$4 sm:$0xff]  }
0x139f   :  { %8680 = vmatprep.subr.bf16.mxu1 %v11496_v32  ;;  %v11548_v54 = vld [vmem:[#allocation22 + $0x3a8] ss:$12 sps:$4 sm:$0xff]  }
0x13a0   :  { %v11553_v32 = vld [vmem:[#allocation22 + $0x2d4] ss:$12 sps:$4 sm:$0xff]  }
0x13a1   :  { %6638 = vmatpush2.bf16.msra.mxu0 %v11491_v52  ;;  %v11556_v52 = vld [vmem:[#allocation22 + $0x394] ss:$12 sps:$4 sm:$0xff]  }
0x13a2   :  { %8681 = vmatpush1.bf16.msra.mxu1 %v11494_v9  ;;  %8709 = vmatprep.subr.bf16.mxu0 %v11499_v37  ;;  %v4700_v37 = vrot.slane %v12903_v35, %v4699_v59  ;;  %v11590_v59 = vld [vmem:[#allocation22 + $0x300] ss:$12 sps:$4 sm:$0xff]  }
0x13a3   :  { %8682 = vmatprep.subr.bf16.mxu1 %v11502_v11 }
0x13a4   :  { %v12925_v13 = vpop.f32.mrf.mxu0  ;;  %6640 = vmatmul.mubr.bf16.vlgmr.msra.gmra.mxu0 %v12884_v1  ;;  %v11512_v1 = vld [vmem:[#allocation22 + $0x138] ss:$12 sps:$4 sm:$0xff]  }
0x13a5   :  { %8710 = vmatpush1.bf16.msra.mxu0 %v11497_v40  ;;  %v11551_v40 = vld [vmem:[#allocation22 + $0x2d0] ss:$12 sps:$4 sm:$0xff]  }
0x13a6   :  { %v6299_v27 = vpop.f32.mrf.mxu0  ;;  %8683 = vmatpush2.bf16.msra.mxu1 %v11500_v16  ;;  %8711 = vmatprep.subr.bf16.mxu0 %v11505_v62  ;;  %v11554_v62 = vld [vmem:[#allocation22 + $0x390] ss:$12 sps:$4 sm:$0xff]  }
0x13a7   :  { %v6300_v10 = vadd.f32 %v6299_v27, %v4692_v3  ;;  %8684 = vmatprep.subr.bf16.mxu1 %v11508_v49 }
0x13a8   :  { %v12930_v46 = vpop.f32.mrf.mxu0 }
0x13a9   :  { %8712 = vmatpush1.bf16.msra.mxu0 %v11503_v55  ;;  %v6343_v5 = vadd.f32 %v6342_v18, %v6300_v10  ;;  %v11562_v18 = vld [vmem:[#allocation22 + $0x37c] ss:$12 sps:$4 sm:$0xff]   ;;  %v11560_v10 = vld [vmem:[#allocation22 + $0x378] ss:$12 sps:$4 sm:$0xff]  }
0x13aa   :  { %v6303_v15 = vpop.f32.mrf.mxu0  ;;  %8685 = vmatpush2.bf16.msra.mxu1 %v11506_v4  ;;  %8713 = vmatprep.subr.bf16.mxu0 %v11511_v7  ;;  %v11557_v7 = vld [vmem:[#allocation22 + $0x2b8] ss:$12 sps:$4 sm:$0xff]  }
0x13ab   :  { %v6304_v17 = vadd.f32 %v6303_v15, %v4692_v3  ;;  %8686 = vmatprep.subr.bf16.mxu1 %v11514_v61  ;;  %v6696_v23 = vmax.f32 %v6343_v5, 0.0  ;;  %v11559_v3 = vld [vmem:[#allocation22 + $0x2bc] ss:$12 sps:$4 sm:$0xff]   ;;  %v11565_v61 = vld [vmem:[#allocation22 + $0x2a4] ss:$12 sps:$4 sm:$0xff]  }
0x13ac   :  { %v11568_v15 = vld [vmem:[#allocation22 + $0x364] ss:$12 sps:$4 sm:$0xff]  }
0x13ad   :  { %v6347_v29 = vadd.f32 %v6346_v20, %v6304_v17  ;;  %8714 = vmatpush1.bf16.msra.mxu0 %v11509_v34  ;;  %v11563_v17 = vld [vmem:[#allocation22 + $0x2a0] ss:$12 sps:$4 sm:$0xff]  }
0x13ae   :  { %8687 = vmatpush2.bf16.msra.mxu1 %v11512_v1  ;;  %8715 = vmatprep.subr.bf16.mxu0 %v11517_v2  ;;  %v11566_v20 = vld [vmem:[#allocation22 + $0x360] ss:$12 sps:$4 sm:$0xff]  }
0x13af   :  { %v6708_v50 = vmax.f32 %v6347_v29, 0.0  ;;  %8688 = vmatprep.subr.bf16.mxu1 %v11520_v19  ;;  %v11571_v29 = vld [vmem:[#allocation22 + $0x28c] ss:$12 sps:$4 sm:$0xff]  }
0x13b1   :  { %8716 = vmatpush1.bf16.msra.mxu0 %v11515_v30  ;;  %v12932_v51 = vpack.c.bf16 %v6708_v50, %v6696_v23  ;;  %v11574_v30 = vld [vmem:[#allocation22 + $0x34c] ss:$12 sps:$4 sm:$0xff]   ;;  %v11569_v23 = vld [vmem:[#allocation22 + $0x288] ss:$12 sps:$4 sm:$0xff]  }
0x13b2   :  { %8689 = vmatpush2.bf16.msra.mxu1 %v11518_v43  ;;  %8717 = vmatprep.subr.bf16.mxu0 %v11523_v21 }
0x13b3   :  { %8741 = vmatprep.mubr.bf16.mxu0 %v12932_v51  ;;  %8690 = vmatprep.subr.bf16.mxu1 %v11526_v12  ;;  %v11572_v12 = vld [vmem:[#allocation22 + $0x348] ss:$12 sps:$4 sm:$0xff]  }
0x13b5   :  { %8718 = vmatpush1.bf16.msra.mxu0 %v11521_v22  ;;  %v11577_v22 = vld [vmem:[#allocation22 + $0x274] ss:$12 sps:$4 sm:$0xff]  }
0x13b6   :  { %8691 = vmatpush2.bf16.msra.mxu1 %v11524_v36  ;;  %8719 = vmatprep.subr.bf16.mxu0 %v11529_v8  ;;  %v11580_v36 = vld [vmem:[#allocation22 + $0x334] ss:$12 sps:$4 sm:$0xff]   ;;  %v4688_v8 = vrot.slane %v12903_v35, %v12425_v26 }
0x13b7   :  { %8692 = vmatprep.subr.bf16.mxu1 %v11532_v56  ;;  %v11575_v56 = vld [vmem:[#allocation22 + $0x270] ss:$12 sps:$4 sm:$0xff]  }
0x13b9   :  { %8720 = vmatpush1.bf16.msra.mxu0 %v11527_v38  ;;  %v6302_v38 = vadd.f32 %v12930_v46, %v4688_v8 }
0x13ba   :  { %8693 = vmatpush2.bf16.msra.mxu1 %v11530_v0  ;;  %8721 = vmatprep.subr.bf16.mxu0 %v11535_v58  ;;  %v11578_v0 = vld [vmem:[#allocation22 + $0x330] ss:$12 sps:$4 sm:$0xff]  }
0x13bb   :  { %8694 = vmatprep.subr.bf16.mxu1 %v11538_v44  ;;  %v11583_v58 = vld [vmem:[#allocation22 + $0x25c] ss:$12 sps:$4 sm:$0xff]  }
0x13bc   :  { %v11586_v44 = vld [vmem:[#allocation22 + $0x31c] ss:$12 sps:$4 sm:$0xff]  }
0x13bd   :  { %8722 = vmatpush1.bf16.msra.mxu0 %v11533_v42  ;;  %v6298_v42 = vadd.f32 %v12925_v13, %v4688_v8  ;;  %v11598_v13 = vld [vmem:[#allocation22 + $0x46c] ss:$12 sps:$4 sm:$0xff]   ;;  %v11637_v8 = vld [vmem:[#allocation22 + $0x484] ss:$12 sps:$4 sm:$0xff]  }
0x13be   :  { %8695 = vmatpush2.bf16.msra.mxu1 %v11536_v39  ;;  %8723 = vmatprep.subr.bf16.mxu0 %v11541_v45  ;;  %v11581_v39 = vld [vmem:[#allocation22 + $0x258] ss:$12 sps:$4 sm:$0xff]   ;;  %v6345_v45 = vadd.f32 %v12928_v14, %v6302_v38  ;;  %v11593_v14 = vld [vmem:[#allocation22 + $0x528] ss:$12 sps:$4 sm:$0xff]  }
0x13bf   :  { %8696 = vmatprep.subr.bf16.mxu1 %v11544_v53  ;;  %v11584_v53 = vld [vmem:[#allocation22 + $0x318] ss:$12 sps:$4 sm:$0xff]   ;;  %v6341_v46 = vadd.f32 %v12920_v41, %v6298_v42  ;;  %v11604_v41 = vld [vmem:[#allocation22 + $0x454] ss:$12 sps:$4 sm:$0xff]  }
0x13c0   :  { %v11640_v38 = vld [vmem:[#allocation22 + $0x3c4] ss:$12 sps:$4 sm:$0xff]  }
0x13c1   :  { %8724 = vmatpush1.bf16.msra.mxu0 %v11539_v60  ;;  %v11589_v60 = vld [vmem:[#allocation22 + $0x244] ss:$12 sps:$4 sm:$0xff]  }
0x13c2   :  { %8697 = vmatpush2.bf16.msra.mxu1 %v11542_v63  ;;  %8725 = vmatprep.subr.bf16.mxu0 %v11547_v47  ;;  %v11592_v63 = vld [vmem:[#allocation22 + $0x304] ss:$12 sps:$4 sm:$0xff]   ;;  %v11587_v47 = vld [vmem:[#allocation22 + $0x240] ss:$12 sps:$4 sm:$0xff]  }
0x13c3   :  { %8752 = vmatprep.subr.bf16.mxu1 %v11550_v31  ;;  %v6707_v31 = vmax.f32 %v6345_v45, 0.0 }
0x13c4   :  { %v12936_v9 = vpop.f32.mrf.mxu0 }
0x13c5   :  { %v12939_v11 = vpop.f32.mrf.mxu1  ;;  %8699 = vmatmul.mubr.bf16.vlgmr.msra.gmra.mxu1 %v12911_v57  ;;  %8726 = vmatpush2.bf16.msra.mxu0 %v11545_v48  ;;  %v11595_v48 = vld [vmem:[#allocation22 + $0x52c] ss:$12 sps:$4 sm:$0xff]  }
0x13c6   :  { %v6428_v16 = vpop.f32.mrf.mxu0  ;;  %8753 = vmatpush1.bf16.msra.mxu1 %v11548_v54  ;;  %8727 = vmatprep.subr.bf16.mxu0 %v11553_v32  ;;  %v6695_v54 = vmax.f32 %v6341_v46, 0.0 }
0x13c7   :  { %v6385_v49 = vpop.f32.mrf.mxu1  ;;  %8754 = vmatprep.subr.bf16.mxu1 %v11556_v52  ;;  %v11596_v52 = vld [vmem:[#allocation22 + $0x468] ss:$12 sps:$4 sm:$0xff]  }
0x13c8   :  { %v6386_v55 = vadd.f32 %v6385_v49, %v4700_v37  ;;  %v12942_v27 = vpop.f32.mrf.mxu0  ;;  %v12955_v32 = vpack.c.bf16 %v6707_v31, %v6695_v54  ;;  %v11605_v49 = vld [vmem:[#allocation22 + $0x4f8] ss:$12 sps:$4 sm:$0xff]   ;;  %v11650_v54 = vld [vmem:[#allocation22 + $0x690] ss:$12 sps:$4 sm:$0xff]  }
0x13c9   :  { %v12944_v4 = vpop.f32.mrf.mxu1  ;;  %8728 = vmatpush2.bf16.msra.mxu0 %v11551_v40  ;;  %v11599_v40 = vld [vmem:[#allocation22 + $0x510] ss:$12 sps:$4 sm:$0xff]  }
0x13ca   :  { %8755 = vmatpush1.bf16.msra.mxu1 %v11554_v62  ;;  %8729 = vmatprep.subr.bf16.mxu0 %v11559_v3  ;;  %v6429_v1 = vadd.f32 %v6428_v16, %v6386_v55  ;;  %v6432_v5 = vpop.f32.mrf.mxu0  ;;  %v11602_v16 = vld [vmem:[#allocation22 + $0x450] ss:$12 sps:$4 sm:$0xff]  }
0x13cb   :  { %v6389_v34 = vpop.f32.mrf.mxu1  ;;  %8756 = vmatprep.subr.bf16.mxu1 %v11562_v18  ;;  %v11607_v62 = vld [vmem:[#allocation22 + $0x4fc] ss:$12 sps:$4 sm:$0xff]   ;;  %v11608_v18 = vld [vmem:[#allocation22 + $0x438] ss:$12 sps:$4 sm:$0xff]  }
0x13cc   :  { %v6390_v2 = vadd.f32 %v6389_v34, %v4700_v37  ;;  %v6698_v43 = vmax.f32 %v6429_v1, 0.0  ;;  %v11601_v37 = vld [vmem:[#allocation22 + $0x514] ss:$12 sps:$4 sm:$0xff]   ;;  %v11610_v3 = vld [vmem:[#allocation22 + $0x43c] ss:$12 sps:$4 sm:$0xff]   ;;  %v4695_v1 = vsub.s32 4, %v12419_v24 }
0x13cd   :  { %8730 = vmatpush2.bf16.msra.mxu0 %v11557_v7  ;;  %v11613_v55 = vld [vmem:[#allocation22 + $0x4e4] ss:$12 sps:$4 sm:$0xff]   ;;  %v11619_v34 = vld [vmem:[#allocation22 + $0x4cc] ss:$12 sps:$4 sm:$0xff]  }
0x13ce   :  { %v6433_v19 = vadd.f32 %v6432_v5, %v6390_v2  ;;  %8757 = vmatpush1.bf16.msra.mxu1 %v11560_v10  ;;  %8731 = vmatprep.subr.bf16.mxu0 %v11565_v61  ;;  %v11616_v7 = vld [vmem:[#allocation22 + $0x424] ss:$12 sps:$4 sm:$0xff]   ;;  %v11611_v10 = vld [vmem:[#allocation22 + $0x4e0] ss:$12 sps:$4 sm:$0xff]   ;;  %v11617_v2 = vld [vmem:[#allocation22 + $0x4c8] ss:$12 sps:$4 sm:$0xff]  }
0x13cf   :  { %8758 = vmatprep.subr.bf16.mxu1 %v11568_v15  ;;  %v11614_v61 = vld [vmem:[#allocation22 + $0x420] ss:$12 sps:$4 sm:$0xff]   ;;  %v11620_v5 = vld [vmem:[#allocation22 + $0x408] ss:$12 sps:$4 sm:$0xff]  }
0x13d0   :  { %v6710_v21 = vmax.f32 %v6433_v19, 0.0  ;;  %v11622_v15 = vld [vmem:[#allocation22 + $0x40c] ss:$12 sps:$4 sm:$0xff]   ;;  %v11628_v19 = vld [vmem:[#allocation22 + $0x3f4] ss:$12 sps:$4 sm:$0xff]  }
0x13d1   :  { %8732 = vmatpush2.bf16.msra.mxu0 %v11563_v17  ;;  %v11625_v17 = vld [vmem:[#allocation22 + $0x4b4] ss:$12 sps:$4 sm:$0xff]  }
0x13d2   :  { %8759 = vmatpush1.bf16.msra.mxu1 %v11566_v20  ;;  %8733 = vmatprep.subr.bf16.mxu0 %v11571_v29  ;;  %v12946_v50 = vpack.c.bf16 %v6710_v21, %v6698_v43  ;;  %v4696_v20 = vrot.slane %v12903_v35, %v4695_v1  ;;  %v11623_v29 = vld [vmem:[#allocation22 + $0x4b0] ss:$12 sps:$4 sm:$0xff]   ;;  %v11667_v1 = vld [vmem:[#allocation22 + $0x58c] ss:$12 sps:$4 sm:$0xff]  }
0x13d3   :  { %8760 = vmatprep.subr.bf16.mxu1 %v11574_v30  ;;  %v11626_v30 = vld [vmem:[#allocation22 + $0x3f0] ss:$12 sps:$4 sm:$0xff]  }
0x13d4   :  { %8784 = vmatprep.mubr.bf16.mxu1 %v12946_v50  ;;  %v11631_v43 = vld [vmem:[#allocation22 + $0x49c] ss:$12 sps:$4 sm:$0xff]   ;;  %v6388_v21 = vadd.f32 %v12944_v4, %v4696_v20  ;;  %v11638_v4 = vld [vmem:[#allocation22 + $0x3c0] ss:$12 sps:$4 sm:$0xff]  }
0x13d5   :  { %8734 = vmatpush2.bf16.msra.mxu0 %v11569_v23  ;;  %v11634_v23 = vld [vmem:[#allocation22 + $0x3dc] ss:$12 sps:$4 sm:$0xff]  }
0x13d6   :  { %8761 = vmatpush1.bf16.msra.mxu1 %v11572_v12  ;;  %8735 = vmatprep.subr.bf16.mxu0 %v11577_v22  ;;  %v6384_v12 = vadd.f32 %v12939_v11, %v4696_v20  ;;  %v11629_v22 = vld [vmem:[#allocation22 + $0x498] ss:$12 sps:$4 sm:$0xff]  }
0x13d7   :  { %8762 = vmatprep.subr.bf16.mxu1 %v11580_v36  ;;  %v11632_v36 = vld [vmem:[#allocation22 + $0x3d8] ss:$12 sps:$4 sm:$0xff]  }
0x13d8   :  { %v11646_v11 = vld [vmem:[#allocation22 + $0x6ac] ss:$12 sps:$4 sm:$0xff]  }
0x13d9   :  { %8736 = vmatpush2.bf16.msra.mxu0 %v11575_v56  ;;  %v6431_v56 = vadd.f32 %v12942_v27, %v6388_v21  ;;  %v11641_v27 = vld [vmem:[#allocation22 + $0x5e8] ss:$12 sps:$4 sm:$0xff]  }
0x13da   :  { %8763 = vmatpush1.bf16.msra.mxu1 %v11578_v0  ;;  %8737 = vmatprep.subr.bf16.mxu0 %v11583_v58  ;;  %v6427_v0 = vadd.f32 %v12936_v9, %v6384_v12  ;;  %v11635_v58 = vld [vmem:[#allocation22 + $0x480] ss:$12 sps:$4 sm:$0xff]   ;;  %v11671_v12 = vld [vmem:[#allocation22 + $0x570] ss:$12 sps:$4 sm:$0xff]  }
0x13db   :  { %8764 = vmatprep.subr.bf16.mxu1 %v11586_v44  ;;  %v11643_v44 = vld [vmem:[#allocation22 + $0x5ec] ss:$12 sps:$4 sm:$0xff]   ;;  %v6709_v42 = vmax.f32 %v6431_v56, 0.0  ;;  %v11649_v9 = vld [vmem:[#allocation22 + $0x5d4] ss:$12 sps:$4 sm:$0xff]  }
0x13dc   :  { %v11676_v21 = vld [vmem:[#allocation22 + $0x634] ss:$12 sps:$4 sm:$0xff]   ;;  %v11682_v56 = vld [vmem:[#allocation22 + $0x61c] ss:$12 sps:$4 sm:$0xff]  }
0x13dd   :  { %8738 = vmatpush2.bf16.msra.mxu0 %v11581_v39  ;;  %v4707_v39 = vsub.s32 7, %v12419_v24 }
0x13de   :  { %8765 = vmatpush1.bf16.msra.mxu1 %v11584_v53  ;;  %8739 = vmatprep.subr.bf16.mxu0 %v11589_v60  ;;  %v6697_v53 = vmax.f32 %v6427_v0, 0.0  ;;  %v11644_v60 = vld [vmem:[#allocation22 + $0x6a8] ss:$12 sps:$4 sm:$0xff]   ;;  %v11677_v0 = vld [vmem:[#allocation22 + $0x558] ss:$12 sps:$4 sm:$0xff]  }
0x13df   :  { %8766 = vmatprep.subr.bf16.mxu1 %v11592_v63  ;;  %v4708_v46 = vrot.slane %v12903_v35, %v4707_v39 }
0x13e0   :  { %v12967_v63 = vpack.c.bf16 %v6709_v42, %v6697_v53  ;;  %v11688_v42 = vld [vmem:[#allocation22 + $0x604] ss:$12 sps:$4 sm:$0xff]   ;;  %v11686_v53 = vld [vmem:[#allocation22 + $0x600] ss:$12 sps:$4 sm:$0xff]  }
0x13e1   :  { %8740 = vmatpush2.bf16.msra.mxu0 %v11587_v47  ;;  %v11652_v47 = vld [vmem:[#allocation22 + $0x694] ss:$12 sps:$4 sm:$0xff]  }
0x13e2   :  { %8767 = vmatpush1.bf16.msra.mxu1 %v11590_v59  ;;  %8795 = vmatprep.subr.bf16.mxu0 %v11595_v48  ;;  %v11647_v48 = vld [vmem:[#allocation22 + $0x5d0] ss:$12 sps:$4 sm:$0xff]  }
0x13e3   :  { %8768 = vmatprep.subr.bf16.mxu1 %v11598_v13 }
0x13e4   :  { %8742 = vmatmul.mubr.bf16.vlgmr.msra.gmra.mxu0 %v12955_v32 }
0x13e5   :  { %8796 = vmatpush1.bf16.msra.mxu0 %v11593_v14  ;;  %v12965_v45 = vpop.f32.mrf.mxu1  ;;  %v11655_v14 = vld [vmem:[#allocation22 + $0x5bc] ss:$12 sps:$4 sm:$0xff]  }
0x13e6   :  { %8769 = vmatpush2.bf16.msra.mxu1 %v11596_v52  ;;  %8797 = vmatprep.subr.bf16.mxu0 %v11601_v37  ;;  %v11658_v37 = vld [vmem:[#allocation22 + $0x67c] ss:$12 sps:$4 sm:$0xff]  }
0x13e7   :  { %8770 = vmatprep.subr.bf16.mxu1 %v11604_v41  ;;  %v6514_v31 = vpop.f32.mrf.mxu1 }
0x13e9   :  { %8798 = vmatpush1.bf16.msra.mxu0 %v11599_v40  ;;  %v6516_v41 = vpop.f32.mrf.mxu1 }
0x13ea   :  { %8771 = vmatpush2.bf16.msra.mxu1 %v11602_v16  ;;  %8799 = vmatprep.subr.bf16.mxu0 %v11607_v62  ;;  %v11653_v16 = vld [vmem:[#allocation22 + $0x5b8] ss:$12 sps:$4 sm:$0xff]  }
0x13eb   :  { %8772 = vmatprep.subr.bf16.mxu1 %v11610_v3  ;;  %v11656_v3 = vld [vmem:[#allocation22 + $0x678] ss:$12 sps:$4 sm:$0xff]  }
0x13ed   :  { %8800 = vmatpush1.bf16.msra.mxu0 %v11605_v49  ;;  %v11661_v49 = vld [vmem:[#allocation22 + $0x5a4] ss:$12 sps:$4 sm:$0xff]  }
0x13ee   :  { %8773 = vmatpush2.bf16.msra.mxu1 %v11608_v18  ;;  %8801 = vmatprep.subr.bf16.mxu0 %v11613_v55 }
0x13ef   :  { %8774 = vmatprep.subr.bf16.mxu1 %v11616_v7  ;;  %v11664_v7 = vld [vmem:[#allocation22 + $0x664] ss:$12 sps:$4 sm:$0xff]  }
0x13f1   :  { %8802 = vmatpush1.bf16.msra.mxu0 %v11611_v10  ;;  %v6518_v10 = vpop.f32.mrf.mxu1 }
0x13f2   :  { %8775 = vmatpush2.bf16.msra.mxu1 %v11614_v61  ;;  %8803 = vmatprep.subr.bf16.mxu0 %v11619_v34  ;;  %v11659_v34 = vld [vmem:[#allocation22 + $0x5a0] ss:$12 sps:$4 sm:$0xff]  }
0x13f3   :  { %8776 = vmatprep.subr.bf16.mxu1 %v11622_v15  ;;  %v11662_v15 = vld [vmem:[#allocation22 + $0x660] ss:$12 sps:$4 sm:$0xff]  }
0x13f5   :  { %8804 = vmatpush1.bf16.msra.mxu0 %v11617_v2 }
0x13f6   :  { %8777 = vmatpush2.bf16.msra.mxu1 %v11620_v5  ;;  %8805 = vmatprep.subr.bf16.mxu0 %v11625_v17  ;;  %v11670_v17 = vld [vmem:[#allocation22 + $0x64c] ss:$12 sps:$4 sm:$0xff]  }
0x13f7   :  { %8778 = vmatprep.subr.bf16.mxu1 %v11628_v19  ;;  %v4703_v19 = vsub.s32 6, %v12419_v24 }
0x13f9   :  { %8806 = vmatpush1.bf16.msra.mxu0 %v11623_v29  ;;  %v11665_v29 = vld [vmem:[#allocation22 + $0x588] ss:$12 sps:$4 sm:$0xff]  }
0x13fa   :  { %8779 = vmatpush2.bf16.msra.mxu1 %v11626_v30  ;;  %8807 = vmatprep.subr.bf16.mxu0 %v11631_v43  ;;  %v11668_v30 = vld [vmem:[#allocation22 + $0x648] ss:$12 sps:$4 sm:$0xff]  }
0x13fb   :  { %8780 = vmatprep.subr.bf16.mxu1 %v11634_v23  ;;  %v11673_v43 = vld [vmem:[#allocation22 + $0x574] ss:$12 sps:$4 sm:$0xff]   ;;  %v4704_v23 = vrot.slane %v12903_v35, %v4703_v19 }
0x13fc   :  { %v11698_v19 = vld [vmem:[#allocation22 + $0x720] ss:$12 sps:$4 sm:$0xff]  }
0x13fd   :  { %8808 = vmatpush1.bf16.msra.mxu0 %v11629_v22 }
0x13fe   :  { %8781 = vmatpush2.bf16.msra.mxu1 %v11632_v36  ;;  %8809 = vmatprep.subr.bf16.mxu0 %v11637_v8  ;;  %v11674_v36 = vld [vmem:[#allocation22 + $0x630] ss:$12 sps:$4 sm:$0xff]  }
0x13ff   :  { %8782 = vmatprep.subr.bf16.mxu1 %v11640_v38  ;;  %v11679_v8 = vld [vmem:[#allocation22 + $0x55c] ss:$12 sps:$4 sm:$0xff]  }
0x1401   :  { %8810 = vmatpush1.bf16.msra.mxu0 %v11635_v58 }
0x1402   :  { %8783 = vmatpush2.bf16.msra.mxu1 %v11638_v4  ;;  %8811 = vmatprep.subr.bf16.mxu0 %v11643_v44  ;;  %v11680_v4 = vld [vmem:[#allocation22 + $0x618] ss:$12 sps:$4 sm:$0xff]  }
0x1403   :  { %8838 = vmatprep.subr.bf16.mxu1 %v11646_v11  ;;  %v11685_v44 = vld [vmem:[#allocation22 + $0x544] ss:$12 sps:$4 sm:$0xff]   ;;  %v11683_v11 = vld [vmem:[#allocation22 + $0x540] ss:$12 sps:$4 sm:$0xff]  }
0x1404   :  { %v6469_v59 = vpop.f32.mrf.mxu0 }
0x1405   :  { %8785 = vmatmul.mubr.bf16.vlgmr.msra.gmra.mxu1 %v12967_v63  ;;  %8812 = vmatpush2.bf16.msra.mxu0 %v11641_v27  ;;  %v6470_v38 = vadd.f32 %v6469_v59, %v4704_v23  ;;  %v11703_v27 = vld [vmem:[#allocation22 + $0x82c] ss:$12 sps:$4 sm:$0xff]   ;;  %v11709_v59 = vld [vmem:[#allocation22 + $0x814] ss:$12 sps:$4 sm:$0xff]  }
0x1406   :  { %v6471_v13 = vpop.f32.mrf.mxu0  ;;  %8839 = vmatpush1.bf16.msra.mxu1 %v11644_v60  ;;  %8813 = vmatprep.subr.bf16.mxu0 %v11649_v9  ;;  %v11691_v60 = vld [vmem:[#allocation22 + $0x76c] ss:$12 sps:$4 sm:$0xff]  }
0x1407   :  { %v6472_v52 = vadd.f32 %v6471_v13, %v4708_v46  ;;  %8840 = vmatprep.subr.bf16.mxu1 %v11652_v47  ;;  %v6513_v35 = vadd.f32 %v12965_v45, %v6470_v38  ;;  %v11694_v45 = vld [vmem:[#allocation22 + $0x754] ss:$12 sps:$4 sm:$0xff]   ;;  %v11730_v38 = vld [vmem:[#allocation22 + $0x7b0] ss:$12 sps:$4 sm:$0xff]  }
0x1408   :  { %v6473_v40 = vpop.f32.mrf.mxu0 }
0x1409   :  { %8814 = vmatpush2.bf16.msra.mxu0 %v11647_v48  ;;  %v6515_v18 = vadd.f32 %v6514_v31, %v6472_v52  ;;  %v6474_v22 = vadd.f32 %v6473_v40, %v4704_v23  ;;  %v6699_v9 = vmax.f32 %v6513_v35, 0.0  ;;  %v11689_v31 = vld [vmem:[#allocation22 + $0x768] ss:$12 sps:$4 sm:$0xff]   ;;  %v12979_v48 = vld [vmem:[#allocation20 + $0x8] sm:$0xf] }
0x140a   :  { %v6475_v62 = vpop.f32.mrf.mxu0  ;;  %8841 = vmatpush1.bf16.msra.mxu1 %v11650_v54  ;;  %8815 = vmatprep.subr.bf16.mxu0 %v11655_v14  ;;  %v4716_v54 = vrot.slane %v12979_v48, %v12422_v25  ;;  %v11707_v52 = vld [vmem:[#allocation22 + $0x810] ss:$12 sps:$4 sm:$0xff]   ;;  %v11725_v23 = vld [vmem:[#allocation22 + $0x7c8] ss:$12 sps:$4 sm:$0xff]   ;;  %v11735_v35 = vld [vmem:[#allocation22 + $0x798] ss:$12 sps:$4 sm:$0xff]  }
0x140b   :  { %v6476_v55 = vadd.f32 %v6475_v62, %v4708_v46  ;;  %8842 = vmatprep.subr.bf16.mxu1 %v11658_v37  ;;  %v6700_v2 = vmax.f32 %v6515_v18, 0.0  ;;  %v6517_v58 = vadd.f32 %v6516_v41, %v6474_v22  ;;  %v11701_v46 = vld [vmem:[#allocation22 + $0x828] ss:$12 sps:$4 sm:$0xff]   ;;  %v11692_v41 = vld [vmem:[#allocation22 + $0x750] ss:$12 sps:$4 sm:$0xff]  }
0x140c   :  { %v11715_v40 = vld [vmem:[#allocation22 + $0x7fc] ss:$12 sps:$4 sm:$0xff]  }
0x140d   :  { %v6519_v61 = vadd.f32 %v6518_v10, %v6476_v55  ;;  %8816 = vmatpush2.bf16.msra.mxu0 %v11653_v16  ;;  %v6711_v39 = vmax.f32 %v6517_v58, 0.0  ;;  %v11697_v62 = vld [vmem:[#allocation22 + $0x73c] ss:$12 sps:$4 sm:$0xff]   ;;  %v11713_v55 = vld [vmem:[#allocation22 + $0x7f8] ss:$12 sps:$4 sm:$0xff]  }
0x140e   :  { %8843 = vmatpush1.bf16.msra.mxu1 %v11656_v3  ;;  %8817 = vmatprep.subr.bf16.mxu0 %v11661_v49  ;;  %v11721_v10 = vld [vmem:[#allocation22 + $0x7e4] ss:$12 sps:$4 sm:$0xff]   ;;  %v11704_v22 = vld [vmem:[#allocation22 + $0x708] ss:$12 sps:$4 sm:$0xff]  }
0x140f   :  { %v6712_v5 = vmax.f32 %v6519_v61, 0.0  ;;  %8844 = vmatprep.subr.bf16.mxu1 %v11664_v7  ;;  %v12977_v47 = vpack.c.bf16 %v6711_v39, %v6699_v9  ;;  %v11695_v7 = vld [vmem:[#allocation22 + $0x738] ss:$12 sps:$4 sm:$0xff]   ;;  %v11737_v58 = vld [vmem:[#allocation22 + $0x79c] ss:$12 sps:$4 sm:$0xff]  }
0x1410   :  { %v11742_v39 = vld [vmem:[#allocation22 + $0x784] ss:$12 sps:$4 sm:$0xff]   ;;  %v11740_v9 = vld [vmem:[#allocation22 + $0x780] ss:$12 sps:$4 sm:$0xff]  }
0x1411   :  { %8818 = vmatpush2.bf16.msra.mxu0 %v11659_v34  ;;  %v12972_v20 = vpack.c.bf16 %v6712_v5, %v6700_v2  ;;  %v11700_v34 = vld [vmem:[#allocation22 + $0x724] ss:$12 sps:$4 sm:$0xff]   ;;  %v11719_v5 = vld [vmem:[#allocation22 + $0x7e0] ss:$12 sps:$4 sm:$0xff]  }
0x1412   :  { %8845 = vmatpush1.bf16.msra.mxu1 %v11662_v15  ;;  %8819 = vmatprep.subr.bf16.mxu0 %v11667_v1 }
0x1413   :  { %8827 = vmatprep.mubr.bf16.mxu0 %v12972_v20  ;;  %8846 = vmatprep.subr.bf16.mxu1 %v11670_v17 }
0x1415   :  { %8820 = vmatpush2.bf16.msra.mxu0 %v11665_v29  ;;  %v11727_v29 = vld [vmem:[#allocation22 + $0x7cc] ss:$12 sps:$4 sm:$0xff]  }
0x1416   :  { %8847 = vmatpush1.bf16.msra.mxu1 %v11668_v30  ;;  %8821 = vmatprep.subr.bf16.mxu0 %v11673_v43  ;;  %v11706_v30 = vld [vmem:[#allocation22 + $0x70c] ss:$12 sps:$4 sm:$0xff]  }
0x1417   :  { %8848 = vmatprep.subr.bf16.mxu1 %v11676_v21 }
0x1419   :  { %8822 = vmatpush2.bf16.msra.mxu0 %v11671_v12 }
0x141a   :  { %8849 = vmatpush1.bf16.msra.mxu1 %v11674_v36  ;;  %8823 = vmatprep.subr.bf16.mxu0 %v11679_v8  ;;  %v11732_v36 = vld [vmem:[#allocation22 + $0x7b4] ss:$12 sps:$4 sm:$0xff]  }
0x141b   :  { %8850 = vmatprep.subr.bf16.mxu1 %v11682_v56  ;;  %v11712_v8 = vld [vmem:[#allocation22 + $0x6f4] ss:$12 sps:$4 sm:$0xff]   ;;  %v4712_v56 = vrot.slane %v12979_v48, %v12428_v28 }
0x141d   :  { %8824 = vmatpush2.bf16.msra.mxu0 %v11677_v0  ;;  %v11710_v0 = vld [vmem:[#allocation22 + $0x6f0] ss:$12 sps:$4 sm:$0xff]  }
0x141e   :  { %8851 = vmatpush1.bf16.msra.mxu1 %v11680_v4  ;;  %8825 = vmatprep.subr.bf16.mxu0 %v11685_v44  ;;  %v11718_v44 = vld [vmem:[#allocation22 + $0x6dc] ss:$12 sps:$4 sm:$0xff]  }
0x141f   :  { %8852 = vmatprep.subr.bf16.mxu1 %v11688_v42 }
0x1421   :  { %8826 = vmatpush2.bf16.msra.mxu0 %v11683_v11  ;;  %v11716_v11 = vld [vmem:[#allocation22 + $0x6d8] ss:$12 sps:$4 sm:$0xff]  }
0x1422   :  { %8853 = vmatpush1.bf16.msra.mxu1 %v11686_v53  ;;  %8881 = vmatprep.subr.bf16.mxu0 %v11703_v27  ;;  %v11724_v27 = vld [vmem:[#allocation22 + $0x6c4] ss:$12 sps:$4 sm:$0xff]  }
0x1423   :  { %8854 = vmatprep.subr.bf16.mxu1 %v11691_v60 }
0x1424   :  { %v12981_v13 = vpop.f32.mrf.mxu0  ;;  %8828 = vmatmul.mubr.bf16.vlgmr.msra.gmra.mxu0 %v12977_v47 }
0x1425   :  { %v6555_v14 = vpop.f32.mrf.mxu1  ;;  %8882 = vmatpush1.bf16.msra.mxu0 %v11701_v46  ;;  %v11722_v46 = vld [vmem:[#allocation22 + $0x6c0] ss:$12 sps:$4 sm:$0xff]  }
0x1426   :  { %v6600_v37 = vpop.f32.mrf.mxu0  ;;  %8855 = vmatpush2.bf16.msra.mxu1 %v11689_v31  ;;  %8883 = vmatprep.subr.bf16.mxu0 %v11709_v59  ;;  %v6556_v42 = vadd.f32 %v6555_v14, %v4712_v56  ;;  %v11747_v31 = vld [vmem:[#allocation22 + $0x8ec] ss:$12 sps:$4 sm:$0xff]   ;;  %v11745_v14 = vld [vmem:[#allocation22 + $0x8e8] ss:$12 sps:$4 sm:$0xff]  }
0x1427   :  { %v6557_v16 = vpop.f32.mrf.mxu1  ;;  %8856 = vmatprep.subr.bf16.mxu1 %v11694_v45  ;;  %v11728_v45 = vld [vmem:[#allocation22 + $0x170] ss:$12 sps:$4 sm:$0xff]  }
0x1428   :  { %v6558_v3 = vadd.f32 %v6557_v16, %v4716_v54  ;;  %v6602_v49 = vpop.f32.mrf.mxu0  ;;  %v6599_v60 = vadd.f32 %v12981_v13, %v6556_v42  ;;  %v11752_v13 = vld [vmem:[#allocation22 + $0x8d4] ss:$12 sps:$4 sm:$0xff]   ;;  %v11734_v16 = vld [vmem:[#allocation22 + $0x98] ss:$12 sps:$4 sm:$0xff]  }
0x1429   :  { %v6559_v18 = vpop.f32.mrf.mxu1  ;;  %8884 = vmatpush1.bf16.msra.mxu0 %v11707_v52  ;;  %v11729_v52 = vld [vmem:[#allocation22 + $0xb0] ss:$12 sps:$4 sm:$0xff]  }
0x142a   :  { %8857 = vmatpush2.bf16.msra.mxu1 %v11692_v41  ;;  %8885 = vmatprep.subr.bf16.mxu0 %v11715_v40  ;;  %v6601_v15 = vadd.f32 %v6600_v37, %v6558_v3  ;;  %v6604_v2 = vpop.f32.mrf.mxu0  ;;  %v6560_v4 = vadd.f32 %v6559_v18, %v4712_v56  ;;  %v11733_v41 = vld [vmem:[#allocation22 + $0x158] ss:$12 sps:$4 sm:$0xff]   ;;  %v11750_v40 = vld [vmem:[#allocation22 + $0x8d0] ss:$12 sps:$4 sm:$0xff]   ;;  %v11738_v3 = vld [vmem:[#allocation22 + $0x140] ss:$12 sps:$4 sm:$0xff]  }
0x142b   :  { %v6561_v61 = vpop.f32.mrf.mxu1  ;;  %8858 = vmatprep.subr.bf16.mxu1 %v11697_v62  ;;  %v11757_v62 = vld [vmem:[#allocation22 + $0x8bc] ss:$12 sps:$4 sm:$0xff]   ;;  %v11739_v18 = vld [vmem:[#allocation22 + $0x80] ss:$12 sps:$4 sm:$0xff]  }
0x142c   :  { %v6562_v1 = vadd.f32 %v6561_v61, %v4716_v54  ;;  %v6702_v43 = vmax.f32 %v6601_v15, 0.0  ;;  %v6603_v53 = vadd.f32 %v6602_v49, %v6560_v4  ;;  %v6701_v54 = vmax.f32 %v6599_v60, 0.0  ;;  %v11755_v49 = vld [vmem:[#allocation22 + $0x8b8] ss:$12 sps:$4 sm:$0xff]   ;;  %v11744_v61 = vld [vmem:[#allocation22 + $0x68] ss:$12 sps:$4 sm:$0xff]  }
0x142d   :  { %8886 = vmatpush1.bf16.msra.mxu0 %v11713_v55  ;;  %v11762_v55 = vld [vmem:[#allocation22 + $0x8a4] ss:$12 sps:$4 sm:$0xff]   ;;  %v11765_v15 = vld [vmem:[#allocation22 + $0x888] ss:$12 sps:$4 sm:$0xff]   ;;  %v4724_v4 = vrot.slane %v12979_v48, %v4691_v6  ;;  %v11778_v60 = vld [vmem:[#allocation22 + $0x440] ss:$12 sps:$4 sm:$0xff]  }
0x142e   :  { %v6605_v17 = vadd.f32 %v6604_v2, %v6562_v1  ;;  %8859 = vmatpush2.bf16.msra.mxu1 %v11695_v7  ;;  %8887 = vmatprep.subr.bf16.mxu0 %v11721_v10  ;;  %v6713_v59 = vmax.f32 %v6603_v53, 0.0  ;;  %v11743_v7 = vld [vmem:[#allocation22 + $0x128] ss:$12 sps:$4 sm:$0xff]   ;;  %v11760_v10 = vld [vmem:[#allocation22 + $0x8a0] ss:$12 sps:$4 sm:$0xff]  }
0x142f   :  { %8860 = vmatprep.subr.bf16.mxu1 %v11700_v34  ;;  %v11767_v34 = vld [vmem:[#allocation22 + $0x88c] ss:$12 sps:$4 sm:$0xff]   ;;  %v11749_v1 = vld [vmem:[#allocation22 + $0x50] ss:$12 sps:$4 sm:$0xff]   ;;  %v11772_v2 = vld [vmem:[#allocation22 + $0x874] ss:$12 sps:$4 sm:$0xff]  }
0x1430   :  { %v6714_v21 = vmax.f32 %v6605_v17, 0.0  ;;  %v12992_v37 = vpack.c.bf16 %v6713_v59, %v6701_v54  ;;  %v11770_v17 = vld [vmem:[#allocation22 + $0x870] ss:$12 sps:$4 sm:$0xff]   ;;  %v11774_v53 = vld [vmem:[#allocation22 + $0x398] ss:$12 sps:$4 sm:$0xff]  }
0x1431   :  { %8888 = vmatpush1.bf16.msra.mxu0 %v11719_v5  ;;  %v11753_v5 = vld [vmem:[#allocation22 + $0xf8] ss:$12 sps:$4 sm:$0xff]   ;;  %v11785_v56 = vld [vmem:[#allocation22 + $0x2f0] ss:$12 sps:$4 sm:$0xff]   ;;  %v11779_v59 = vld [vmem:[#allocation22 + $0x380] ss:$12 sps:$4 sm:$0xff]  }
0x1432   :  { %8861 = vmatpush2.bf16.msra.mxu1 %v11698_v19  ;;  %v12986_v12 = vpack.c.bf16 %v6714_v21, %v6702_v43  ;;  %8889 = vmatprep.subr.bf16.mxu0 %v11727_v29  ;;  %v11754_v19 = vld [vmem:[#allocation22 + $0x38] ss:$12 sps:$4 sm:$0xff]   ;;  %v11777_v29 = vld [vmem:[#allocation22 + $0x85c] ss:$12 sps:$4 sm:$0xff]   ;;  %v11759_v21 = vld [vmem:[#allocation22 + $0x20] ss:$12 sps:$4 sm:$0xff]  }
0x1433   :  { %8862 = vmatprep.subr.bf16.mxu1 %v11706_v30  ;;  %v11758_v30 = vld [vmem:[#allocation22 + $0xe0] ss:$12 sps:$4 sm:$0xff]   ;;  %v11775_v43 = vld [vmem:[#allocation22 + $0x858] ss:$12 sps:$4 sm:$0xff]  }
0x1434   :  { %8870 = vmatprep.mubr.bf16.mxu1 %v12986_v12 }
0x1435   :  { %8890 = vmatpush1.bf16.msra.mxu0 %v11725_v23  ;;  %v11782_v23 = vld [vmem:[#allocation22 + $0x844] ss:$12 sps:$4 sm:$0xff]  }
0x1436   :  { %8863 = vmatpush2.bf16.msra.mxu1 %v11704_v22  ;;  %8891 = vmatprep.subr.bf16.mxu0 %v11732_v36  ;;  %v11763_v22 = vld [vmem:[#allocation22 + $0xc8] ss:$12 sps:$4 sm:$0xff]   ;;  %v11780_v36 = vld [vmem:[#allocation22 + $0x840] ss:$12 sps:$4 sm:$0xff]  }
0x1437   :  { %8864 = vmatprep.subr.bf16.mxu1 %v11712_v8  ;;  %v11764_v8 = vld [vmem:[#allocation22 + $0x8] ss:$12 sps:$4 sm:$0xff]  }
0x1439   :  { %8892 = vmatpush1.bf16.msra.mxu0 %v11730_v38  ;;  %v11768_v38 = vld [vmem:[#allocation22 + $0x470] ss:$12 sps:$4 sm:$0xff]  }
0x143a   :  { %8865 = vmatpush2.bf16.msra.mxu1 %v11710_v0  ;;  %8893 = vmatprep.subr.bf16.mxu0 %v11737_v58  ;;  %v11769_v58 = vld [vmem:[#allocation22 + $0x3b0] ss:$12 sps:$4 sm:$0xff]  }
0x143b   :  { %8866 = vmatprep.subr.bf16.mxu1 %v11718_v44  ;;  %v11773_v44 = vld [vmem:[#allocation22 + $0x458] ss:$12 sps:$4 sm:$0xff]  }
0x143d   :  { %8894 = vmatpush1.bf16.msra.mxu0 %v11735_v35  ;;  %v4720_v35 = vrot.slane %v12979_v48, %v12425_v26 }
0x143e   :  { %8867 = vmatpush2.bf16.msra.mxu1 %v11716_v11  ;;  %8895 = vmatprep.subr.bf16.mxu0 %v11742_v39 }
0x143f   :  { %8868 = vmatprep.subr.bf16.mxu1 %v11724_v27 }
0x1441   :  { %8896 = vmatpush1.bf16.msra.mxu0 %v11740_v9 }
0x1442   :  { %8869 = vmatpush2.bf16.msra.mxu1 %v11722_v46  ;;  %8897 = vmatprep.subr.bf16.mxu0 %v11747_v31 }
0x1443   :  { %10260 = vmatprep.subr.bf16.mxu1 %v11728_v45 }
0x1445   :  { %8871 = vmatmul.mubr.bf16.vlgmr.msra.gmra.mxu1 %v12992_v37  ;;  %8898 = vmatpush2.bf16.msra.mxu0 %v11745_v14  ;;  %v6684_v0 = vpop.f32.mrf.mxu1 }
0x1446   :  { %10261 = vmatpush3.bf16.msra.mxu1 %v11729_v52  ;;  %8956 = vmatprep.mubr.bf16.mxu1 %v12915_v33  ;;  %v11748_v33 = vld [vmem:[#allocation22 + $0x110] ss:$12 sps:$4 sm:$0xff]  }
0x1447   :  { %10262 = vmatprep.subr.bf16.mxu1 %v11733_v41  ;;  %8899 = vmatprep.subr.bf16.mxu0 %v11752_v13  ;;  %v6686_v42 = vpop.f32.mrf.mxu1  ;;  %v11784_v13 = vld [vmem:[#allocation22 + $0x368] ss:$12 sps:$4 sm:$0xff]  }
0x1449   :  { %8900 = vmatpush2.bf16.msra.mxu0 %v11750_v40  ;;  %v6688_v9 = vpop.f32.mrf.mxu1 }
0x144a   :  { %10263 = vmatpush3.bf16.msra.mxu1 %v11734_v16  ;;  %8901 = vmatprep.subr.bf16.mxu0 %v11757_v62  ;;  %v11787_v62 = vld [vmem:[#allocation22 + $0x410] ss:$12 sps:$4 sm:$0xff]  }
0x144b   :  { %10264 = vmatprep.subr.bf16.mxu1 %v11738_v3  ;;  %v6690_v14 = vpop.f32.mrf.mxu1 }
0x144d   :  { %8902 = vmatpush2.bf16.msra.mxu0 %v11755_v49 }
0x144e   :  { %10265 = vmatpush3.bf16.msra.mxu1 %v11739_v18  ;;  %8903 = vmatprep.subr.bf16.mxu0 %v11762_v55  ;;  %v11786_v18 = vld [vmem:[#allocation22 + $0x230] ss:$12 sps:$4 sm:$0xff]  }
0x144f   :  { %10266 = vmatprep.subr.bf16.mxu1 %v11743_v7  ;;  %v11788_v7 = vld [vmem:[#allocation22 + $0x350] ss:$12 sps:$4 sm:$0xff]  }
0x1451   :  { %8904 = vmatpush2.bf16.msra.mxu0 %v11760_v10  ;;  %v11789_v10 = vld [vmem:[#allocation22 + $0x2d8] ss:$12 sps:$4 sm:$0xff]  }
0x1452   :  { %10267 = vmatpush3.bf16.msra.mxu1 %v11744_v61  ;;  %8905 = vmatprep.subr.bf16.mxu0 %v11767_v34  ;;  %v11791_v61 = vld [vmem:[#allocation22 + $0x3f8] ss:$12 sps:$4 sm:$0xff]  }
0x1453   :  { %10268 = vmatprep.subr.bf16.mxu1 %v11748_v33  ;;  %v11790_v34 = vld [vmem:[#allocation22 + $0x218] ss:$12 sps:$4 sm:$0xff]  }
0x1454   :  { %v11792_v33 = vld [vmem:[#allocation22 + $0x338] ss:$12 sps:$4 sm:$0xff]  }
0x1455   :  { %8906 = vmatpush2.bf16.msra.mxu0 %v11765_v15  ;;  %v11793_v15 = vld [vmem:[#allocation22 + $0x2c0] ss:$12 sps:$4 sm:$0xff]  }
0x1456   :  { %10269 = vmatpush3.bf16.msra.mxu1 %v11749_v1  ;;  %8907 = vmatprep.subr.bf16.mxu0 %v11772_v2  ;;  %v11795_v1 = vld [vmem:[#allocation22 + $0x3e0] ss:$12 sps:$4 sm:$0xff]  }
0x1457   :  { %10270 = vmatprep.subr.bf16.mxu1 %v11753_v5  ;;  %v11794_v2 = vld [vmem:[#allocation22 + $0x200] ss:$12 sps:$4 sm:$0xff]  }
0x1458   :  { %v11796_v5 = vld [vmem:[#allocation22 + $0x320] ss:$12 sps:$4 sm:$0xff]  }
0x1459   :  { %8908 = vmatpush2.bf16.msra.mxu0 %v11770_v17  ;;  %v11797_v17 = vld [vmem:[#allocation22 + $0x2a8] ss:$12 sps:$4 sm:$0xff]  }
0x145a   :  { %10271 = vmatpush3.bf16.msra.mxu1 %v11754_v19  ;;  %8909 = vmatprep.subr.bf16.mxu0 %v11777_v29  ;;  %v11799_v19 = vld [vmem:[#allocation22 + $0x3c8] ss:$12 sps:$4 sm:$0xff]  }
0x145b   :  { %10272 = vmatprep.subr.bf16.mxu1 %v11758_v30  ;;  %v11798_v29 = vld [vmem:[#allocation22 + $0x1e8] ss:$12 sps:$4 sm:$0xff]   ;;  %v11801_v30 = vld [vmem:[#allocation22 + $0x290] ss:$12 sps:$4 sm:$0xff]  }
0x145d   :  { %8910 = vmatpush2.bf16.msra.mxu0 %v11775_v43  ;;  %v11803_v43 = vld [vmem:[#allocation22 + $0x770] ss:$12 sps:$4 sm:$0xff]  }
0x145e   :  { %10273 = vmatpush3.bf16.msra.mxu1 %v11759_v21  ;;  %8911 = vmatprep.subr.bf16.mxu0 %v11782_v23  ;;  %v11802_v21 = vld [vmem:[#allocation22 + $0x1d0] ss:$12 sps:$4 sm:$0xff]  }
0x145f   :  { %10274 = vmatprep.subr.bf16.mxu1 %v11763_v22  ;;  %v11804_v23 = vld [vmem:[#allocation22 + $0x6b0] ss:$12 sps:$4 sm:$0xff]   ;;  %v11805_v22 = vld [vmem:[#allocation22 + $0x278] ss:$12 sps:$4 sm:$0xff]  }
0x1461   :  { %8912 = vmatpush2.bf16.msra.mxu0 %v11780_v36  ;;  %v11807_v36 = vld [vmem:[#allocation22 + $0x758] ss:$12 sps:$4 sm:$0xff]  }
0x1462   :  { %10275 = vmatpush3.bf16.msra.mxu1 %v11764_v8  ;;  %10282 = vmatprep.subr.bf16.mxu0 %v11785_v56  ;;  %v11806_v8 = vld [vmem:[#allocation22 + $0x1b8] ss:$12 sps:$4 sm:$0xff]  }
0x1463   :  { %10304 = vmatprep.subr.bf16.mxu1 %v11768_v38  ;;  %v11808_v56 = vld [vmem:[#allocation22 + $0x698] ss:$12 sps:$4 sm:$0xff]   ;;  %v11809_v38 = vld [vmem:[#allocation22 + $0x260] ss:$12 sps:$4 sm:$0xff]  }
0x1464   :  { %v6641_v11 = vpop.f32.mrf.mxu0 }
0x1465   :  { %8957 = vmatmul.mubr.bf16.vlgmr.msra.gmra.mxu1 %v12911_v57  ;;  %v6642_v24 = vadd.f32 %v6641_v11, %v4720_v35  ;;  %v11783_v57 = vld [vmem:[#allocation22 + $0x428] ss:$12 sps:$4 sm:$0xff]   ;;  %v11817_v11 = vld [vmem:[#allocation22 + $0x5f0] ss:$12 sps:$4 sm:$0xff]  }
0x1466   :  { %v6643_v39 = vpop.f32.mrf.mxu0  ;;  %10305 = vmatpush3.bf16.msra.mxu1 %v11769_v58  ;;  %9038 = vmatprep.mubr.bf16.mxu1 %v12946_v50  ;;  %v11810_v58 = vld [vmem:[#allocation22 + $0x1a0] ss:$12 sps:$4 sm:$0xff]  }
0x1467   :  { %v6644_v27 = vadd.f32 %v6643_v39, %v4724_v4  ;;  %10306 = vmatprep.subr.bf16.mxu1 %v11773_v44  ;;  %v6685_v52 = vadd.f32 %v6684_v0, %v6642_v24  ;;  %v11811_v0 = vld [vmem:[#allocation22 + $0x740] ss:$12 sps:$4 sm:$0xff]   ;;  %v11813_v44 = vld [vmem:[#allocation22 + $0x248] ss:$12 sps:$4 sm:$0xff]   ;;  %v11818_v39 = vld [vmem:[#allocation22 + $0x530] ss:$12 sps:$4 sm:$0xff]  }
0x1468   :  { %v6645_v46 = vpop.f32.mrf.mxu0  ;;  %v11824_v24 = vld [vmem:[#allocation22 + $0x638] ss:$12 sps:$4 sm:$0xff]  }
0x1469   :  { %v6646_v6 = vadd.f32 %v6645_v46, %v4720_v35  ;;  %v6687_v45 = vadd.f32 %v6686_v42, %v6644_v27  ;;  %v6703_v3 = vmax.f32 %v6685_v52, 0.0  ;;  %v11815_v42 = vld [vmem:[#allocation22 + $0x728] ss:$12 sps:$4 sm:$0xff]   ;;  %v11821_v27 = vld [vmem:[#allocation22 + $0x5d8] ss:$12 sps:$4 sm:$0xff]  }
0x146a   :  { %v6647_v31 = vpop.f32.mrf.mxu0  ;;  %10307 = vmatpush3.bf16.msra.mxu1 %v11774_v53  ;;  %v11814_v35 = vld [vmem:[#allocation22 + $0x188] ss:$12 sps:$4 sm:$0xff]   ;;  %v11820_v53 = vld [vmem:[#allocation22 + $0x650] ss:$12 sps:$4 sm:$0xff]   ;;  %v11825_v46 = vld [vmem:[#allocation22 + $0x5c0] ss:$12 sps:$4 sm:$0xff]  }
0x146b   :  { %v6689_v48 = vadd.f32 %v6688_v9, %v6646_v6  ;;  %v6648_v54 = vadd.f32 %v6647_v31, %v4724_v4  ;;  %10308 = vmatprep.subr.bf16.mxu1 %v11778_v60  ;;  %v6704_v40 = vmax.f32 %v6687_v45, 0.0  ;;  %v11812_v4 = vld [vmem:[#allocation22 + $0x680] ss:$12 sps:$4 sm:$0xff]   ;;  %v11823_v60 = vld [vmem:[#allocation22 + $0x6f8] ss:$12 sps:$4 sm:$0xff]  }
0x146c   :  { %v11822_v9 = vld [vmem:[#allocation22 + $0x518] ss:$12 sps:$4 sm:$0xff]   ;;  %v11827_v6 = vld [vmem:[#allocation22 + $0x6e0] ss:$12 sps:$4 sm:$0xff]   ;;  %v11829_v45 = vld [vmem:[#allocation22 + $0x5a8] ss:$12 sps:$4 sm:$0xff]  }
0x146d   :  { %v6691_v41 = vadd.f32 %v6690_v14, %v6648_v54  ;;  %v6715_v50 = vmax.f32 %v6689_v48, 0.0  ;;  %v11826_v31 = vld [vmem:[#allocation22 + $0x500] ss:$12 sps:$4 sm:$0xff]   ;;  %v11831_v48 = vld [vmem:[#allocation22 + $0x6c8] ss:$12 sps:$4 sm:$0xff]  }
0x146e   :  { %10309 = vmatpush3.bf16.msra.mxu1 %v11779_v59  ;;  %v11828_v59 = vld [vmem:[#allocation22 + $0x620] ss:$12 sps:$4 sm:$0xff]   ;;  %v11833_v54 = vld [vmem:[#allocation22 + $0x590] ss:$12 sps:$4 sm:$0xff]   ;;  %v11835_v14 = vld [vmem:[#allocation22 + $0x578] ss:$12 sps:$4 sm:$0xff]  }
0x146f   :  { %v6716_v16 = vmax.f32 %v6691_v41, 0.0  ;;  %10310 = vmatprep.subr.bf16.mxu1 %v11783_v57  ;;  %v13005_v55 = vpack.c.bf16 %v6715_v50, %v6703_v3  ;;  %v11834_v57 = vld [vmem:[#allocation22 + $0x4d0] ss:$12 sps:$4 sm:$0xff]   ;;  %v11836_v52 = vld [vmem:[#allocation22 + $0x4b8] ss:$12 sps:$4 sm:$0xff]  }
0x1470   :  { %v11837_v41 = vld [vmem:[#allocation22 + $0x560] ss:$12 sps:$4 sm:$0xff]   ;;  %v11843_v3 = vld [vmem:[#allocation22 + $0x8d8] ss:$12 sps:$4 sm:$0xff]  }
0x1471   :  { %v13003_v49 = vpack.c.bf16 %v6716_v16, %v6704_v40  ;;  %v11838_v50 = vld [vmem:[#allocation22 + $0x4a0] ss:$12 sps:$4 sm:$0xff]   ;;  %v11840_v40 = vld [vmem:[#allocation22 + $0x488] ss:$12 sps:$4 sm:$0xff]   ;;  %v11841_v16 = vld [vmem:[#allocation22 + $0x8f0] ss:$12 sps:$4 sm:$0xff]  }
0x1472   :  { %10311 = vmatpush3.bf16.msra.mxu1 %v11784_v13  ;;  %v11839_v13 = vld [vmem:[#allocation22 + $0x548] ss:$12 sps:$4 sm:$0xff]  }
0x1473   :  { %8913 = vmatprep.mubr.bf16.mxu0 %v13003_v49  ;;  %10312 = vmatprep.subr.bf16.mxu1 %v11787_v62  ;;  %v11842_v62 = vld [vmem:[#allocation22 + $0x830] ss:$12 sps:$4 sm:$0xff]  }
0x1474   :  { %8914 = vmatmul.mubr.bf16.vlgmr.msra.gmra.mxu0 %v13005_v55 }
0x1475   :  { %10283 = vmatpush3.bf16.msra.mxu0 %v11786_v18  ;;  %8997 = vmatprep.mubr.bf16.mxu0 %v12932_v51  ;;  %v11800_v51 = vld [vmem:[#allocation22 + $0x308] ss:$12 sps:$4 sm:$0xff]   ;;  %v11845_v18 = vld [vmem:[#allocation22 + $0x8c0] ss:$12 sps:$4 sm:$0xff]  }
0x1476   :  { %10313 = vmatpush3.bf16.msra.mxu1 %v11788_v7  ;;  %10284 = vmatprep.subr.bf16.mxu0 %v11789_v10  ;;  %v11846_v7 = vld [vmem:[#allocation22 + $0x800] ss:$12 sps:$4 sm:$0xff]   ;;  %v11847_v10 = vld [vmem:[#allocation22 + $0x8a8] ss:$12 sps:$4 sm:$0xff]  }
0x1477   :  { %10314 = vmatprep.subr.bf16.mxu1 %v11791_v61  ;;  %v11848_v61 = vld [vmem:[#allocation22 + $0x7e8] ss:$12 sps:$4 sm:$0xff]  }
0x1479   :  { %10285 = vmatpush3.bf16.msra.mxu0 %v11790_v34  ;;  %v11849_v34 = vld [vmem:[#allocation22 + $0x890] ss:$12 sps:$4 sm:$0xff]  }
0x147a   :  { %10315 = vmatpush3.bf16.msra.mxu1 %v11792_v33  ;;  %10286 = vmatprep.subr.bf16.mxu0 %v11793_v15  ;;  %v11850_v33 = vld [vmem:[#allocation22 + $0x7d0] ss:$12 sps:$4 sm:$0xff]   ;;  %v11851_v15 = vld [vmem:[#allocation22 + $0x878] ss:$12 sps:$4 sm:$0xff]  }
0x147b   :  { %10316 = vmatprep.subr.bf16.mxu1 %v11795_v1  ;;  %v11853_v1 = vld [vmem:[#allocation22 + $0x860] ss:$12 sps:$4 sm:$0xff]  }
0x147d   :  { %10287 = vmatpush3.bf16.msra.mxu0 %v11794_v2  ;;  %v11855_v2 = vld [vmem:[#allocation22 + $0x848] ss:$12 sps:$4 sm:$0xff]  }
0x147e   :  { %10317 = vmatpush3.bf16.msra.mxu1 %v11796_v5  ;;  %10288 = vmatprep.subr.bf16.mxu0 %v11797_v17  ;;  %v11856_v5 = vld [vmem:[#allocation22 + $0x788] ss:$12 sps:$4 sm:$0xff]  }
0x147f   :  { %10318 = vmatprep.subr.bf16.mxu1 %v11799_v19 }
0x1481   :  { %10289 = vmatpush3.bf16.msra.mxu0 %v11798_v29 }
0x1482   :  { %10319 = vmatpush3.bf16.msra.mxu1 %v11800_v51  ;;  %10290 = vmatprep.subr.bf16.mxu0 %v11801_v30 }
0x1483   :  { %10348 = vmatprep.subr.bf16.mxu1 %v11803_v43 }
0x1485   :  { %10291 = vmatpush3.bf16.msra.mxu0 %v11802_v21  ;;  %9039 = vmatmul.mubr.bf16.vlgmr.msra.gmra.mxu1 %v12967_v63  ;;  %v11816_v63 = vld [vmem:[#allocation22 + $0x668] ss:$12 sps:$4 sm:$0xff]   ;;  %v8700_v17 = vpop.f32.mrf.mxu1 }
0x1486   :  { %10349 = vmatpush3.bf16.msra.mxu1 %v11804_v23  ;;  %9120 = vmatprep.mubr.bf16.mxu1 %v12986_v12  ;;  %v11819_v12 = vld [vmem:[#allocation22 + $0x710] ss:$12 sps:$4 sm:$0xff]  }
0x1487   :  { %10292 = vmatprep.subr.bf16.mxu0 %v11805_v22  ;;  %10350 = vmatprep.subr.bf16.mxu1 %v11807_v36  ;;  %v8702_v19 = vpop.f32.mrf.mxu1  ;;  %v7113_v36 = vld [vmem:[#allocation23] sm:$0x7] }
0x1489   :  { %10293 = vmatpush3.bf16.msra.mxu0 %v11806_v8  ;;  %v8704_v29 = vpop.f32.mrf.mxu1 }
0x148a   :  { %10351 = vmatpush3.bf16.msra.mxu1 %v11808_v56  ;;  %10294 = vmatprep.subr.bf16.mxu0 %v11809_v38 }
0x148b   :  { %10352 = vmatprep.subr.bf16.mxu1 %v11811_v0  ;;  %v8706_v30 = vpop.f32.mrf.mxu1  ;;  %v7118_v0 = vrot.slane %v7113_v36, %v12428_v28 }
0x148d   :  { %10295 = vmatpush3.bf16.msra.mxu0 %v11810_v58 }
0x148e   :  { %10353 = vmatpush3.bf16.msra.mxu1 %v11812_v4  ;;  %10296 = vmatprep.subr.bf16.mxu0 %v11813_v44  ;;  %v7122_v4 = vrot.slane %v7113_v36, %v12422_v25 }
0x148f   :  { %10354 = vmatprep.subr.bf16.mxu1 %v11815_v42  ;;  %v8701_v42 = vadd.f32 %v8700_v17, %v7118_v0  ;;  %v7126_v17 = vrot.slane %v7113_v36, %v12425_v26 }
0x1491   :  { %10297 = vmatpush3.bf16.msra.mxu0 %v11814_v35  ;;  %v8703_v35 = vadd.f32 %v8702_v19, %v7122_v4 }
0x1492   :  { %10355 = vmatpush3.bf16.msra.mxu1 %v11816_v63  ;;  %10326 = vmatprep.subr.bf16.mxu0 %v11817_v11 }
0x1493   :  { %10356 = vmatprep.subr.bf16.mxu1 %v11819_v12 }
0x1494   :  { %8998 = vmatmul.mubr.bf16.vlgmr.msra.gmra.mxu0 %v12955_v32  ;;  %v11830_v32 = vld [vmem:[#allocation22 + $0x4e8] ss:$12 sps:$4 sm:$0xff]  }
0x1495   :  { %10327 = vmatpush3.bf16.msra.mxu0 %v11818_v39  ;;  %9079 = vmatprep.mubr.bf16.mxu0 %v12972_v20  ;;  %v11832_v20 = vld [vmem:[#allocation22 + $0x608] ss:$12 sps:$4 sm:$0xff]   ;;  %v8705_v39 = vadd.f32 %v8704_v29, %v7118_v0 }
0x1496   :  { %10357 = vmatpush3.bf16.msra.mxu1 %v11820_v53  ;;  %10328 = vmatprep.subr.bf16.mxu0 %v11821_v27 }
0x1497   :  { %10358 = vmatprep.subr.bf16.mxu1 %v11823_v60  ;;  %v8707_v60 = vadd.f32 %v8706_v30, %v7122_v4 }
0x1499   :  { %10329 = vmatpush3.bf16.msra.mxu0 %v11822_v9 }
0x149a   :  { %10359 = vmatpush3.bf16.msra.mxu1 %v11824_v24  ;;  %10330 = vmatprep.subr.bf16.mxu0 %v11825_v46 }
0x149b   :  { %10360 = vmatprep.subr.bf16.mxu1 %v11827_v6 }
0x149d   :  { %10331 = vmatpush3.bf16.msra.mxu0 %v11826_v31 }
0x149e   :  { %10361 = vmatpush3.bf16.msra.mxu1 %v11828_v59  ;;  %10332 = vmatprep.subr.bf16.mxu0 %v11829_v45 }
0x149f   :  { %10362 = vmatprep.subr.bf16.mxu1 %v11831_v48 }
0x14a1   :  { %10333 = vmatpush3.bf16.msra.mxu0 %v11830_v32 }
0x14a2   :  { %10363 = vmatpush3.bf16.msra.mxu1 %v11832_v20  ;;  %10334 = vmatprep.subr.bf16.mxu0 %v11833_v54 }
0x14a4   :  { %v8743_v51 = vpop.f32.mrf.mxu0 }
0x14a5   :  { %10335 = vmatpush3.bf16.msra.mxu0 %v11834_v57  ;;  %9121 = vmatmul.mubr.bf16.vlgmr.msra.gmra.mxu1 %v12992_v37  ;;  %v11844_v37 = vld [vmem:[#allocation22 + $0x818] ss:$12 sps:$4 sm:$0xff]   ;;  %v8744_v63 = vadd.f32 %v8743_v51, %v8701_v42 }
0x14a6   :  { %10336 = vmatprep.subr.bf16.mxu0 %v11835_v14  ;;  %v8745_v43 = vpop.f32.mrf.mxu0 }
0x14a7   :  { %v8746_v53 = vadd.f32 %v8745_v43, %v8703_v35 }
0x14a8   :  { %v8747_v23 = vpop.f32.mrf.mxu0 }
0x14a9   :  { %10337 = vmatpush3.bf16.msra.mxu0 %v11836_v52  ;;  %v8748_v9 = vadd.f32 %v8747_v23, %v8705_v39 }
0x14aa   :  { %10338 = vmatprep.subr.bf16.mxu0 %v11837_v41  ;;  %v8749_v8 = vpop.f32.mrf.mxu0 }
0x14ab   :  { %v8750_v28 = vadd.f32 %v8749_v8, %v8707_v60 }
0x14ad   :  { %10339 = vmatpush3.bf16.msra.mxu0 %v11838_v50 }
0x14ae   :  { %10340 = vmatprep.subr.bf16.mxu0 %v11839_v13 }
0x14b1   :  { %10341 = vmatpush3.bf16.msra.mxu0 %v11840_v40 }
0x14b2   :  { %10370 = vmatprep.subr.bf16.mxu0 %v11841_v16 }
0x14b4   :  { %9080 = vmatmul.mubr.bf16.vlgmr.msra.gmra.mxu0 %v12977_v47  ;;  %v11852_v47 = vld [vmem:[#allocation22 + $0x7b8] ss:$12 sps:$4 sm:$0xff]  }
0x14b5   :  { %10371 = vmatpush3.bf16.msra.mxu0 %v11842_v62  ;;  %9161 = vmatprep.mubr.bf16.mxu0 %v13003_v49  ;;  %v11854_v49 = vld [vmem:[#allocation22 + $0x7a0] ss:$12 sps:$4 sm:$0xff]  }
0x14b6   :  { %10372 = vmatprep.subr.bf16.mxu0 %v11843_v3 }
0x14b9   :  { %10373 = vmatpush3.bf16.msra.mxu0 %v11844_v37 }
0x14ba   :  { %10374 = vmatprep.subr.bf16.mxu0 %v11845_v18 }
0x14bd   :  { %10375 = vmatpush3.bf16.msra.mxu0 %v11846_v7 }
0x14be   :  { %10376 = vmatprep.subr.bf16.mxu0 %v11847_v10 }
0x14c1   :  { %10377 = vmatpush3.bf16.msra.mxu0 %v11848_v61 }
0x14c2   :  { %10378 = vmatprep.subr.bf16.mxu0 %v11849_v34 }
0x14c5   :  { %10379 = vmatpush3.bf16.msra.mxu0 %v11850_v33  ;;  %v8786_v21 = vpop.f32.mrf.mxu1 }
0x14c6   :  { %10380 = vmatprep.subr.bf16.mxu0 %v11851_v15  ;;  %v8787_v27 = vadd.f32 %v8786_v21, %v8744_v63 }
0x14c7   :  { %v8788_v22 = vpop.f32.mrf.mxu1 }
0x14c8   :  { %v8789_v24 = vadd.f32 %v8788_v22, %v8746_v53 }
0x14c9   :  { %10381 = vmatpush3.bf16.msra.mxu0 %v11852_v47  ;;  %v8790_v56 = vpop.f32.mrf.mxu1 }
0x14ca   :  { %10382 = vmatprep.subr.bf16.mxu0 %v11853_v1  ;;  %v8791_v59 = vadd.f32 %v8790_v56, %v8748_v9 }
0x14cb   :  { %v8792_v58 = vpop.f32.mrf.mxu1 }
0x14cc   :  { %v8793_v32 = vadd.f32 %v8792_v58, %v8750_v28 }
0x14cd   :  { %10383 = vmatpush3.bf16.msra.mxu0 %v11854_v49 }
0x14ce   :  { %10384 = vmatprep.subr.bf16.mxu0 %v11855_v2 }
0x14d1   :  { %10385 = vmatpush3.bf16.msra.mxu0 %v11856_v5 }
0x14d4   :  { %9162 = vmatmul.mubr.bf16.vlgmr.msra.gmra.mxu0 %v13005_v55 }
0x14e4   :  { %v8829_v38 = vpop.f32.mrf.mxu0 }
0x14e5   :  { %v8830_v46 = vadd.f32 %v8829_v38, %v8787_v27 }
0x14e6   :  { %v8831_v44 = vpop.f32.mrf.mxu0 }
0x14e7   :  { %v8832_v45 = vadd.f32 %v8831_v44, %v8789_v24 }
0x14e8   :  { %v8833_v11 = vpop.f32.mrf.mxu0 }
0x14e9   :  { %v8834_v20 = vadd.f32 %v8833_v11, %v8791_v59 }
0x14ea   :  { %v8835_v6 = vpop.f32.mrf.mxu0 }
0x14eb   :  { %v8836_v41 = vadd.f32 %v8835_v6, %v8793_v32 }
0x1505   :  { %v8872_v55 = vpop.f32.mrf.mxu1 }
0x1506   :  { %v8873_v25 = vadd.f32 %v8872_v55, %v8830_v46 }
0x1507   :  { %v8874_v12 = vpop.f32.mrf.mxu1 }
0x1508   :  { %v8875_v54 = vadd.f32 %v8874_v12, %v8832_v45 }
0x1509   :  { %v8876_v31 = vpop.f32.mrf.mxu1 }
0x150a   :  { %v8877_v50 = vadd.f32 %v8876_v31, %v8834_v20 }
0x150b   :  { %v8878_v14 = vpop.f32.mrf.mxu1 }
0x150c   :  { %v8879_v16 = vadd.f32 %v8878_v14, %v8836_v41 }
0x1525   :  { %v10276_v18 = vpop.f32.mrf.mxu1 }
0x1527   :  { %v10277_v7 = vpop.f32.mrf.mxu1 }
0x1528   :  { %v10278_v19 = vadd.f32 %v10277_v7, %v10276_v18 }
0x1529   :  { %v10279_v10 = vpop.f32.mrf.mxu1 }
0x152a   :  { %v8959_v21 = vadd.f32 %v10278_v19, %v7126_v17 }
0x152b   :  { %v10280_v34 = vpop.f32.mrf.mxu1 }
0x152c   :  { %v10281_v23 = vadd.f32 %v10280_v34, %v10279_v10 }
0x152e   :  { %v8962_v0 = vadd.f32 %v10281_v23, %v7126_v17 }
0x1534   :  { %v8915_v48 = vpop.f32.mrf.mxu0 }
0x1535   :  { %v8916_v57 = vadd.f32 %v8915_v48, %v8873_v25 }
0x1536   :  { %v8917_v52 = vpop.f32.mrf.mxu0 }
0x1537   :  { %9170 = vst [vmem:[#allocation25] sm:$0xff] %v8916_v57  ;;  %v8918_v13 = vadd.f32 %v8917_v52, %v8875_v54 }
0x1538   :  { %v8919_v40 = vpop.f32.mrf.mxu0 }
0x1539   :  { %9171 = vst [vmem:[#allocation25 + $0x8] sm:$0xff] %v8918_v13  ;;  %v8920_v62 = vadd.f32 %v8919_v40, %v8877_v50 }
0x153a   :  { %v8921_v3 = vpop.f32.mrf.mxu0 }
0x153b   :  { %9173 = vst [vmem:[#allocation25 + $0x18] sm:$0xff] %v8920_v62  ;;  %v8922_v37 = vadd.f32 %v8921_v3, %v8879_v16 }
0x153d   :  { %9174 = vst [vmem:[#allocation25 + $0x20] sm:$0xff] %v8922_v37 }
0x1545   :  { %v10320_v15 = vpop.f32.mrf.mxu1 }
0x1547   :  { %v10321_v1 = vpop.f32.mrf.mxu1 }
0x1548   :  { %v10322_v58 = vadd.f32 %v10321_v1, %v10320_v15 }
0x1549   :  { %v10323_v2 = vpop.f32.mrf.mxu1 }
0x154b   :  { %v10324_v29 = vpop.f32.mrf.mxu1 }
0x154c   :  { %v10325_v63 = vadd.f32 %v10324_v29, %v10323_v2 }
0x1554   :  { %v10298_v61 = vpop.f32.mrf.mxu0 }
0x1556   :  { %v10299_v33 = vpop.f32.mrf.mxu0 }
0x1557   :  { %v10300_v30 = vadd.f32 %v10299_v33, %v10298_v61 }
0x1558   :  { %v10301_v47 = vpop.f32.mrf.mxu0 }
0x1559   :  { %v9000_v8 = vadd.f32 %v10300_v30, %v8959_v21 }
0x155a   :  { %v10302_v49 = vpop.f32.mrf.mxu0 }
0x155b   :  { %v10303_v56 = vadd.f32 %v10302_v49, %v10301_v47  ;;  %v9041_v42 = vadd.f32 %v10322_v58, %v9000_v8 }
0x155d   :  { %v9003_v55 = vadd.f32 %v10303_v56, %v8962_v0 }
0x155f   :  { %v9044_v39 = vadd.f32 %v10325_v63, %v9003_v55 }
0x1565   :  { %v10364_v43 = vpop.f32.mrf.mxu1 }
0x1567   :  { %v10365_v38 = vpop.f32.mrf.mxu1 }
0x1568   :  { %v10366_v12 = vadd.f32 %v10365_v38, %v10364_v43 }
0x1569   :  { %v10367_v35 = vpop.f32.mrf.mxu1 }
0x156b   :  { %v10368_v53 = vpop.f32.mrf.mxu1 }
0x156c   :  { %v10369_v6 = vadd.f32 %v10368_v53, %v10367_v35 }
0x1574   :  { %v10342_v5 = vpop.f32.mrf.mxu0 }
0x1576   :  { %v10343_v51 = vpop.f32.mrf.mxu0 }
0x1577   :  { %v10344_v4 = vadd.f32 %v10343_v51, %v10342_v5 }
0x1578   :  { %v10345_v22 = vpop.f32.mrf.mxu0 }
0x1579   :  { %v9082_v26 = vadd.f32 %v10344_v4, %v9041_v42 }
0x157a   :  { %v10346_v44 = vpop.f32.mrf.mxu0 }
0x157b   :  { %v10347_v36 = vadd.f32 %v10346_v44, %v10345_v22  ;;  %v9123_v9 = vadd.f32 %v10366_v12, %v9082_v26 }
0x157d   :  { %v9085_v60 = vadd.f32 %v10347_v36, %v9044_v39 }
0x157f   :  { %v9126_v59 = vadd.f32 %v10369_v6, %v9085_v60 }
0x1594   :  { %v10386_v11 = vpop.f32.mrf.mxu0 }
0x1596   :  { %v10387_v27 = vpop.f32.mrf.mxu0 }
0x1597   :  { %v10388_v24 = vadd.f32 %v10387_v27, %v10386_v11 }
0x1598   :  { %v10389_v46 = vpop.f32.mrf.mxu0 }
0x1599   :  { %v9164_v31 = vadd.f32 %v10388_v24, %v9123_v9 }
0x159a   :  { %v10390_v28 = vpop.f32.mrf.mxu0 }
0x159b   :  { %9172 = vst [vmem:[#allocation25 + $0x10] sm:$0xff] %v9164_v31  ;;  %v10391_v45 = vadd.f32 %v10390_v28, %v10389_v46 }
0x159d   :  { %v9167_v25 = vadd.f32 %v10391_v45, %v9126_v59 }
0x159f   :  { %9175 = vst [vmem:[#allocation25 + $0x28] sm:$0xff] %v9167_v25 }
0x15a0   :  { %12204 = shalt.err (!%p12201_p4)
}
0x15a1   :  { %9187 = dma.vmem_to_hbm [thread:$0]  %s9182_s22, 768, %s13041_s14, [#allocation4], %s12240_s9, %s12240_s9, %s12241_s3  }
0x15a2   :  { %12229 = dma.done.wait [#allocation4], 768  }
0x15a3   :  { %12230 = vsyncadd [#allocation4], 4294966528 }
0x15a4   :  { %9191 = vsyncpa [#allocation3], 1 }
0x15a5   :  { %9192 = vsyncpa [#allocation6], 1 }
0x15a6   :  { %9193 = vsyncpa [#allocation9], 1 }
0x15a7   :  { %9194 = vsyncpa [#allocation12], 1 }
0x15a8   :  { %9195 = vsyncpa [#allocation15], 1 }
0x15a9   :  { %9196 = vsyncpa [#allocation18], 1 }
0x15aa   :  { %9197 = vsyncpa [#allocation21], 1 }
0x15ab   :  { %9198 = vsyncpa [#allocation24], 1 }
0x15ac   :  { %9199 = vsyncpa [#allocation4], 1 }

</bundles_post_ra>
